<compile_context>
chip_gen: v5e
topology: v5e:2x2
jax: 0.10.0
libtpu: 0.0.40
codegen_flags: <defaults>
</compile_context>

<pallas_src>
import functools

import jax
import jax.numpy as jnp
from jax.experimental import pallas as pl
from jax.experimental.pallas import tpu as pltpu


def dgwt_kernel(x_ref, mask_ref,
                wq_ref, bq_ref, wk_ref, bk_ref, wv_ref, bv_ref,
                wo_ref, bo_ref, w1_ref, b1_ref, w2_ref, b2_ref,
                g1_ref, be1_ref, g2_ref, be2_ref,
                y_ref, attn_ref,
                acc_attn, acc_halt,
                *, seq_len, num_heads, eps=1e-5):
    h = pl.program_id(1)          # head index (reduction grid axis)
    T = seq_len
    H = num_heads

    @pl.when(h == 0)
    def _init():
        acc_attn[...] = jnp.zeros_like(acc_attn)
        acc_halt[...] = jnp.zeros_like(acc_halt)

    x = x_ref[...].astype(jnp.float32)            # (R, D), R = Bb*T rows of this block
    R, D = x.shape
    Bb = R // T
    xb = x.astype(jnp.bfloat16)
    mask = mask_ref[...].astype(jnp.float32)      # (Bb, T), nonzero == padded key

    # ---- per-head projections (weights pre-sliced per head by BlockSpec;
    #      1/sqrt(Dh) query scale already folded into wq/bq) ----
    q = jnp.dot(xb, wq_ref[...], preferred_element_type=jnp.float32) + bq_ref[...]
    k = jnp.dot(xb, wk_ref[...], preferred_element_type=jnp.float32) + bk_ref[...]
    v = jnp.dot(xb, wv_ref[...], preferred_element_type=jnp.float32) + bv_ref[...]
    Dh = q.shape[-1]

    # tile-aligned leading-dim splits (T is a multiple of the sublane tile)
    qb = q.reshape(Bb, T, Dh).astype(jnp.bfloat16)
    kb = k.reshape(Bb, T, Dh).astype(jnp.bfloat16)
    vb = v.reshape(Bb, T, Dh).astype(jnp.bfloat16)

    # ---- masked softmax over keys, batched over the Bb sequences of this block ----
    s = jnp.einsum('bqd,bkd->bqk', qb, kb,
                   preferred_element_type=jnp.float32)          # (Bb, T, T)
    key_bias = jnp.where(mask != 0.0, jnp.float32(-1e30), jnp.float32(0.0))
    s = s + key_bias[:, None, :]
    s = s - jnp.max(s, axis=-1, keepdims=True)
    p = jnp.exp(s)
    p = p * pl.reciprocal(jnp.sum(p, axis=-1, keepdims=True), approx=True)

    # ---- halting accumulation: sum of attention weights over the query dim ----
    acc_halt[...] += jnp.sum(p, axis=1)                         # (Bb, T)

    # ---- head output folded directly into the out-projection accumulator ----
    o = jnp.einsum('bqk,bkd->bqd', p.astype(jnp.bfloat16), vb,
                   preferred_element_type=jnp.float32)          # (Bb, T, Dh)
    o2 = o.reshape(R, Dh).astype(jnp.bfloat16)
    acc_attn[...] += jnp.dot(o2, wo_ref[...],
                             preferred_element_type=jnp.float32)  # (R, D)

    # ---- finalize once per batch block: residual + LN1 + FFN + LN2 + halting ----
    @pl.when(h == H - 1)
    def _finalize():
        attn_out = acc_attn[...] + bo_ref[...]
        x1 = x + attn_out
        mu = jnp.mean(x1, axis=-1, keepdims=True)
        var = jnp.mean((x1 - mu) ** 2, axis=-1, keepdims=True)
        x1 = (x1 - mu) * jax.lax.rsqrt(var + eps) * g1_ref[...] + be1_ref[...]

        h1 = jnp.dot(x1.astype(jnp.bfloat16), w1_ref[...],
                     preferred_element_type=jnp.float32) + b1_ref[...]
        h1 = jnp.maximum(h1, 0.0)
        h2 = jnp.dot(h1.astype(jnp.bfloat16), w2_ref[...],
                     preferred_element_type=jnp.float32) + b2_ref[...]

        x2 = x1 + h2
        mu2 = jnp.mean(x2, axis=-1, keepdims=True)
        var2 = jnp.mean((x2 - mu2) ** 2, axis=-1, keepdims=True)
        y_ref[...] = ((x2 - mu2) * jax.lax.rsqrt(var2 + eps) * g2_ref[...]
                      + be2_ref[...]).astype(y_ref.dtype)

        # halting distribution (exact division so it matches torch.softmax closely)
        halt = acc_halt[...] * (1.0 / H) + mask * (-10000000000.0)
        halt = halt - jnp.max(halt, axis=-1, keepdims=True)
        halt = jnp.exp(halt)
        halt = halt / jnp.sum(halt, axis=-1, keepdims=True)
        attn_ref[...] = halt.astype(attn_ref.dtype)


def init_params(key, dim, ffn_dim):
    ks = jax.random.split(key, 6)
    return {
        'w_in': jax.random.normal(ks[0], (3 * dim, dim), jnp.float32) * 0.05,
        'b_in': jax.random.normal(ks[1], (3 * dim,), jnp.float32) * 0.02,
        'w_out': jax.random.normal(ks[2], (dim, dim), jnp.float32) * 0.05,
        'b_out': jnp.zeros((dim,), jnp.float32),
        # FeedForwardNetwork assumed Linear(dim->FFN) -> ReLU -> Linear(FFN->dim)
        'w1': jax.random.normal(ks[3], (ffn_dim, dim), jnp.float32) * 0.05,
        'b1': jax.random.normal(ks[4], (ffn_dim,), jnp.float32) * 0.02,
        'w2': jax.random.normal(ks[5], (dim, ffn_dim), jnp.float32) * 0.05,
        'b2': jnp.zeros((dim,), jnp.float32),
        'g1': jnp.ones((dim,), jnp.float32),
        'be1': jnp.zeros((dim,), jnp.float32),
        'g2': jnp.ones((dim,), jnp.float32),
        'be2': jnp.zeros((dim,), jnp.float32),
    }


def dgwt_forward(x, mask, params, num_heads):
    B, T, D = x.shape
    H = num_heads
    assert D % H == 0
    Dh = D // H
    F = params['w1'].shape[0]
    scale = float(Dh) ** -0.5

    # ---- batch blocking: >= 128 rows of (Bb*T, D) per grid step ----
    Bb = max(1, pl.cdiv(128, T))
    if T % 8 != 0:                      # keep block row counts sublane-tile aligned
        Bb = ((Bb + 7) // 8) * 8
    nb = pl.cdiv(B, Bb)                 # production B gives nb >= 2 -> both v7x TCs used
    B_pad = nb * Bb

    xp = x.astype(jnp.float32)
    mp = mask.astype(jnp.float32)
    if B_pad != B:
        xp = jnp.pad(xp, ((0, B_pad - B), (0, 0), (0, 0)))
        mp = jnp.pad(mp, ((0, B_pad - B), (0, 0)))
    x2d = xp.reshape(B_pad * T, D)      # wrapper-side layout plumbing (free XLA reshape)

    # ---- one-time weight plumbing (torch Linear is x @ W^T + b) ----
    w_in, b_in = params['w_in'], params['b_in']
    wq, bq = w_in[:D] * scale, b_in[:D] * scale          # fold 1/sqrt(Dh) into q
    wk, bk = w_in[D:2 * D], b_in[D:2 * D]
    wv, bv = w_in[2 * D:], b_in[2 * D:]

    def head_major(w, b):  # (D_out, D_in) -> ((H, D_in, Dh) bf16, (H, 1, Dh) f32)
        wT = jnp.transpose(w.T.reshape(D, H, Dh), (1, 0, 2))
        return wT.astype(jnp.bfloat16), b.reshape(H, 1, Dh).astype(jnp.float32)

    wqT, bqh = head_major(wq, bq)
    wkT, bkh = head_major(wk, bk)
    wvT, bvh = head_major(wv, bv)
    woT = params['w_out'].T.reshape(H, Dh, D).astype(jnp.bfloat16)   # per-head W_out^T rows

    args = (
        x2d, mp,
        wqT, bqh, wkT, bkh, wvT, bvh,
        woT, params['b_out'].reshape(1, D).astype(jnp.float32),
        params['w1'].T.astype(jnp.bfloat16), params['b1'].reshape(1, F).astype(jnp.float32),
        params['w2'].T.astype(jnp.bfloat16), params['b2'].reshape(1, D).astype(jnp.float32),
        params['g1'].reshape(1, D).astype(jnp.float32), params['be1'].reshape(1, D).astype(jnp.float32),
        params['g2'].reshape(1, D).astype(jnp.float32), params['be2'].reshape(1, D).astype(jnp.float32),
    )

    def const2d(shp):
        return pl.BlockSpec(shp, lambda bb, hh: (0, 0))

    def per_head(shp):
        return pl.BlockSpec((None,) + shp, lambda bb, hh: (hh, 0, 0))

    in_specs = [
        pl.BlockSpec((Bb * T, D), lambda bb, hh: (bb, 0)),   # x rows of this block
        pl.BlockSpec((Bb, T), lambda bb, hh: (bb, 0)),       # mask
        per_head((D, Dh)), per_head((1, Dh)),                # wq, bq
        per_head((D, Dh)), per_head((1, Dh)),                # wk, bk
        per_head((D, Dh)), per_head((1, Dh)),                # wv, bv
        per_head((Dh, D)), const2d((1, D)),                  # wo_h, b_out
        const2d((D, F)), const2d((1, F)),                    # w1, b1
        const2d((F, D)), const2d((1, D)),                    # w2, b2
        const2d((1, D)), const2d((1, D)),                    # ln1 gamma/beta
        const2d((1, D)), const2d((1, D)),                    # ln2 gamma/beta
    ]
    out_specs = (
        pl.BlockSpec((Bb * T, D), lambda bb, hh: (bb, 0)),   # y (lane-dense in D)
        pl.BlockSpec((Bb, T), lambda bb, hh: (bb, 0)),       # halting
    )

    flops = (2 * B_pad * T * D * 3 * D            # qkv projection
             + 2 * B_pad * H * T * T * Dh * 2     # q@k^T and p@v
             + 2 * B_pad * T * D * D              # out projection
             + 2 * B_pad * T * D * F * 2)         # FFN
    transcendentals = B_pad * (H * T * T + 3 * T)
    bytes_accessed = int(sum(int(a.size) * a.dtype.itemsize for a in args)
                         + B_pad * T * D * 4 + B_pad * T * 4)

    y2d, attn = pl.pallas_call(
        functools.partial(dgwt_kernel, seq_len=T, num_heads=H),
        grid=(nb, H),
        out_shape=(jax.ShapeDtypeStruct((B_pad * T, D), jnp.float32),
                   jax.ShapeDtypeStruct((B_pad, T), jnp.float32)),
        in_specs=in_specs,
        out_specs=out_specs,
        scratch_shapes=[pltpu.VMEM((Bb * T, D), jnp.float32),   # out-proj accumulator
                        pltpu.VMEM((Bb, T), jnp.float32)],      # halting accumulator
        compiler_params=pltpu.CompilerParams(
            dimension_semantics=("parallel", "arbitrary"),
            vmem_limit_bytes=32 * 1024 * 1024),
        cost_estimate=pl.CostEstimate(flops=flops,
                                      transcendentals=transcendentals,
                                      bytes_accessed=bytes_accessed),
    )(*args)

    y = y2d.reshape(B_pad, T, D)[:B]
    return y, attn[:B]


def dgwt_reference(x, mask, params, H):
    """Pure-JAX f32 reference matching the PyTorch module (for a sanity check)."""
    B, T, D = x.shape
    Dh = D // H
    scale = Dh ** -0.5
    qkv = x @ params['w_in'].T + params['b_in']
    q, k, v = qkv[..., :D], qkv[..., D:2 * D], qkv[..., 2 * D:]

    def split(a):
        return a.reshape(B, T, H, Dh).transpose(0, 2, 1, 3)

    qh, kh, vh = split(q) * scale, split(k), split(v)
    s = jnp.einsum('bhqd,bhkd->bhqk', qh, kh)
    s = s + jnp.where(mask[:, None, None, :] != 0, -jnp.inf, 0.0)
    p = jax.nn.softmax(s, axis=-1)
    o = jnp.einsum('bhqk,bhkd->bhqd', p, vh).transpose(0, 2, 1, 3).reshape(B, T, D)
    attn_out = o @ params['w_out'].T + params['b_out']
    halting = jnp.sum(jnp.mean(p, axis=1), axis=1)                     # (B, T)
    halting = jax.nn.softmax(halting + mask * (-10000000000.0), axis=-1)

    def ln(z, g, b):
        mu = z.mean(-1, keepdims=True)
        var = ((z - mu) ** 2).mean(-1, keepdims=True)
        return (z - mu) * jax.lax.rsqrt(var + 1e-5) * g + b

    x1 = ln(x + attn_out, params['g1'], params['be1'])
    h1 = jnp.maximum(x1 @ params['w1'].T + params['b1'], 0.0)
    h2 = h1 @ params['w2'].T + params['b2']
    y = ln(x1 + h2, params['g2'], params['be2'])
    return y, halting


if __name__ == "__main__":
    batch, t, dim, head, ffn_dim = 2, 8, 32, 4, 64
    key = jax.random.PRNGKey(0)
    kx, kp = jax.random.split(key)
    x = jax.random.normal(kx, (batch, t, dim), jnp.float32)
    # last two time steps of each sequence are padding (nonzero == masked key)
    mask = jnp.zeros((batch, t), jnp.float32).at[:, -2:].set(1.0)
    params = init_params(kp, dim, ffn_dim)

    y, attn = dgwt_forward(x, mask, params, head)
    jax.block_until_ready((y, attn))

    assert y.shape == (batch, t, dim) and attn.shape == (batch, t)
    assert bool(jnp.all(jnp.isfinite(y))) and bool(jnp.all(jnp.isfinite(attn)))

    # loose tolerance: kernel uses bf16 MXU operands + approx-reciprocal softmax
    y_ref, attn_ref = dgwt_reference(x, mask, params, head)
    assert float(jnp.max(jnp.abs(y - y_ref))) < 2e-1
    assert float(jnp.max(jnp.abs(attn - attn_ref))) < 3e-2

    print("KERNEL_OK")
</pallas_src>

<mosaic_0001>
module attributes {stable_mosaic.version = 11 : i64} {
  func.func @dgwt_kernel(%arg0: i32, %arg1: i32, %arg2: memref<128x32xf32, #tpu.memory_space<vmem>>, %arg3: memref<16x8xf32, #tpu.memory_space<vmem>>, %arg4: memref<1x32x8xbf16, #tpu.memory_space<vmem>>, %arg5: memref<1x1x8xf32, #tpu.memory_space<vmem>>, %arg6: memref<1x32x8xbf16, #tpu.memory_space<vmem>>, %arg7: memref<1x1x8xf32, #tpu.memory_space<vmem>>, %arg8: memref<1x32x8xbf16, #tpu.memory_space<vmem>>, %arg9: memref<1x1x8xf32, #tpu.memory_space<vmem>>, %arg10: memref<1x8x32xbf16, #tpu.memory_space<vmem>>, %arg11: memref<1x32xf32, #tpu.memory_space<vmem>>, %arg12: memref<32x64xbf16, #tpu.memory_space<vmem>>, %arg13: memref<1x64xf32, #tpu.memory_space<vmem>>, %arg14: memref<64x32xbf16, #tpu.memory_space<vmem>>, %arg15: memref<1x32xf32, #tpu.memory_space<vmem>>, %arg16: memref<1x32xf32, #tpu.memory_space<vmem>>, %arg17: memref<1x32xf32, #tpu.memory_space<vmem>>, %arg18: memref<1x32xf32, #tpu.memory_space<vmem>>, %arg19: memref<1x32xf32, #tpu.memory_space<vmem>>, %arg20: memref<128x32xf32, #tpu.memory_space<vmem>>, %arg21: memref<16x8xf32, #tpu.memory_space<vmem>>, %arg22: memref<128x32xf32, #tpu.memory_space<vmem>>, %arg23: memref<16x8xf32, #tpu.memory_space<vmem>>) attributes {dimension_semantics = [#tpu.dimension_semantics<parallel>, #tpu.dimension_semantics<arbitrary>], iteration_bounds = array<i64: 1, 4>, scalar_prefetch = 0 : i64, scratch_operands = 2 : i64, tpu.core_type = #tpu.core_type<tc>, window_params = [{transform_indices = @transform_0, window_bounds = array<i64: 128, 32>}, {transform_indices = @transform_1, window_bounds = array<i64: 16, 8>}, {transform_indices = @transform_2, window_bounds = array<i64: 1, 32, 8>}, {transform_indices = @transform_3, window_bounds = array<i64: 1, 1, 8>}, {transform_indices = @transform_4, window_bounds = array<i64: 1, 32, 8>}, {transform_indices = @transform_5, window_bounds = array<i64: 1, 1, 8>}, {transform_indices = @transform_6, window_bounds = array<i64: 1, 32, 8>}, {transform_indices = @transform_7, window_bounds = array<i64: 1, 1, 8>}, {transform_indices = @transform_8, window_bounds = array<i64: 1, 8, 32>}, {pipeline_mode = #tpu.pipeline_mode<synchronous>, transform_indices = @transform_9, window_bounds = array<i64: 1, 32>}, {pipeline_mode = #tpu.pipeline_mode<synchronous>, transform_indices = @transform_10, window_bounds = array<i64: 32, 64>}, {pipeline_mode = #tpu.pipeline_mode<synchronous>, transform_indices = @transform_11, window_bounds = array<i64: 1, 64>}, {pipeline_mode = #tpu.pipeline_mode<synchronous>, transform_indices = @transform_12, window_bounds = array<i64: 64, 32>}, {pipeline_mode = #tpu.pipeline_mode<synchronous>, transform_indices = @transform_13, window_bounds = array<i64: 1, 32>}, {pipeline_mode = #tpu.pipeline_mode<synchronous>, transform_indices = @transform_14, window_bounds = array<i64: 1, 32>}, {pipeline_mode = #tpu.pipeline_mode<synchronous>, transform_indices = @transform_15, window_bounds = array<i64: 1, 32>}, {pipeline_mode = #tpu.pipeline_mode<synchronous>, transform_indices = @transform_16, window_bounds = array<i64: 1, 32>}, {pipeline_mode = #tpu.pipeline_mode<synchronous>, transform_indices = @transform_17, window_bounds = array<i64: 1, 32>}, {transform_indices = @transform_18, window_bounds = array<i64: 128, 32>}, {transform_indices = @transform_19, window_bounds = array<i64: 16, 8>}]} {
    %c0_i32 = arith.constant 0 : i32
    %0 = arith.cmpi eq, %arg1, %c0_i32 : i32
    %1 = arith.extui %0 : i1 to i32
    %c0_i32_0 = arith.constant 0 : i32
    %2 = arith.cmpi ne, %1, %c0_i32_0 : i32
    scf.if %2 {
      %cst_45 = arith.constant 0.000000e+00 : f32
      %69 = vector.broadcast %cst_45 : f32 to vector<128x32xf32>
      %c0_46 = arith.constant 0 : index
      %c0_47 = arith.constant 0 : index
      %70 = vector.load %arg22[%c0_46, %c0_47] : memref<128x32xf32, #tpu.memory_space<vmem>>, vector<128x32xf32>
      tpu.vector_store %arg22[%c0_46, %c0_47], %69 {strides = array<i32>} : memref<128x32xf32, #tpu.memory_space<vmem>>, vector<128x32xf32>,
      %cst_48 = arith.constant 0.000000e+00 : f32
      %71 = vector.broadcast %cst_48 : f32 to vector<16x8xf32>
      %c0_49 = arith.constant 0 : index
      %c0_50 = arith.constant 0 : index
      %72 = vector.load %arg23[%c0_49, %c0_50] : memref<16x8xf32, #tpu.memory_space<vmem>>, vector<16x8xf32>
      tpu.vector_store %arg23[%c0_49, %c0_50], %71 {strides = array<i32>} : memref<16x8xf32, #tpu.memory_space<vmem>>, vector<16x8xf32>,
    } else {
    }
    %c0 = arith.constant 0 : index
    %c0_1 = arith.constant 0 : index
    %3 = vector.load %arg2[%c0, %c0_1] : memref<128x32xf32, #tpu.memory_space<vmem>>, vector<128x32xf32>
    %4 = arith.truncf %3 : vector<128x32xf32> to vector<128x32xbf16>
    %c0_2 = arith.constant 0 : index
    %c0_3 = arith.constant 0 : index
    %5 = vector.load %arg3[%c0_2, %c0_3] : memref<16x8xf32, #tpu.memory_space<vmem>>, vector<16x8xf32>
    %c0_4 = arith.constant 0 : index
    %c0_5 = arith.constant 0 : index
    %c0_6 = arith.constant 0 : index
    %6 = vector.load %arg4[%c0_4, %c0_5, %c0_6] : memref<1x32x8xbf16, #tpu.memory_space<vmem>>, vector<1x32x8xbf16>
    %7 = vector.shape_cast %6 : vector<1x32x8xbf16> to vector<32x8xbf16>
    %cst = arith.constant dense<0.000000e+00> : vector<128x8xf32>
    %8 = tpu.matmul %4, %7, %cst {dimension_numbers = #tpu.dot_dimension_numbers<[1], [0], [0], [1], [0, 0, 1, 1], [], []>} : vector<128x32xbf16>, vector<32x8xbf16>, vector<128x8xf32> -> vector<128x8xf32>
    %c0_7 = arith.constant 0 : index
    %c0_8 = arith.constant 0 : index
    %c0_9 = arith.constant 0 : index
    %9 = vector.load %arg5[%c0_7, %c0_8, %c0_9] : memref<1x1x8xf32, #tpu.memory_space<vmem>>, vector<1x1x8xf32>
    %10 = vector.shape_cast %9 : vector<1x1x8xf32> to vector<1x8xf32>
    %11 = vector.broadcast %10 : vector<1x8xf32> to vector<128x8xf32>
    %12 = arith.addf %8, %11 : vector<128x8xf32>
    %c0_10 = arith.constant 0 : index
    %c0_11 = arith.constant 0 : index
    %c0_12 = arith.constant 0 : index
    %13 = vector.load %arg6[%c0_10, %c0_11, %c0_12] : memref<1x32x8xbf16, #tpu.memory_space<vmem>>, vector<1x32x8xbf16>
    %14 = vector.shape_cast %13 : vector<1x32x8xbf16> to vector<32x8xbf16>
    %cst_13 = arith.constant dense<0.000000e+00> : vector<128x8xf32>
    %15 = tpu.matmul %4, %14, %cst_13 {dimension_numbers = #tpu.dot_dimension_numbers<[1], [0], [0], [1], [0, 0, 1, 1], [], []>} : vector<128x32xbf16>, vector<32x8xbf16>, vector<128x8xf32> -> vector<128x8xf32>
    %c0_14 = arith.constant 0 : index
    %c0_15 = arith.constant 0 : index
    %c0_16 = arith.constant 0 : index
    %16 = vector.load %arg7[%c0_14, %c0_15, %c0_16] : memref<1x1x8xf32, #tpu.memory_space<vmem>>, vector<1x1x8xf32>
    %17 = vector.shape_cast %16 : vector<1x1x8xf32> to vector<1x8xf32>
    %18 = vector.broadcast %17 : vector<1x8xf32> to vector<128x8xf32>
    %19 = arith.addf %15, %18 : vector<128x8xf32>
    %c0_17 = arith.constant 0 : index
    %c0_18 = arith.constant 0 : index
    %c0_19 = arith.constant 0 : index
    %20 = vector.load %arg8[%c0_17, %c0_18, %c0_19] : memref<1x32x8xbf16, #tpu.memory_space<vmem>>, vector<1x32x8xbf16>
    %21 = vector.shape_cast %20 : vector<1x32x8xbf16> to vector<32x8xbf16>
    %cst_20 = arith.constant dense<0.000000e+00> : vector<128x8xf32>
    %22 = tpu.matmul %4, %21, %cst_20 {dimension_numbers = #tpu.dot_dimension_numbers<[1], [0], [0], [1], [0, 0, 1, 1], [], []>} : vector<128x32xbf16>, vector<32x8xbf16>, vector<128x8xf32> -> vector<128x8xf32>
    %c0_21 = arith.constant 0 : index
    %c0_22 = arith.constant 0 : index
    %c0_23 = arith.constant 0 : index
    %23 = vector.load %arg9[%c0_21, %c0_22, %c0_23] : memref<1x1x8xf32, #tpu.memory_space<vmem>>, vector<1x1x8xf32>
    %24 = vector.shape_cast %23 : vector<1x1x8xf32> to vector<1x8xf32>
    %25 = vector.broadcast %24 : vector<1x8xf32> to vector<128x8xf32>
    %26 = arith.addf %22, %25 : vector<128x8xf32>
    %27 = vector.shape_cast %12 : vector<128x8xf32> to vector<16x8x8xf32>
    %28 = arith.truncf %27 : vector<16x8x8xf32> to vector<16x8x8xbf16>
    %29 = vector.shape_cast %19 : vector<128x8xf32> to vector<16x8x8xf32>
    %30 = arith.truncf %29 : vector<16x8x8xf32> to vector<16x8x8xbf16>
    %31 = vector.shape_cast %26 : vector<128x8xf32> to vector<16x8x8xf32>
    %32 = arith.truncf %31 : vector<16x8x8xf32> to vector<16x8x8xbf16>
    "tpu.trace_start"() <{level = 10 : i32, message = "bqd,bkd->bqk"}> : () -> ()
    %cst_24 = arith.constant dense<0.000000e+00> : vector<16x8x8xf32>
    %33 = tpu.matmul %28, %30, %cst_24 {dimension_numbers = #tpu.dot_dimension_numbers<[2], [2], [1], [1], [0, 0, 0, 1, 1, 1], [0], [0]>} : vector<16x8x8xbf16>, vector<16x8x8xbf16>, vector<16x8x8xf32> -> vector<16x8x8xf32>
    %cst_25 = arith.constant 0.000000e+00 : f32
    "tpu.trace_stop"() : () -> ()
    %34 = vector.broadcast %cst_25 : f32 to vector<16x8xf32>
    %35 = arith.cmpf one, %5, %34 : vector<16x8xf32>
    %cst_26 = arith.constant -1.000000e+30 : f32
    %cst_27 = arith.constant 0.000000e+00 : f32
    %36 = vector.broadcast %cst_26 : f32 to vector<16x8xf32>
    %37 = vector.broadcast %cst_27 : f32 to vector<16x8xf32>
    %38 = arith.select %35, %36, %37 : vector<16x8xi1>, vector<16x8xf32>
    %39 = vector.shape_cast %38 : vector<16x8xf32> to vector<16x1x8xf32>
    %40 = vector.broadcast %39 : vector<16x1x8xf32> to vector<16x8x8xf32>
    %41 = arith.addf %33, %40 : vector<16x8x8xf32>
    %cst_28 = arith.constant dense<0xFF800000> : vector<16x8xf32>
    %42 = vector.multi_reduction <maximumf>, %41, %cst_28 [2] : vector<16x8x8xf32> to vector<16x8xf32>
    %43 = vector.shape_cast %42 : vector<16x8xf32> to vector<16x8x1xf32>
    %44 = vector.broadcast %43 : vector<16x8x1xf32> to vector<16x8x8xf32>
    %45 = arith.subf %41, %44 : vector<16x8x8xf32>
    %46 = math.exp %45 : vector<16x8x8xf32>
    %cst_29 = arith.constant dense<0.000000e+00> : vector<16x8xf32>
    %47 = vector.multi_reduction <add>, %46, %cst_29 [2] : vector<16x8x8xf32> to vector<16x8xf32>
    %48 = vector.shape_cast %47 : vector<16x8xf32> to vector<16x8x1xf32>
    %49 = tpu.reciprocal %48 {approx = true} : vector<16x8x1xf32> -> vector<16x8x1xf32>
    %50 = vector.broadcast %49 : vector<16x8x1xf32> to vector<16x8x8xf32>
    %51 = arith.mulf %46, %50 : vector<16x8x8xf32>
    %c0_30 = arith.constant 0 : index
    %c0_31 = arith.constant 0 : index
    %52 = vector.load %arg23[%c0_30, %c0_31] : memref<16x8xf32, #tpu.memory_space<vmem>>, vector<16x8xf32>
    %cst_32 = arith.constant dense<0.000000e+00> : vector<16x8xf32>
    %53 = vector.multi_reduction <add>, %51, %cst_32 [1] : vector<16x8x8xf32> to vector<16x8xf32>
    %54 = arith.addf %52, %53 : vector<16x8xf32>
    %c0_33 = arith.constant 0 : index
    %c0_34 = arith.constant 0 : index
    %55 = vector.load %arg23[%c0_33, %c0_34] : memref<16x8xf32, #tpu.memory_space<vmem>>, vector<16x8xf32>
    tpu.vector_store %arg23[%c0_33, %c0_34], %54 {strides = array<i32>} : memref<16x8xf32, #tpu.memory_space<vmem>>, vector<16x8xf32>,
    %56 = arith.truncf %51 : vector<16x8x8xf32> to vector<16x8x8xbf16>
    "tpu.trace_start"() <{level = 10 : i32, message = "bqk,bkd->bqd"}> : () -> ()
    %cst_35 = arith.constant dense<0.000000e+00> : vector<16x8x8xf32>
    %57 = tpu.matmul %56, %32, %cst_35 {dimension_numbers = #tpu.dot_dimension_numbers<[2], [1], [1], [2], [0, 0, 0, 1, 1, 2], [0], [0]>} : vector<16x8x8xbf16>, vector<16x8x8xbf16>, vector<16x8x8xf32> -> vector<16x8x8xf32>
    "tpu.trace_stop"() : () -> ()
    %58 = vector.shape_cast %57 : vector<16x8x8xf32> to vector<128x8xf32>
    %59 = arith.truncf %58 : vector<128x8xf32> to vector<128x8xbf16>
    %c0_36 = arith.constant 0 : index
    %c0_37 = arith.constant 0 : index
    %60 = vector.load %arg22[%c0_36, %c0_37] : memref<128x32xf32, #tpu.memory_space<vmem>>, vector<128x32xf32>
    %c0_38 = arith.constant 0 : index
    %c0_39 = arith.constant 0 : index
    %c0_40 = arith.constant 0 : index
    %61 = vector.load %arg10[%c0_38, %c0_39, %c0_40] : memref<1x8x32xbf16, #tpu.memory_space<vmem>>, vector<1x8x32xbf16>
    %62 = vector.shape_cast %61 : vector<1x8x32xbf16> to vector<8x32xbf16>
    %cst_41 = arith.constant dense<0.000000e+00> : vector<128x32xf32>
    %63 = tpu.matmul %59, %62, %cst_41 {dimension_numbers = #tpu.dot_dimension_numbers<[1], [0], [0], [1], [0, 0, 1, 1], [], []>} : vector<128x8xbf16>, vector<8x32xbf16>, vector<128x32xf32> -> vector<128x32xf32>
    %64 = arith.addf %60, %63 : vector<128x32xf32>
    %c0_42 = arith.constant 0 : index
    %c0_43 = arith.constant 0 : index
    %65 = vector.load %arg22[%c0_42, %c0_43] : memref<128x32xf32, #tpu.memory_space<vmem>>, vector<128x32xf32>
    tpu.vector_store %arg22[%c0_42, %c0_43], %64 {strides = array<i32>} : memref<128x32xf32, #tpu.memory_space<vmem>>, vector<128x32xf32>,
    %c3_i32 = arith.constant 3 : i32
    %66 = arith.cmpi eq, %arg1, %c3_i32 : i32
    %67 = arith.extui %66 : i1 to i32
    %c0_i32_44 = arith.constant 0 : i32
    %68 = arith.cmpi ne, %67, %c0_i32_44 : i32
    scf.if %68 {
      %c0_45 = arith.constant 0 : index
      %c0_46 = arith.constant 0 : index
      %69 = vector.load %arg22[%c0_45, %c0_46] : memref<128x32xf32, #tpu.memory_space<vmem>>, vector<128x32xf32>
      %c0_47 = arith.constant 0 : index
      %c0_48 = arith.constant 0 : index
      %70 = vector.load %arg11[%c0_47, %c0_48] : memref<1x32xf32, #tpu.memory_space<vmem>>, vector<1x32xf32>
      %71 = vector.broadcast %70 : vector<1x32xf32> to vector<128x32xf32>
      %72 = arith.addf %69, %71 : vector<128x32xf32>
      %73 = arith.addf %3, %72 : vector<128x32xf32>
      %cst_49 = arith.constant dense<0.000000e+00> : vector<128xf32>
      %74 = vector.multi_reduction <add>, %73, %cst_49 [1] : vector<128x32xf32> to vector<128xf32>
      %75 = vector.shape_cast %74 : vector<128xf32> to vector<128x1xf32>
      %cst_50 = arith.constant 3.200000e+01 : f32
      %76 = vector.broadcast %cst_50 : f32 to vector<128x1xf32>
      %77 = arith.divf %75, %76 : vector<128x1xf32>
      %78 = vector.broadcast %77 : vector<128x1xf32> to vector<128x32xf32>
      %79 = arith.subf %73, %78 : vector<128x32xf32>
      %80 = arith.mulf %79, %79 : vector<128x32xf32>
      %cst_51 = arith.constant dense<0.000000e+00> : vector<128xf32>
      %81 = vector.multi_reduction <add>, %80, %cst_51 [1] : vector<128x32xf32> to vector<128xf32>
      %82 = vector.shape_cast %81 : vector<128xf32> to vector<128x1xf32>
      %cst_52 = arith.constant 3.200000e+01 : f32
      %83 = vector.broadcast %cst_52 : f32 to vector<128x1xf32>
      %84 = arith.divf %82, %83 : vector<128x1xf32>
      %85 = vector.broadcast %77 : vector<128x1xf32> to vector<128x32xf32>
      %86 = arith.subf %73, %85 : vector<128x32xf32>
      %cst_53 = arith.constant 9.99999974E-6 : f32
      %87 = vector.broadcast %cst_53 : f32 to vector<128x1xf32>
      %88 = arith.addf %84, %87 : vector<128x1xf32>
      %89 = math.rsqrt %88 : vector<128x1xf32>
      %90 = vector.broadcast %89 : vector<128x1xf32> to vector<128x32xf32>
      %91 = arith.mulf %86, %90 : vector<128x32xf32>
      %c0_54 = arith.constant 0 : index
      %c0_55 = arith.constant 0 : index
      %92 = vector.load %arg16[%c0_54, %c0_55] : memref<1x32xf32, #tpu.memory_space<vmem>>, vector<1x32xf32>
      %93 = vector.broadcast %92 : vector<1x32xf32> to vector<128x32xf32>
      %94 = arith.mulf %91, %93 : vector<128x32xf32>
      %c0_56 = arith.constant 0 : index
      %c0_57 = arith.constant 0 : index
      %95 = vector.load %arg17[%c0_56, %c0_57] : memref<1x32xf32, #tpu.memory_space<vmem>>, vector<1x32xf32>
      %96 = vector.broadcast %95 : vector<1x32xf32> to vector<128x32xf32>
      %97 = arith.addf %94, %96 : vector<128x32xf32>
      %98 = arith.truncf %97 : vector<128x32xf32> to vector<128x32xbf16>
      %c0_58 = arith.constant 0 : index
      %c0_59 = arith.constant 0 : index
      %99 = vector.load %arg12[%c0_58, %c0_59] : memref<32x64xbf16, #tpu.memory_space<vmem>>, vector<32x64xbf16>
      %cst_60 = arith.constant dense<0.000000e+00> : vector<128x64xf32>
      %100 = tpu.matmul %98, %99, %cst_60 {dimension_numbers = #tpu.dot_dimension_numbers<[1], [0], [0], [1], [0, 0, 1, 1], [], []>} : vector<128x32xbf16>, vector<32x64xbf16>, vector<128x64xf32> -> vector<128x64xf32>
      %c0_61 = arith.constant 0 : index
      %c0_62 = arith.constant 0 : index
      %101 = vector.load %arg13[%c0_61, %c0_62] : memref<1x64xf32, #tpu.memory_space<vmem>>, vector<1x64xf32>
      %102 = vector.broadcast %101 : vector<1x64xf32> to vector<128x64xf32>
      %103 = arith.addf %100, %102 : vector<128x64xf32>
      %cst_63 = arith.constant 0.000000e+00 : f32
      %104 = vector.broadcast %cst_63 : f32 to vector<128x64xf32>
      %105 = arith.maximumf %103, %104 : vector<128x64xf32>
      %106 = arith.truncf %105 : vector<128x64xf32> to vector<128x64xbf16>
      %c0_64 = arith.constant 0 : index
      %c0_65 = arith.constant 0 : index
      %107 = vector.load %arg14[%c0_64, %c0_65] : memref<64x32xbf16, #tpu.memory_space<vmem>>, vector<64x32xbf16>
      %cst_66 = arith.constant dense<0.000000e+00> : vector<128x32xf32>
      %108 = tpu.matmul %106, %107, %cst_66 {dimension_numbers = #tpu.dot_dimension_numbers<[1], [0], [0], [1], [0, 0, 1, 1], [], []>} : vector<128x64xbf16>, vector<64x32xbf16>, vector<128x32xf32> -> vector<128x32xf32>
      %c0_67 = arith.constant 0 : index
      %c0_68 = arith.constant 0 : index
      %109 = vector.load %arg15[%c0_67, %c0_68] : memref<1x32xf32, #tpu.memory_space<vmem>>, vector<1x32xf32>
      %110 = vector.broadcast %109 : vector<1x32xf32> to vector<128x32xf32>
      %111 = arith.addf %108, %110 : vector<128x32xf32>
      %112 = arith.addf %97, %111 : vector<128x32xf32>
      %cst_69 = arith.constant dense<0.000000e+00> : vector<128xf32>
      %113 = vector.multi_reduction <add>, %112, %cst_69 [1] : vector<128x32xf32> to vector<128xf32>
      %114 = vector.shape_cast %113 : vector<128xf32> to vector<128x1xf32>
      %cst_70 = arith.constant 3.200000e+01 : f32
      %115 = vector.broadcast %cst_70 : f32 to vector<128x1xf32>
      %116 = arith.divf %114, %115 : vector<128x1xf32>
      %117 = vector.broadcast %116 : vector<128x1xf32> to vector<128x32xf32>
      %118 = arith.subf %112, %117 : vector<128x32xf32>
      %119 = arith.mulf %118, %118 : vector<128x32xf32>
      %cst_71 = arith.constant dense<0.000000e+00> : vector<128xf32>
      %120 = vector.multi_reduction <add>, %119, %cst_71 [1] : vector<128x32xf32> to vector<128xf32>
      %121 = vector.shape_cast %120 : vector<128xf32> to vector<128x1xf32>
      %cst_72 = arith.constant 3.200000e+01 : f32
      %122 = vector.broadcast %cst_72 : f32 to vector<128x1xf32>
      %123 = arith.divf %121, %122 : vector<128x1xf32>
      %124 = vector.broadcast %116 : vector<128x1xf32> to vector<128x32xf32>
      %125 = arith.subf %112, %124 : vector<128x32xf32>
      %cst_73 = arith.constant 9.99999974E-6 : f32
      %126 = vector.broadcast %cst_73 : f32 to vector<128x1xf32>
      %127 = arith.addf %123, %126 : vector<128x1xf32>
      %128 = math.rsqrt %127 : vector<128x1xf32>
      %129 = vector.broadcast %128 : vector<128x1xf32> to vector<128x32xf32>
      %130 = arith.mulf %125, %129 : vector<128x32xf32>
      %c0_74 = arith.constant 0 : index
      %c0_75 = arith.constant 0 : index
      %131 = vector.load %arg18[%c0_74, %c0_75] : memref<1x32xf32, #tpu.memory_space<vmem>>, vector<1x32xf32>
      %132 = vector.broadcast %131 : vector<1x32xf32> to vector<128x32xf32>
      %133 = arith.mulf %130, %132 : vector<128x32xf32>
      %c0_76 = arith.constant 0 : index
      %c0_77 = arith.constant 0 : index
      %134 = vector.load %arg19[%c0_76, %c0_77] : memref<1x32xf32, #tpu.memory_space<vmem>>, vector<1x32xf32>
      %135 = vector.broadcast %134 : vector<1x32xf32> to vector<128x32xf32>
      %136 = arith.addf %133, %135 : vector<128x32xf32>
      %c0_78 = arith.constant 0 : index
      %c0_79 = arith.constant 0 : index
      %137 = vector.load %arg20[%c0_78, %c0_79] : memref<128x32xf32, #tpu.memory_space<vmem>>, vector<128x32xf32>
      tpu.vector_store %arg20[%c0_78, %c0_79], %136 {strides = array<i32>} : memref<128x32xf32, #tpu.memory_space<vmem>>, vector<128x32xf32>,
      %c0_80 = arith.constant 0 : index
      %c0_81 = arith.constant 0 : index
      %138 = vector.load %arg23[%c0_80, %c0_81] : memref<16x8xf32, #tpu.memory_space<vmem>>, vector<16x8xf32>
      %cst_82 = arith.constant 2.500000e-01 : f32
      %139 = vector.broadcast %cst_82 : f32 to vector<16x8xf32>
      %140 = arith.mulf %138, %139 : vector<16x8xf32>
      %cst_83 = arith.constant -1.000000e+10 : f32
      %141 = vector.broadcast %cst_83 : f32 to vector<16x8xf32>
      %142 = arith.mulf %5, %141 : vector<16x8xf32>
      %143 = arith.addf %140, %142 : vector<16x8xf32>
      %cst_84 = arith.constant dense<0xFF800000> : vector<16xf32>
      %144 = vector.multi_reduction <maximumf>, %143, %cst_84 [1] : vector<16x8xf32> to vector<16xf32>
      %145 = vector.shape_cast %144 : vector<16xf32> to vector<16x1xf32>
      %146 = vector.broadcast %145 : vector<16x1xf32> to vector<16x8xf32>
      %147 = arith.subf %143, %146 : vector<16x8xf32>
      %148 = math.exp %147 : vector<16x8xf32>
      %cst_85 = arith.constant dense<0.000000e+00> : vector<16xf32>
      %149 = vector.multi_reduction <add>, %148, %cst_85 [1] : vector<16x8xf32> to vector<16xf32>
      %150 = vector.shape_cast %149 : vector<16xf32> to vector<16x1xf32>
      %151 = vector.broadcast %150 : vector<16x1xf32> to vector<16x8xf32>
      %152 = arith.divf %148, %151 : vector<16x8xf32>
      %c0_86 = arith.constant 0 : index
      %c0_87 = arith.constant 0 : index
      %153 = vector.load %arg21[%c0_86, %c0_87] : memref<16x8xf32, #tpu.memory_space<vmem>>, vector<16x8xf32>
      tpu.vector_store %arg21[%c0_86, %c0_87], %152 {strides = array<i32>} : memref<16x8xf32, #tpu.memory_space<vmem>>, vector<16x8xf32>,
    } else {
    }
    return
  }
  func.func @transform_0(%arg0: i32, %arg1: i32) -> (i32, i32) {
    %c0_i32 = arith.constant 0 : i32
    %c0_i32_0 = arith.constant 0 : i32
    return %arg0, %c0_i32 : i32, i32
  }
  func.func @transform_1(%arg0: i32, %arg1: i32) -> (i32, i32) {
    %c0_i32 = arith.constant 0 : i32
    %c0_i32_0 = arith.constant 0 : i32
    return %arg0, %c0_i32 : i32, i32
  }
  func.func @transform_2(%arg0: i32, %arg1: i32) -> (i32, i32, i32) {
    %c0_i32 = arith.constant 0 : i32
    %c0_i32_0 = arith.constant 0 : i32
    %c0_i32_1 = arith.constant 0 : i32
    return %arg1, %c0_i32, %c0_i32_0 : i32, i32, i32
  }
  func.func @transform_3(%arg0: i32, %arg1: i32) -> (i32, i32, i32) {
    %c0_i32 = arith.constant 0 : i32
    %c0_i32_0 = arith.constant 0 : i32
    %c0_i32_1 = arith.constant 0 : i32
    return %arg1, %c0_i32, %c0_i32_0 : i32, i32, i32
  }
  func.func @transform_4(%arg0: i32, %arg1: i32) -> (i32, i32, i32) {
    %c0_i32 = arith.constant 0 : i32
    %c0_i32_0 = arith.constant 0 : i32
    %c0_i32_1 = arith.constant 0 : i32
    return %arg1, %c0_i32, %c0_i32_0 : i32, i32, i32
  }
  func.func @transform_5(%arg0: i32, %arg1: i32) -> (i32, i32, i32) {
    %c0_i32 = arith.constant 0 : i32
    %c0_i32_0 = arith.constant 0 : i32
    %c0_i32_1 = arith.constant 0 : i32
    return %arg1, %c0_i32, %c0_i32_0 : i32, i32, i32
  }
  func.func @transform_6(%arg0: i32, %arg1: i32) -> (i32, i32, i32) {
    %c0_i32 = arith.constant 0 : i32
    %c0_i32_0 = arith.constant 0 : i32
    %c0_i32_1 = arith.constant 0 : i32
    return %arg1, %c0_i32, %c0_i32_0 : i32, i32, i32
  }
  func.func @transform_7(%arg0: i32, %arg1: i32) -> (i32, i32, i32) {
    %c0_i32 = arith.constant 0 : i32
    %c0_i32_0 = arith.constant 0 : i32
    %c0_i32_1 = arith.constant 0 : i32
    return %arg1, %c0_i32, %c0_i32_0 : i32, i32, i32
  }
  func.func @transform_8(%arg0: i32, %arg1: i32) -> (i32, i32, i32) {
    %c0_i32 = arith.constant 0 : i32
    %c0_i32_0 = arith.constant 0 : i32
    %c0_i32_1 = arith.constant 0 : i32
    return %arg1, %c0_i32, %c0_i32_0 : i32, i32, i32
  }
  func.func @transform_9(%arg0: i32, %arg1: i32) -> (i32, i32) {
    %c0_i32 = arith.constant 0 : i32
    %c0_i32_0 = arith.constant 0 : i32
    %c0_i32_1 = arith.constant 0 : i32
    return %c0_i32, %c0_i32_0 : i32, i32
  }
  func.func @transform_10(%arg0: i32, %arg1: i32) -> (i32, i32) {
    %c0_i32 = arith.constant 0 : i32
    %c0_i32_0 = arith.constant 0 : i32
    %c0_i32_1 = arith.constant 0 : i32
    return %c0_i32, %c0_i32_0 : i32, i32
  }
  func.func @transform_11(%arg0: i32, %arg1: i32) -> (i32, i32) {
    %c0_i32 = arith.constant 0 : i32
    %c0_i32_0 = arith.constant 0 : i32
    %c0_i32_1 = arith.constant 0 : i32
    return %c0_i32, %c0_i32_0 : i32, i32
  }
  func.func @transform_12(%arg0: i32, %arg1: i32) -> (i32, i32) {
    %c0_i32 = arith.constant 0 : i32
    %c0_i32_0 = arith.constant 0 : i32
    %c0_i32_1 = arith.constant 0 : i32
    return %c0_i32, %c0_i32_0 : i32, i32
  }
  func.func @transform_13(%arg0: i32, %arg1: i32) -> (i32, i32) {
    %c0_i32 = arith.constant 0 : i32
    %c0_i32_0 = arith.constant 0 : i32
    %c0_i32_1 = arith.constant 0 : i32
    return %c0_i32, %c0_i32_0 : i32, i32
  }
  func.func @transform_14(%arg0: i32, %arg1: i32) -> (i32, i32) {
    %c0_i32 = arith.constant 0 : i32
    %c0_i32_0 = arith.constant 0 : i32
    %c0_i32_1 = arith.constant 0 : i32
    return %c0_i32, %c0_i32_0 : i32, i32
  }
  func.func @transform_15(%arg0: i32, %arg1: i32) -> (i32, i32) {
    %c0_i32 = arith.constant 0 : i32
    %c0_i32_0 = arith.constant 0 : i32
    %c0_i32_1 = arith.constant 0 : i32
    return %c0_i32, %c0_i32_0 : i32, i32
  }
  func.func @transform_16(%arg0: i32, %arg1: i32) -> (i32, i32) {
    %c0_i32 = arith.constant 0 : i32
    %c0_i32_0 = arith.constant 0 : i32
    %c0_i32_1 = arith.constant 0 : i32
    return %c0_i32, %c0_i32_0 : i32, i32
  }
  func.func @transform_17(%arg0: i32, %arg1: i32) -> (i32, i32) {
    %c0_i32 = arith.constant 0 : i32
    %c0_i32_0 = arith.constant 0 : i32
    %c0_i32_1 = arith.constant 0 : i32
    return %c0_i32, %c0_i32_0 : i32, i32
  }
  func.func @transform_18(%arg0: i32, %arg1: i32) -> (i32, i32) {
    %c0_i32 = arith.constant 0 : i32
    %c0_i32_0 = arith.constant 0 : i32
    return %arg0, %c0_i32 : i32, i32
  }
  func.func @transform_19(%arg0: i32, %arg1: i32) -> (i32, i32) {
    %c0_i32 = arith.constant 0 : i32
    %c0_i32_0 = arith.constant 0 : i32
    return %arg0, %c0_i32 : i32, i32
  }
}

</mosaic_0001>

<bundles_post_ra>
// kernel: tpu_custom_call.1
= control target key start
LH: loop header
LB: loop body
LE: loop exit
PB: predicated region body
PF: predicated region fallthrough
CT: control target
= control target key end

     0   :  { %s4086_s30 = smov 0   ;;  %s4088_s20 = smov 0   ;;  %s5673_s0 = inlined_call_operand.vmem [shape: f32[128,32], index: 0, kind: input, shape index: {}]   ;;  %s5674_s1 = inlined_call_operand.vmem [shape: f32[16,8], index: 1, kind: input, shape index: {}]   ;;  %s5675_s2 = inlined_call_operand.vmem [shape: bf16[4,32,8], index: 2, kind: input, shape index: {}]   ;;  %s5676_s3 = inlined_call_operand.vmem [shape: f32[4,1,8], index: 3, kind: input, shape index: {}]   ;;  %s5677_s4 = inlined_call_operand.vmem [shape: bf16[4,32,8], index: 4, kind: input, shape index: {}]   ;;  %s5678_s5 = inlined_call_operand.vmem [shape: f32[4,1,8], index: 5, kind: input, shape index: {}]   ;;  %s5679_s6 = inlined_call_operand.vmem [shape: bf16[4,32,8], index: 6, kind: input, shape index: {}]   ;;  %s5680_s7 = inlined_call_operand.vmem [shape: f32[4,1,8], index: 7, kind: input, shape index: {}]   ;;  %s5681_s8 = inlined_call_operand.vmem [shape: bf16[4,8,32], index: 8, kind: input, shape index: {}]   ;;  %s5682_s9 = inlined_call_operand.vmem [shape: f32[1,32], index: 9, kind: input, shape index: {}]   ;;  %s5683_s10 = inlined_call_operand.vmem [shape: bf16[32,64], index: 10, kind: input, shape index: {}]   ;;  %s5684_s11 = inlined_call_operand.vmem [shape: f32[1,64], index: 11, kind: input, shape index: {}]   ;;  %s5685_s12 = inlined_call_operand.vmem [shape: bf16[64,32], index: 12, kind: input, shape index: {}]   ;;  %s5686_s13 = inlined_call_operand.vmem [shape: f32[1,32], index: 13, kind: input, shape index: {}]   ;;  %s5687_s14 = inlined_call_operand.vmem [shape: f32[1,32], index: 14, kind: input, shape index: {}]   ;;  %s5688_s15 = inlined_call_operand.vmem [shape: f32[1,32], index: 15, kind: input, shape index: {}]   ;;  %s5689_s16 = inlined_call_operand.vmem [shape: f32[1,32], index: 16, kind: input, shape index: {}]   ;;  %s5690_s17 = inlined_call_operand.vmem [shape: f32[1,32], index: 17, kind: input, shape index: {}]   ;;  %s5691_s18 = inlined_call_operand.vmem [shape: f32[128,32], index: 18, kind: output, shape index: {0}]   ;;  %s5692_s19 = inlined_call_operand.vmem [shape: f32[16,8], index: 19, kind: output, shape index: {1}]  }
   0x1   :  { %5699 = sst [smem:[#allocation7_spill]] %s5673_s0  ;;  %s4084_s0 = smov 0  }
   0x2   :  { %5700 = sst [smem:[#allocation8_spill]] %s5674_s1 }
   0x3   :  { %5701 = sst [smem:[#allocation9_spill]] %s5675_s2 }
   0x4   :  { %5702 = sst [smem:[#allocation10_spill]] %s5676_s3 }
   0x5   :  { %5703 = sst [smem:[#allocation11_spill]] %s5686_s13 }
   0x6   :  { %5704 = sst [smem:[#allocation12_spill]] %s5689_s16 }
   0x7   :  { %5705 = sst [smem:[#allocation13_spill]] %s5690_s17 }
   0x8   :  { %5706 = sst [smem:[#allocation14_spill]] %s5691_s18 }
   0x9   :  { %5707 = sst [smem:[#allocation15_spill]] %s5692_s19 }
   0xa LB: > { %5708 = sst [smem:[#allocation4_spill]] %s3975_s30  ;;  %s39_s21 = sadd.s32 1, %s3975_s30  ;;  %s3979_s20 = sphi %s4088_s20, %s30_s20   ;;  %s3975_s30 = sphi %s4086_s30, %s5737_s30   ;;  %s3971_s0 = sphi %s4084_s0, %s5736_s0  }
   0xb   : > { %5709 = sst [smem:[#allocation5_spill]] %s3979_s20  ;;  %p3611_p0 = scmp.ge.s32.totalorder %s3979_s20, 1 }
   0xc   : > { %p40_p1 = scmp.ge.s32.totalorder %s39_s21, 4  ;;  %p627_p2 = scmp.lt.s32.totalorder %s3979_s20, 5 }
   0xe   : > { %s5739_s21 = smov (%p40_p1, %s39_s21), 0  ;;  %p628_p3 = pnand %p3611_p0, %p627_p2 }
   0xf   : > { %5710 = sst [smem:[#allocation6_spill]] %s5739_s21  ;;  %p733_p4 = scmp.lt.s32.totalorder (!%p628_p3), %s3971_s0, 3 }
  0x10   : > { %631 = sbr.rel (%p628_p3) target bundleno = 2164 (0x874), region = 92  ;;  %s5711_s24 = sld [smem:[#allocation10_spill]] (!%p628_p3) }
  0x11   : > { %s5712_s27 = sld [smem:[#allocation9_spill]] (!%p628_p3)  ;;  %p3619_p5 = scmp.ne.s32.totalorder (!%p628_p3), %s3971_s0, 0 }
  0x15   : > { %s4106_s1 = scalar_select %p733_p4, %s3971_s0, 3 }
  0x17   : > { %s3755_s22 = sshll.u32 %s4106_s1, 4  ;;  %s740_s25 = scalar_lea.vmem %s5711_s24, %s4106_s1 }
  0x18   : > { %s4116_s28 = scalar_lea.vmem %s5712_s27, %s3755_s22  ;;  %s4121_s30 = scalar_lea.vmem %s5677_s4, %s3755_s22 }
  0x19   : > { %s748_s18 = scalar_lea.vmem %s5678_s5, %s4106_s1  ;;  %s4130_s13 = scalar_lea.vmem %s5679_s6, %s3755_s22 }
  0x1a   : > { %s756_s24 = scalar_lea.vmem %s5680_s7, %s4106_s1  ;;  %s3618_s3 = sshll.u32 %s4106_s1, 2 }
  0x1b   : > { %s4140_s21 = scalar_lea.vmem %s5681_s8, %s3618_s3  ;;  %777 = sbr.rel (%p3619_p5) target bundleno = 51 (0x33), region = 96 }
  0x20   : > { %vm778_vm0 = vcmask 261120   ;;  %v3981_v0 = vmov 0.0   ;;  %vm795_vm1 = vcmask 64512  }
  0x21   : > { %779 = vst.msk [vmem:[#allocation2] sm:$0xff] %vm778_vm0, %v3981_v0 }
  0x22   : > { %780 = vst.msk [vmem:[#allocation2 + $0x8] sm:$0xff] %vm778_vm0, %v3981_v0 }
  0x23   : > { %781 = vst.msk [vmem:[#allocation2 + $0x10] sm:$0xff] %vm778_vm0, %v3981_v0 }
  0x24   : > { %782 = vst.msk [vmem:[#allocation2 + $0x18] sm:$0xff] %vm778_vm0, %v3981_v0 }
  0x25   : > { %783 = vst.msk [vmem:[#allocation2 + $0x20] sm:$0xff] %vm778_vm0, %v3981_v0 }
  0x26   : > { %784 = vst.msk [vmem:[#allocation2 + $0x28] sm:$0xff] %vm778_vm0, %v3981_v0 }
  0x27   : > { %785 = vst.msk [vmem:[#allocation2 + $0x30] sm:$0xff] %vm778_vm0, %v3981_v0 }
  0x28   : > { %786 = vst.msk [vmem:[#allocation2 + $0x38] sm:$0xff] %vm778_vm0, %v3981_v0 }
  0x29   : > { %787 = vst.msk [vmem:[#allocation2 + $0x40] sm:$0xff] %vm778_vm0, %v3981_v0 }
  0x2a   : > { %788 = vst.msk [vmem:[#allocation2 + $0x48] sm:$0xff] %vm778_vm0, %v3981_v0 }
  0x2b   : > { %789 = vst.msk [vmem:[#allocation2 + $0x50] sm:$0xff] %vm778_vm0, %v3981_v0 }
  0x2c   : > { %790 = vst.msk [vmem:[#allocation2 + $0x58] sm:$0xff] %vm778_vm0, %v3981_v0 }
  0x2d   : > { %791 = vst.msk [vmem:[#allocation2 + $0x60] sm:$0xff] %vm778_vm0, %v3981_v0 }
  0x2e   : > { %792 = vst.msk [vmem:[#allocation2 + $0x68] sm:$0xff] %vm778_vm0, %v3981_v0 }
  0x2f   : > { %793 = vst.msk [vmem:[#allocation2 + $0x70] sm:$0xff] %vm778_vm0, %v3981_v0 }
  0x30   : > { %794 = vst.msk [vmem:[#allocation2 + $0x78] sm:$0xff] %vm778_vm0, %v3981_v0 }
  0x31   : > { %796 = vst.msk [vmem:[#allocation3] sm:$0xff] %vm795_vm1, %v3981_v0 }
  0x32   : > { %797 = vst.msk [vmem:[#allocation3 + $0x8] sm:$0xff] %vm795_vm1, %v3981_v0 }
  0x33 PF: > { %v3759_v1 = vld [vmem:[%s4116_s28 + $0x8] sm:$0xff]  ;;  %v3758_v2 = vld [vmem:[%s4116_s28] sm:$0xff]  ;;  %s5713_s19 = sld [smem:[#allocation7_spill]]  ;;  %vm844_vm2 = vcmask 261120   ;;  %vm1156_vm3 = vcmask 64512   ;;  %vm1813_vm4 = vcmask 1043456  }
  0x34   : > { %3770 = vmatpush.bf16.msra.mxu1 %v3759_v1  ;;  %v3761_v5 = vld [vmem:[%s4121_s30 + $0x8] sm:$0xff]  ;;  %875 = vmatpush.bf16.msra.mxu0 %v3759_v1  ;;  %v3760_v10 = vld [vmem:[%s4121_s30] sm:$0xff]  ;;  %s5715_s17 = sld [smem:[#allocation8_spill]]  ;;  %vm1767_vm7 = vcmask 1041409   ;;  %vm1769_vm8 = vcmask 1042434   ;;  %vm1771_vm9 = vcmask 1043459  }
  0x35   : > { %3771 = vmatpush.bf16.msra.mxu2 %v3759_v1  ;;  %3772 = vmatpush.bf16.msra.mxu3 %v3759_v1  ;;  %v3763_v26 = vld [vmem:[%s4130_s13 + $0x8] sm:$0xff]  ;;  %v3762_v27 = vld [vmem:[%s4130_s13] sm:$0xff]  ;;  %vm1773_vm10 = vcmask 1044484   ;;  %vm1775_vm11 = vcmask 1045509   ;;  %vm1777_vm12 = vcmask 1046534   ;;  %vm1779_vm13 = vcmask 1047559  }
  0x36   : > { %v4301_v35 = vld [vmem:[%s748_s18] ss:$0 sm:$0xff]  ;;  %p3708_p6 = scmp.ne.s32.totalorder %s3971_s0, 3 }
  0x37   : > { %v4310_v38 = vld [vmem:[%s740_s25] ss:$0 sm:$0xff]  ;;  %s5728_s2 = sld [smem:[#allocation11_spill]] (!%p3708_p6) }
  0x38   : > { %3773 = vmatpush.bf16.msra.mxu1 %v3758_v2  ;;  %876 = vmatpush.bf16.msra.mxu0 %v3758_v2  ;;  %s5729_s13 = sld [smem:[#allocation12_spill]] (!%p3708_p6) }
  0x39   : > { %v4164_v3 = vld [vmem:[%s5713_s19 + $0x20] sm:$0xff]  ;;  %v4169_v4 = vld [vmem:[%s5713_s19 + $0x28] sm:$0xff]  ;;  %3774 = vmatpush.bf16.msra.mxu2 %v3758_v2  ;;  %3775 = vmatpush.bf16.msra.mxu3 %v3758_v2  ;;  %v4192_v11 = vld [vmem:[%s5713_s19 + $0x30] sm:$0xff]  ;;  %s5730_s27 = sld [smem:[#allocation13_spill]] (!%p3708_p6) }
  0x3a   : > { %v4175_v6 = vld [vmem:[%s5713_s19] sm:$0xff]  ;;  %v4180_v7 = vld [vmem:[%s5713_s19 + $0x8] sm:$0xff]  ;;  %v816_v8 = vpack.c.bf16 %v4169_v4, %v4164_v3  ;;  %v4197_v12 = vld [vmem:[%s5713_s19 + $0x38] sm:$0xff]  ;;  %s5731_s25 = sld [smem:[#allocation14_spill]] (!%p3708_p6) }
  0x3b   : > { %v814_v9 = vpack.c.bf16 %v4180_v7, %v4175_v6  ;;  %v4202_v13 = vld [vmem:[%s5713_s19 + $0x10] sm:$0xff]  ;;  %v4207_v14 = vld [vmem:[%s5713_s19 + $0x18] sm:$0xff]  ;;  %v817_v15 = vpack.c.bf16 %v4197_v12, %v4192_v11  ;;  %v4220_v17 = vld [vmem:[%s5713_s19 + $0x40] sm:$0xff] }
  0x3c   : > { %944 = vmatpush.bf16.msrb.mxu1 %v3761_v5  ;;  %v815_v16 = vpack.c.bf16 %v4207_v14, %v4202_v13  ;;  %v4225_v18 = vld [vmem:[%s5713_s19 + $0x48] sm:$0xff]  ;;  %v4234_v20 = vld [vmem:[%s5713_s19 + $0x50] sm:$0xff]  ;;  %v4239_v21 = vld [vmem:[%s5713_s19 + $0x58] sm:$0xff] }
  0x3d   : > { %3630 = vmatmul.msk.bf16.vlgmr.msra.gmra.mxu1 %vm844_vm2, %v816_v8  ;;  %3628 = vmatmul.msk.bf16.vlgmr.msra.gmra.mxu0 %vm844_vm2, %v814_v9  ;;  %v818_v19 = vpack.c.bf16 %v4225_v18, %v4220_v17  ;;  %v819_v22 = vpack.c.bf16 %v4239_v21, %v4234_v20  ;;  %v4248_v23 = vld [vmem:[%s5713_s19 + $0x60] sm:$0xff]  ;;  %v4253_v24 = vld [vmem:[%s5713_s19 + $0x68] sm:$0xff]  ;;  %v4268_v28 = vld [vmem:[%s5713_s19 + $0x70] sm:$0xff] }
  0x3e   : > { %v4257_v25 = vpack.c.bf16 %v4253_v24, %v4248_v23  ;;  %1013 = vmatpush.bf16.msrb.mxu2 %v3763_v26  ;;  %v4273_v29 = vld [vmem:[%s5713_s19 + $0x78] sm:$0xff] }
  0x3f   : > { %3632 = vmatmul.msk.bf16.vlgmr.msra.gmra.mxu2 %vm844_vm2, %v818_v19  ;;  %v4277_v30 = vpack.c.bf16 %v4273_v29, %v4268_v28 }
  0x40   : > { %945 = vmatpush.bf16.msrb.mxu1 %v3760_v10  ;;  %3634 = vmatmul.msk.bf16.vlgmr.msra.gmra.mxu3 %vm844_vm2, %v4257_v25 }
  0x42   : > { %1014 = vmatpush.bf16.msrb.mxu2 %v3762_v27 }
  0x4d   : > { %3631 = vmatmul.msk.bf16.gmra.mxu1 %vm844_vm2, %v817_v15  ;;  %3629 = vmatmul.msk.bf16.gmra.mxu0 %vm844_vm2, %v815_v16 }
  0x4f   : > { %3633 = vmatmul.msk.bf16.gmra.mxu2 %vm844_vm2, %v819_v22 }
  0x50   : > { %3635 = vmatmul.msk.bf16.gmra.mxu3 %vm844_vm2, %v4277_v30 }
  0x5d   : > { %3644 = vmatmul.msk.bf16.vlgmr.msrb.gmra.mxu1 %vm844_vm2, %v814_v9 }
  0x5f   : > { %3660 = vmatmul.msk.bf16.vlgmr.msrb.gmra.mxu2 %vm844_vm2, %v814_v9 }
  0x6d   : > { %3645 = vmatmul.msk.bf16.gmra.mxu1 %vm844_vm2, %v815_v16 }
  0x6f   : > { %3661 = vmatmul.msk.bf16.gmra.mxu2 %vm844_vm2, %v815_v16 }
  0x7d   : > { %3646 = vmatmul.msk.bf16.gmra.mxu1 %vm844_vm2, %v816_v8 }
  0x7f   : > { %3662 = vmatmul.msk.bf16.gmra.mxu2 %vm844_vm2, %v816_v8 }
  0x8d   : > { %3647 = vmatmul.msk.bf16.gmra.mxu1 %vm844_vm2, %v817_v15 }
  0x8f   : > { %3663 = vmatmul.msk.bf16.gmra.mxu2 %vm844_vm2, %v817_v15 }
  0x9d   : > { %3648 = vmatmul.msk.bf16.gmra.mxu1 %vm844_vm2, %v818_v19 }
  0x9f   : > { %3664 = vmatmul.msk.bf16.gmra.mxu2 %vm844_vm2, %v818_v19 }
  0xad   : > { %3649 = vmatmul.msk.bf16.gmra.mxu1 %vm844_vm2, %v819_v22 }
  0xaf   : > { %3665 = vmatmul.msk.bf16.gmra.mxu2 %vm844_vm2, %v819_v22 }
  0xba   : > { %v4283_v31 = vpop.f32.mrf.mxu1  ;;  %v878_v40 = vpop.f32.mrf.mxu0 }
  0xbb   : > { %v879_v42 = vadd.f32 %v4310_v38, %v878_v40 }
  0xbd   : > { %3650 = vmatmul.msk.bf16.gmra.mxu1 %vm844_vm2, %v4257_v25  ;;  %v1056_v44 = vpack.c.bf16 %v879_v42, %v879_v42 }
  0xbf   : > { %3666 = vmatmul.msk.bf16.gmra.mxu2 %vm844_vm2, %v4257_v25 }
  0xc2   : > { %v4287_v32 = vpop.f32.mrf.mxu1  ;;  %v880_v51 = vpop.f32.mrf.mxu0 }
  0xc3   : > { %v881_v53 = vadd.f32 %v4310_v38, %v880_v51  ;;  %v898_v8 = vpop.f32.mrf.mxu2 }
  0xc5   : > { %v1057_v56 = vpack.c.bf16 %v881_v53, %v881_v53 }
  0xca   : > { %v4290_v33 = vpop.f32.mrf.mxu1  ;;  %v883_v61 = vpop.f32.mrf.mxu0 }
  0xcb   : > { %v884_v62 = vadd.f32 %v4310_v38, %v883_v61  ;;  %v900_v22 = vpop.f32.mrf.mxu2 }
  0xcd   : > { %3651 = vmatmul.msk.bf16.gmra.mxu1 %vm844_vm2, %v4277_v30  ;;  %v1058_v1 = vpack.c.bf16 %v884_v62, %v884_v62 }
  0xcf   : > { %3667 = vmatmul.msk.bf16.gmra.mxu2 %vm844_vm2, %v4277_v30 }
  0xd2   : > { %v4294_v34 = vpop.f32.mrf.mxu1  ;;  %v885_v10 = vpop.f32.mrf.mxu0 }
  0xd3   : > { %v886_v15 = vadd.f32 %v4310_v38, %v885_v10 }
  0xd5   : > { %v1059_v26 = vpack.c.bf16 %v886_v15, %v886_v15 }
  0xda   : > { %v947_v36 = vpop.f32.mrf.mxu1 }
  0xdb   : > { %v948_v37 = vadd.f32 %v4301_v35, %v947_v36  ;;  %v903_v36 = vpop.f32.mrf.mxu2 }
  0xdd   : > { %v1072_v39 = vpack.c.bf16 %v948_v37, %v948_v37 }
  0xdf   : > { %v1161_v41 = vsel %vm1156_vm3, %v1072_v39, 0 }
  0xe0   : > { %1170 = vmatpush.bf16.xpose.msrb.mxu3 %v1161_v41  ;;  %v899_v41 = vadd.f32 %v4310_v38, %v898_v8 }
  0xe2   : > { %v949_v43 = vpop.f32.mrf.mxu1 }
  0xe3   : > { %v950_v45 = vadd.f32 %v4301_v35, %v949_v43  ;;  %v889_v43 = vadd.f32 %v4310_v38, %v4283_v31 }
  0xe5   : > { %v1073_v46 = vpack.c.bf16 %v950_v45, %v950_v45 }
  0xe7   : > { %3668 = vmatmul.msk.bf16.vlgmr.msrb.gmra.mxu3 %vm1156_vm3, %v1056_v44  ;;  %v1180_v47 = vsel %vm1156_vm3, %v1073_v46, 0  ;;  %v1064_v46 = vpack.c.bf16 %v899_v41, %v899_v41 }
  0xe8   : > { %1189 = vmatpush.bf16.xpose.msra.mxu3 %v1180_v47  ;;  %v4344_v47 = vpop.f32.mrf.mxu2 }
  0xea   : > { %v952_v48 = vpop.f32.mrf.mxu1 }
  0xeb   : > { %v953_v49 = vadd.f32 %v4301_v35, %v952_v48  ;;  %v1060_v48 = vpack.c.bf16 %v889_v43, %v889_v43 }
  0xed   : > { %v1074_v50 = vpack.c.bf16 %v953_v49, %v953_v49 }
  0xef   : > { %v1199_v52 = vsel %vm1156_vm3, %v1074_v50, 0 }
  0xf0   : > { %1208 = vmatpush.bf16.xpose.msrb.mxu3 %v1199_v52  ;;  %v901_v52 = vadd.f32 %v4310_v38, %v900_v22 }
  0xf2   : > { %v954_v54 = vpop.f32.mrf.mxu1 }
  0xf3   : > { %v955_v55 = vadd.f32 %v4301_v35, %v954_v54  ;;  %v1065_v54 = vpack.c.bf16 %v901_v52, %v901_v52 }
  0xf5   : > { %v1075_v57 = vpack.c.bf16 %v955_v55, %v955_v55  ;;  %v1016_v55 = vpop.f32.mrf.mxu2 }
  0xf7   : > { %3669 = vmatmul.msk.bf16.vlgmr.msra.gmra.mxu3 %vm1156_vm3, %v1057_v56  ;;  %v1218_v58 = vsel %vm1156_vm3, %v1075_v57, 0 }
  0xf8   : > { %1227 = vmatpush.bf16.xpose.msra.mxu3 %v1218_v58 }
  0xfa   : > { %v957_v59 = vpop.f32.mrf.mxu1 }
  0xfb   : > { %v958_v60 = vadd.f32 %v4301_v35, %v957_v59  ;;  %v904_v59 = vadd.f32 %v4310_v38, %v903_v36  ;;  %v894_v36 = vadd.f32 %v4310_v38, %v4290_v33 }
  0xfd   : > { %v1076_v63 = vpack.c.bf16 %v958_v60, %v958_v60  ;;  %v891_v60 = vadd.f32 %v4310_v38, %v4287_v32  ;;  %v908_v32 = vpop.f32.mrf.mxu3 }
  0xff   : > { %v1237_v2 = vsel %vm1156_vm3, %v1076_v63, 0  ;;  %v1066_v63 = vpack.c.bf16 %v904_v59, %v904_v59 }
 0x102   : > { %v959_v0 = vpop.f32.mrf.mxu1 }
 0x103   : > { %v960_v9 = vadd.f32 %v4301_v35, %v959_v0  ;;  %v4358_v0 = vpop.f32.mrf.mxu2 }
 0x105   : > { %v1077_v16 = vpack.c.bf16 %v960_v9, %v960_v9 }
 0x107   : > { %3670 = vmatmul.msk.bf16.vlgmr.msrb.gmra.mxu3 %vm1156_vm3, %v1058_v1  ;;  %v1256_v27 = vsel %vm1156_vm3, %v1077_v16, 0  ;;  %v1061_v1 = vpack.c.bf16 %v891_v60, %v891_v60 }
 0x108   : > { %1246 = vmatpush.bf16.xpose.msrb.mxu3 %v1237_v2 }
 0x10a   : > { %v962_v5 = vpop.f32.mrf.mxu1 }
 0x10b   : > { %v963_v39 = vadd.f32 %v4301_v35, %v962_v5  ;;  %v4368_v5 = vld [vmem:[%s756_s24] ss:$0 sm:$0xff]  ;;  %v1021_v16 = vpop.f32.mrf.mxu2 }
 0x10c   : > { %v1017_v8 = vadd.f32 %v4368_v5, %v1016_v55  ;;  %v896_v55 = vadd.f32 %v4310_v38, %v4294_v34 }
 0x10d   : > { %v1078_v44 = vpack.c.bf16 %v963_v39, %v963_v39  ;;  %v910_v39 = vpop.f32.mrf.mxu3 }
 0x10e   : > { %v1088_v15 = vpack.c.bf16 %v1017_v8, %v1017_v8 }
 0x10f   : > { %v1275_v49 = vsel %vm1156_vm3, %v1078_v44, 0  ;;  %v1062_v44 = vpack.c.bf16 %v894_v36, %v894_v36 }
 0x112   : > { %v964_v19 = vpop.f32.mrf.mxu1 }
 0x113   : > { %v965_v56 = vadd.f32 %v4301_v35, %v964_v19  ;;  %v4379_v43 = vpop.f32.mrf.mxu2 }
 0x115   : > { %v1079_v61 = vpack.c.bf16 %v965_v56, %v965_v56  ;;  %v913_v52 = vpop.f32.mrf.mxu3 }
 0x117   : > { %3671 = vmatmul.msk.bf16.vlgmr.msra.gmra.mxu3 %vm1156_vm3, %v1059_v26  ;;  %v1294_v2 = vsel %vm1156_vm3, %v1079_v61, 0  ;;  %v1815_v26 = vsel %vm1813_vm4, %v1088_v15, 0 }
 0x118   : > { %1265 = vmatpush.bf16.xpose.msra.mxu3 %v1256_v27  ;;  %v909_v27 = vadd.f32 %v4310_v38, %v908_v32  ;;  %v4401_v32 = vld [vmem:[%s5715_s17] sm:$0xff] }
 0x119   : > { %vm1104_vm5 = vcmp.ne.f32.partialorder %v4401_v32, 0.0 }
 0x11a   : > { %v967_v25 = vpop.f32.mrf.mxu1  ;;  %v1068_v41 = vpack.c.bf16 %v909_v27, %v909_v27 }
 0x11b   : > { %v968_v37 = vadd.f32 %v4301_v35, %v967_v25 }
 0x11d   : > { %v1080_v40 = vpack.c.bf16 %v968_v37, %v968_v37  ;;  %v915_v8 = vpop.f32.mrf.mxu3 }
 0x11f   : > { %v1313_v42 = vsel %vm1156_vm3, %v1080_v40, 0 }
 0x120   : > { %1322 = vmatpush.bf16.xpose.msrb.mxu0 %v1313_v42 }
 0x122   : > { %v969_v45 = vpop.f32.mrf.mxu1 }
 0x123   : > { %v970_v30 = vadd.f32 %v4301_v35, %v969_v45 }
 0x125   : > { %v1081_v50 = vpack.c.bf16 %v970_v30, %v970_v30 }
 0x127   : > { %3672 = vmatmul.msk.bf16.vlgmr.msrb.gmra.mxu3 %vm1156_vm3, %v1060_v48  ;;  %v1332_v51 = vsel %vm1156_vm3, %v1081_v50, 0  ;;  %3676 = vmatmul.msk.bf16.vlgmr.msrb.gmra.mxu0 %vm1156_vm3, %v1064_v46  ;;  %v911_v46 = vadd.f32 %v4310_v38, %v910_v39  ;;  %v916_v39 = vadd.f32 %v4310_v38, %v915_v8 }
 0x128   : > { %1284 = vmatpush.bf16.xpose.msrb.mxu3 %v1275_v49  ;;  %1341 = vmatpush.bf16.xpose.msra.mxu1 %v1332_v51  ;;  %v1026_v51 = vpop.f32.mrf.mxu2 }
 0x129   : > { %v1069_v49 = vpack.c.bf16 %v911_v46, %v911_v46 }
 0x12a   : > { %v972_v31 = vpop.f32.mrf.mxu1 }
 0x12b   : > { %v973_v53 = vadd.f32 %v4301_v35, %v972_v31 }
 0x12d   : > { %v1082_v57 = vpack.c.bf16 %v973_v53, %v973_v53  ;;  %v914_v53 = vadd.f32 %v4310_v38, %v913_v52 }
 0x12f   : > { %v1351_v58 = vsel %vm1156_vm3, %v1082_v57, 0  ;;  %3677 = vmatmul.msk.bf16.vlgmr.msra.gmra.mxu1 %vm1156_vm3, %v1065_v54  ;;  %v1022_v57 = vadd.f32 %v4368_v5, %v1021_v16  ;;  %v3982_v16 = vmov 0.0  }
 0x130   : > { %1360 = vmatpush.bf16.xpose.msra.mxu2 %v1351_v58  ;;  %v1070_v58 = vpack.c.bf16 %v914_v53, %v914_v53  ;;  %v1028_v60 = vpop.f32.mrf.mxu2 }
 0x131   : > { %v1090_v61 = vpack.c.bf16 %v1022_v57, %v1022_v57 }
 0x132   : > { %v974_v62 = vpop.f32.mrf.mxu1 }
 0x133   : > { %v975_v19 = vadd.f32 %v4301_v35, %v974_v62  ;;  %v1063_v62 = vpack.c.bf16 %v896_v55, %v896_v55 }
 0x135   : > { %v1083_v37 = vpack.c.bf16 %v975_v19, %v975_v19  ;;  %v4410_v19 = vsel %vm1104_vm5, -1e+30, %v3982_v16 }
 0x136   : > { %v1124_v27 = vperm.slane %v4410_v19, 0  ;;  %v1111_v52 = vrot.slane %v4410_v19, 2 }
 0x137   : > { %3673 = vmatmul.msk.bf16.vlgmr.msra.gmra.mxu3 %vm1156_vm3, %v1061_v1  ;;  %3678 = vmatmul.msk.bf16.vlgmr.msra.gmra.mxu2 %vm1156_vm3, %v1066_v63  ;;  %v1370_v45 = vsel %vm1156_vm3, %v1083_v37, 0  ;;  %v1853_v1 = vsel %vm1813_vm4, %v1090_v61, 0 }
 0x138   : > { %1303 = vmatpush.bf16.xpose.msra.mxu3 %v1294_v2  ;;  %v1031_v34 = vpop.f32.mrf.mxu2 }
 0x13a   : > { %v977_v9 = vpop.f32.mrf.mxu1 }
 0x13b   : > { %v978_v10 = vadd.f32 %v4301_v35, %v977_v9  ;;  %v1027_v9 = vadd.f32 %v4368_v5, %v1026_v51 }
 0x13d   : > { %v1084_v22 = vpack.c.bf16 %v978_v10, %v978_v10 }
 0x13f   : > { %v1389_v25 = vsel %vm1156_vm3, %v1084_v22, 0  ;;  %v1092_v22 = vpack.c.bf16 %v1027_v9, %v1027_v9 }
 0x140   : > { %1398 = vmatpush.bf16.xpose.msra.mxu0 %v1389_v25  ;;  %v4407_v15 = vpop.f32.mrf.mxu2 }
 0x142   : > { %v979_v40 = vpop.f32.mrf.mxu1 }
 0x143   : > { %v980_v42 = vadd.f32 %v4301_v35, %v979_v40 }
 0x145   : > { %v1085_v30 = vpack.c.bf16 %v980_v42, %v980_v42  ;;  %v1110_v42 = vrot.slane %v4410_v19, 1 }
 0x147   : > { %3674 = vmatmul.msk.bf16.vlgmr.msrb.gmra.mxu3 %vm1156_vm3, %v1062_v44  ;;  %v1408_v48 = vsel %vm1156_vm3, %v1085_v30, 0  ;;  %3680 = vmatmul.msk.bf16.vlgmr.msra.gmra.mxu0 %vm1156_vm3, %v1068_v41  ;;  %v1032_v41 = vadd.f32 %v4368_v5, %v1031_v34  ;;  %v1071_v30 = vpack.c.bf16 %v916_v39, %v916_v39  ;;  %v1029_v34 = vadd.f32 %v4368_v5, %v1028_v60 }
 0x148   : > { %1824 = vmatpush.bf16.msrb.mxu0 %v1815_v26  ;;  %1379 = vmatpush.bf16.xpose.msrb.mxu3 %v1370_v45  ;;  %v1891_v26 = vsel %vm1813_vm4, %v1092_v22, 0  ;;  %v4417_v36 = vpop.f32.mrf.mxu2  ;;  %v1113_v22 = vrot.slane %v4410_v19, 4 }
 0x149   : > { %1417 = vmatpush.bf16.xpose.msrb.mxu1 %v1408_v48  ;;  %v1094_v44 = vpack.c.bf16 %v1032_v41, %v1032_v41  ;;  %v1125_v48 = vperm.slane %v1110_v42, 0  ;;  %v1093_v8 = vpack.c.bf16 %v1029_v34, %v1029_v34 }
 0x14a   : > { %v982_v33 = vpop.f32.mrf.mxu1 }
 0x14b   : > { %v983_v50 = vadd.f32 %v4301_v35, %v982_v33  ;;  %v1929_v46 = vsel %vm1813_vm4, %v1094_v44, 0  ;;  %v1034_v44 = vadd.f32 %v4368_v5, %v4407_v15 }
 0x14c   : > { %1900 = vmatpush.bf16.msra.mxu0 %v1891_v26 }
 0x14d   : > { %v1086_v31 = vpack.c.bf16 %v983_v50, %v983_v50 }
 0x14f   : > { %v1427_v54 = vsel %vm1156_vm3, %v1086_v31, 0  ;;  %v1126_v31 = vperm.slane %v1111_v52, 0 }
 0x150   : > { %3681 = vmatmul.msk.bf16.vlgmr.msrb.gmra.mxu1 %vm1156_vm3, %v1069_v49  ;;  %1436 = vmatpush.bf16.xpose.msrb.mxu2 %v1427_v54  ;;  %v4424_v45 = vpop.f32.mrf.mxu2 }
 0x152   : > { %v984_v56 = vpop.f32.mrf.mxu1 }
 0x153   : > { %v985_v59 = vadd.f32 %v4301_v35, %v984_v56  ;;  %v906_v35 = vadd.f32 %v4310_v38, %v4344_v47 }
 0x155   : > { %v1087_v63 = vpack.c.bf16 %v985_v59, %v985_v59  ;;  %v1067_v10 = vpack.c.bf16 %v906_v35, %v906_v35  ;;  %v1112_v59 = vrot.slane %v4410_v19, 3  ;;  %v1019_v35 = vadd.f32 %v4368_v5, %v4358_v0 }
 0x157   : > { %3675 = vmatmul.msk.bf16.vlgmr.msra.gmra.mxu3 %vm1156_vm3, %v1063_v62  ;;  %v1446_v2 = vsel %vm1156_vm3, %v1087_v63, 0  ;;  %3682 = vmatmul.msk.bf16.vlgmr.msrb.gmra.mxu2 %vm1156_vm3, %v1070_v58  ;;  %v1127_v61 = vperm.slane %v1112_v59, 0 }
 0x158   : > { %1455 = vmatpush.bf16.xpose.msra.mxu3 %v1446_v2  ;;  %1862 = vmatpush.bf16.msra.mxu2 %v1853_v1  ;;  %v4432_v50 = vpop.f32.mrf.mxu2 }
 0x15c   : > { %1938 = vmatpush.bf16.msrb.mxu2 %v1929_v46 }
 0x160   : > { %v4435_v53 = vpop.f32.mrf.mxu2 }
 0x167   : > { %3679 = vmatmul.msk.bf16.vlgmr.msrb.gmra.mxu3 %vm1156_vm3, %v1067_v10  ;;  %v1089_v10 = vpack.c.bf16 %v1019_v35, %v1019_v35  ;;  %v1115_v35 = vrot.slane %v4410_v19, 6 }
 0x168   : > { %v4441_v58 = vpop.f32.mrf.mxu2 }
 0x169   : > { %v1834_v39 = vsel %vm1813_vm4, %v1089_v10, 0  ;;  %v1130_v10 = vperm.slane %v1115_v35, 0 }
 0x16a   : > { %v1172_v47 = vpop.f32.mrf.mxu3  ;;  %1843 = vmatpush.bf16.msra.mxu1 %v1834_v39 }
 0x16b   : > { %v4415_v25 = vadd.f32 %v1172_v47, %v1124_v27  ;;  %v1910_v27 = vsel %vm1813_vm4, %v1093_v8, 0 }
 0x16d   : > { %v1461_v37 = vsel %vm1156_vm3, %v4415_v25, -inf }
 0x16e   : > { %1462 = vmax.xlane.f32.xlu0 %v1461_v37  ;;  %v1128_v37 = vperm.slane %v1113_v22, 0  ;;  %1919 = vmatpush.bf16.msrb.mxu1 %v1910_v27 }
 0x170   : > { %v4446_v1 = vpop.f32.mrf.mxu2 }
 0x172   : > { %v1174_v40 = vpop.f32.mrf.mxu3 }
 0x177   : > { %3683 = vmatmul.msk.bf16.vlgmr.msra.gmra.mxu3 %vm1156_vm3, %v1071_v30  ;;  %v1024_v30 = vadd.f32 %v4368_v5, %v4379_v43  ;;  %v4482_v43 = vld [vmem:[%s5715_s17 + $0x8] sm:$0xff] }
 0x178   : > { %v4457_v47 = vpop.f32.mrf.mxu2  ;;  %vm1105_vm6 = vcmp.ne.f32.partialorder %v4482_v43, 0.0 }
 0x17a   : > { %v1191_v33 = vpop.f32.mrf.mxu3 }
 0x17b   : > { %v4428_v49 = vadd.f32 %v1191_v33, %v1125_v48  ;;  %v1095_v48 = vpack.c.bf16 %v1034_v44, %v1034_v44  ;;  %v1116_v44 = vrot.slane %v4410_v19, 7 }
 0x17d   : > { %v1464_v38 = vsel %vm1156_vm3, %v4428_v49, -inf }
 0x17e   : > { %1465 = vmax.xlane.f32.xlu0 %v1464_v38  ;;  %v1091_v38 = vpack.c.bf16 %v1024_v30, %v1024_v30 }
 0x180   : > { %v4470_v46 = vpop.f32.mrf.mxu2 }
 0x182   : > { %v1193_v51 = vpop.f32.mrf.mxu3 }
 0x183   : > { %v1114_v51 = vrot.slane %v4410_v19, 5 }
 0x18a   : > { %v1210_v54 = vpop.f32.mrf.mxu3 }
 0x18b   : > { %v4437_v55 = vadd.f32 %v1210_v54, %v1126_v31  ;;  %v1948_v31 = vsel %vm1813_vm4, %v1095_v48, 0  ;;  %v1129_v54 = vperm.slane %v1114_v51, 0 }
 0x18d   : > { %v1467_v56 = vsel %vm1156_vm3, %v4437_v55, -inf }
 0x18e   : > { %1468 = vmax.xlane.f32.xlu1 %v1467_v56  ;;  %v1872_v56 = vsel %vm1813_vm4, %v1091_v38, 0 }
 0x18f   : > { %1881 = vmatpush.bf16.msrb.mxu3 %v1872_v56 }
 0x192   : > { %v1212_v57 = vpop.f32.mrf.mxu3 }
 0x193   : > { %1957 = vmatpush.bf16.msra.mxu3 %v1948_v31 }
 0x19a   : > { %v1229_v62 = vpop.f32.mrf.mxu3 }
 0x19b   : > { %v4444_v63 = vadd.f32 %v1229_v62, %v1127_v61 }
 0x19d   : > { %v1470_v2 = vsel %vm1156_vm3, %v4444_v63, -inf }
 0x19e   : > { %1471 = vmax.xlane.f32.xlu1 %v1470_v2  ;;  %v4488_v2 = vsel %vm1105_vm6, -1e+30, %v3982_v16 }
 0x19f   : > { %v1122_v30 = vrot.slane %v4488_v2, 6 }
 0x1a1   : > { %v1138_v38 = vperm.slane %v1122_v30, 0 }
 0x1a2   : > { %v1231_v9 = vpop.f32.mrf.mxu3 }
 0x1a3   : > { %v1121_v9 = vrot.slane %v4488_v2, 5 }
 0x1a4   : > { %v4454_v26 = vpop.f32.mrf.mxu0 }
 0x1a5   : > { %v1137_v22 = vperm.slane %v1121_v9, 0 }
 0x1aa   : > { %v1248_v60 = vpop.f32.mrf.mxu3 }
 0x1ab   : > { %v4460_v40 = vadd.f32 %v1248_v60, %v1128_v37 }
 0x1ac   : > { %v4462_v0 = vpop.f32.mrf.mxu1  ;;  %v1326_v41 = vpop.f32.mrf.mxu0 }
 0x1ad   : > { %v1473_v42 = vsel %vm1156_vm3, %v4460_v40, -inf }
 0x1ae   : > { %1474 = vmax.xlane.f32.xlu2 %v1473_v42 }
 0x1b2   : > { %v1250_v33 = vpop.f32.mrf.mxu3 }
 0x1b3   : > { %v1131_v33 = vperm.slane %v1116_v44, 0  ;;  %v1132_v44 = vperm.slane %v4488_v2, 0 }
 0x1b4   : > { %v1345_v52 = vpop.f32.mrf.mxu1 }
 0x1ba   : > { %v1267_v15 = vpop.f32.mrf.mxu3  ;;  %v4475_v57 = vpop.f32.mrf.mxu2 }
 0x1bb   : > { %v4477_v59 = vadd.f32 %v1267_v15, %v1129_v54 }
 0x1bd   : > { %v1476_v61 = vsel %vm1156_vm3, %v4477_v59, -inf }
 0x1be   : > { %1477 = vmax.xlane.f32.xlu2 %v1476_v61 }
 0x1c2   : > { %v1269_v62 = vpop.f32.mrf.mxu3  ;;  %v1364_v34 = vpop.f32.mrf.mxu2 }
 0x1c4   : > { %v4491_v8 = vpop.f32.mrf.mxu0 }
 0x1ca   : > { %v1286_v27 = vpop.f32.mrf.mxu3 }
 0x1cb   : > { %v4494_v37 = vadd.f32 %v1286_v27, %v1130_v10 }
 0x1cc   : > { %v1402_v60 = vpop.f32.mrf.mxu0 }
 0x1cd   : > { %v1419_v39 = vpop.f32.mrf.mxu1  ;;  %v1479_v41 = vsel %vm1156_vm3, %v4494_v37, -inf  ;;  %v1123_v60 = vrot.slane %v4488_v2, 7 }
 0x1ce   : > { %v4498_v42 = vadd.f32 %v1419_v39, %v1137_v22  ;;  %1480 = vmax.xlane.f32.xlu0 %v1479_v41 }
 0x1d2   : > { %v1288_v16 = vpop.f32.mrf.mxu3 }
 0x1d5   : > { %v1421_v48 = vpop.f32.mrf.mxu1 }
 0x1da   : > { %v1305_v51 = vpop.f32.mrf.mxu3  ;;  %v1438_v52 = vpop.f32.mrf.mxu2 }
 0x1db   : > { %v4502_v31 = vadd.f32 %v1305_v51, %v1131_v33  ;;  %v4504_v54 = vadd.f32 %v1438_v52, %v1138_v38  ;;  %v4523_v38 = vadd.f32 %v4454_v26, %v1132_v44 }
 0x1dd   : > { %v1482_v56 = vsel %vm1156_vm3, %v4502_v31, -inf }
 0x1de   : > { %1483 = vmax.xlane.f32.xlu1 %v1482_v56 }
 0x1e1   : > { %v1463_v15 = vpop.xlane.xlu0 %1462 }
 0x1e2   : > { %v1509_v61 = vsub.f32 %v4415_v25, %v1463_v15  ;;  %v1307_v62 = vpop.f32.mrf.mxu3  ;;  %v1440_v19 = vpop.f32.mrf.mxu2  ;;  %v1139_v25 = vperm.slane %v1123_v60, 0 }
 0x1e3   : > { %v1117_v19 = vrot.slane %v4488_v2, 1 }
 0x1e4   : > { %v1525_v34 = vmul.f32 1.442695, %v1509_v61  ;;  %v1485_v61 = vsel %vm1156_vm3, %v4523_v38, -inf }
 0x1e6   : > { %3812 = vpow2.f32 %v1525_v34 }
 0x1ea   : > { %v1381_v35 = vpop.f32.mrf.mxu3 }
 0x1ec   : > { %v4509_v9 = vpop.eup %3812 }
 0x1ed   : > { %v1557_v10 = vsel %vm1156_vm3, %v4509_v9, 0.0 }
 0x1ee   : > { %1558 = vadd.xlane.f32.xlu2 %v1557_v10  ;;  %v1133_v10 = vperm.slane %v1117_v19, 0  ;;  %v1120_v19 = vrot.slane %v4488_v2, 4 }
 0x1f1   : > { %v1466_v22 = vpop.xlane.xlu0 %1465 }
 0x1f2   : > { %v1510_v27 = vsub.f32 %v4428_v49, %v1466_v22  ;;  %v1383_v39 = vpop.f32.mrf.mxu3  ;;  %v1119_v49 = vrot.slane %v4488_v2, 3 }
 0x1f4   : > { %v1527_v41 = vmul.f32 1.442695, %v1510_v27  ;;  %v1135_v15 = vperm.slane %v1119_v49, 0  ;;  %v4539_v27 = vadd.f32 %v4462_v0, %v1133_v10  ;;  %v1136_v10 = vperm.slane %v1120_v19, 0 }
 0x1f6   : > { %3814 = vpow2.f32 %v1527_v41  ;;  %v4530_v34 = vadd.f32 %v1381_v35, %v1135_v15  ;;  %v1488_v35 = vsel %vm1156_vm3, %v4539_v27, -inf }
 0x1f8   : > { %v1494_v26 = vsel %vm1156_vm3, %v4530_v34, -inf }
 0x1fa   : > { %v1457_v16 = vpop.f32.mrf.mxu3 }
 0x1fb   : > { %v4516_v30 = vadd.f32 %v1457_v16, %v1139_v25  ;;  %v1118_v25 = vrot.slane %v4488_v2, 2 }
 0x1fc   : > { %v4518_v48 = vpop.eup %3814 }
 0x1fd   : > { %v1560_v33 = vsel %vm1156_vm3, %v4518_v48, 0.0  ;;  %v1134_v16 = vperm.slane %v1118_v25, 0 }
 0x1fe   : > { %1561 = vadd.xlane.f32.xlu0 %v1560_v33 }
 0x1ff   : > { %v4550_v0 = vadd.f32 %v4475_v57, %v1134_v16 }
 0x201   : > { %v1469_v51 = vpop.xlane.xlu1 %1468 }
 0x202   : > { %v1511_v52 = vsub.f32 %v4437_v55, %v1469_v51  ;;  %v1459_v56 = vpop.f32.mrf.mxu3  ;;  %v1491_v51 = vsel %vm1156_vm3, %v4550_v0, -inf }
 0x204   : > { %v1529_v62 = vmul.f32 1.442695, %v1511_v52 }
 0x206   : > { %3816 = vpow2.f32 %v1529_v62  ;;  %1486 = vmax.xlane.f32.xlu0 %v1485_v61 }
 0x20c   : > { %v4534_v22 = vpop.eup %3816 }
 0x20d   : > { %v1563_v55 = vsel %vm1156_vm3, %v4534_v22, 0.0 }
 0x20e   : > { %1564 = vadd.xlane.f32.xlu1 %v1563_v55  ;;  %1495 = vmax.xlane.f32.xlu0 %v1494_v26  ;;  %v4566_v55 = vadd.f32 %v4491_v8, %v1136_v10 }
 0x211   : > { %v1472_v39 = vpop.xlane.xlu1 %1471 }
 0x212   : > { %v1512_v60 = vsub.f32 %v4444_v63, %v1472_v39 }
 0x214   : > { %v1531_v41 = vmul.f32 1.442695, %v1512_v60 }
 0x216   : > { %3818 = vpow2.f32 %v1531_v41  ;;  %1489 = vmax.xlane.f32.xlu1 %v1488_v35  ;;  %v1506_v41 = vsel %vm1156_vm3, %v4516_v30, -inf }
 0x21c   : > { %v4545_v44 = vpop.eup %3818 }
 0x21d   : > { %v1566_v33 = vsel %vm1156_vm3, %v4545_v44, 0.0 }
 0x21e   : > { %1567 = vadd.xlane.f32.xlu2 %v1566_v33  ;;  %v1500_v33 = vsel %vm1156_vm3, %v4498_v42, -inf }
 0x221   : > { %v1475_v49 = vpop.xlane.xlu2 %1474 }
 0x222   : > { %v1513_v63 = vsub.f32 %v4460_v40, %v1475_v49 }
 0x224   : > { %v1533_v52 = vmul.f32 1.442695, %v1513_v63 }
 0x226   : > { %3820 = vpow2.f32 %v1533_v52  ;;  %1492 = vmax.xlane.f32.xlu2 %v1491_v51  ;;  %v1037_v52 = vadd.f32 %v4368_v5, %v4417_v36  ;;  %v1039_v36 = vadd.f32 %v4368_v5, %v4424_v45 }
 0x22c   : > { %v4555_v56 = vpop.eup %3820 }
 0x22d   : > { %v1569_v15 = vsel %vm1156_vm3, %v4555_v56, 0.0 }
 0x22e   : > { %1570 = vadd.xlane.f32.xlu1 %v1569_v15 }
 0x231   : > { %v1478_v61 = vpop.xlane.xlu2 %1477 }
 0x232   : > { %v1514_v62 = vsub.f32 %v4477_v59, %v1478_v61  ;;  %v1497_v59 = vsel %vm1156_vm3, %v4566_v55, -inf  ;;  %v1096_v61 = vpack.c.bf16 %v1037_v52, %v1037_v52 }
 0x234   : > { %v1535_v57 = vmul.f32 1.442695, %v1514_v62  ;;  %v1967_v19 = vsel %vm1813_vm4, %v1096_v61, 0 }
 0x236   : > { %3822 = vpow2.f32 %v1535_v57 }
 0x23c   : > { %v4561_v40 = vpop.eup %3822 }
 0x23d   : > { %v1572_v26 = vsel %vm1156_vm3, %v4561_v40, 0.0 }
 0x23e   : > { %1573 = vadd.xlane.f32.xlu2 %v1572_v26 }
 0x241   : > { %v1481_v39 = vpop.xlane.xlu0 %1480 }
 0x242   : > { %v1515_v60 = vsub.f32 %v4494_v37, %v1481_v39 }
 0x244   : > { %v1537_v35 = vmul.f32 1.442695, %v1515_v60 }
 0x246   : > { %3824 = vpow2.f32 %v1537_v35  ;;  %1498 = vmax.xlane.f32.xlu2 %v1497_v59  ;;  %v1097_v59 = vpack.c.bf16 %v1039_v36, %v1039_v36 }
 0x24c   : > { %v4571_v2 = vpop.eup %3824 }
 0x24d   : > { %v1575_v25 = vsel %vm1156_vm3, %v4571_v2, 0.0 }
 0x24e   : > { %1507 = vmax.xlane.f32.xlu2 %v1506_v41  ;;  %1576 = vadd.xlane.f32.xlu0 %v1575_v25 }
 0x251   : > { %v1484_v8 = vpop.xlane.xlu1 %1483 }
 0x252   : > { %v1516_v16 = vsub.f32 %v4502_v31, %v1484_v8  ;;  %v1503_v31 = vsel %vm1156_vm3, %v4504_v54, -inf }
 0x254   : > { %v1539_v37 = vmul.f32 1.442695, %v1516_v16 }
 0x256   : > { %3826 = vpow2.f32 %v1539_v37  ;;  %1501 = vmax.xlane.f32.xlu0 %v1500_v33 }
 0x25c   : > { %v4580_v49 = vpop.eup %3826 }
 0x25d   : > { %v1578_v63 = vsel %vm1156_vm3, %v4580_v49, 0.0 }
 0x25e   : > { %1579 = vadd.xlane.f32.xlu1 %v1578_v63 }
 0x261   : > { %v1559_v51 = vpop.xlane.xlu2 %1558 }
 0x262   : > { %3828 = vrcp.f32 %v1559_v51  ;;  %v1986_v51 = vsel %vm1813_vm4, %v1097_v59, 0 }
 0x266   : > { %1504 = vmax.xlane.f32.xlu1 %v1503_v31 }
 0x268   : > { %v3829_v15 = vpop.eup %3828 }
 0x269   : > { %v1621_v62 = vmul.f32 %v3829_v15, %v4509_v9 }
 0x26b   : > { %v1794_v57 = vpack.c.bf16 %v1621_v62, %v1621_v62  ;;  %v1639_v10 = vsel %vm1156_vm3, %v1621_v62, 0.0 }
 0x26c   : > { %v1640_v39 = vrot.slane %v1639_v10, 4 }
 0x26d   : > { %3684 = vmatmul.msk.bf16.vlgmr.msrb.gmra.mxu0 %vm1156_vm3, %v1794_v57 }
 0x26e   : > { %1976 = vmatpush.bf16.msrb.mxu0 %v1967_v19  ;;  %v1641_v60 = vadd.f32 %v1640_v39, %v1639_v10 }
 0x270   : > { %v1642_v25 = vrot.slane %v1641_v60, 2 }
 0x271   : > { %v1562_v26 = vpop.xlane.xlu0 %1561 }
 0x272   : > { %3830 = vrcp.f32 %v1562_v26  ;;  %v1643_v52 = vadd.f32 %v1642_v25, %v1641_v60  ;;  %v1042_v26 = vadd.f32 %v4368_v5, %v4432_v50 }
 0x274   : > { %v1644_v61 = vrot.slane %v1643_v52, 1 }
 0x276   : > { %v1645_v36 = vadd.f32 %v1644_v61, %v1643_v52 }
 0x278   : > { %v3831_v35 = vpop.eup %3830 }
 0x279   : > { %v1622_v41 = vmul.f32 %v3831_v35, %v4518_v48  ;;  %v1487_v9 = vpop.xlane.xlu0 %1486 }
 0x27a   : > { %v1517_v8 = vsub.f32 %v4523_v38, %v1487_v9 }
 0x27b   : > { %v1646_v16 = vsel %vm1156_vm3, %v1622_v41, 0.0  ;;  %v1795_v37 = vpack.c.bf16 %v1622_v41, %v1622_v41  ;;  %v1098_v41 = vpack.c.bf16 %v1042_v26, %v1042_v26 }
 0x27c   : > { %v1647_v33 = vrot.slane %v1646_v16, 4  ;;  %v1541_v63 = vmul.f32 1.442695, %v1517_v8 }
 0x27d   : > { %3685 = vmatmul.msk.bf16.vlgmr.msra.gmra.mxu1 %vm1156_vm3, %v1795_v37 }
 0x27e   : > { %v1648_v45 = vadd.f32 %v1647_v33, %v1646_v16  ;;  %3832 = vpow2.f32 %v1541_v63  ;;  %1995 = vmatpush.bf16.msra.mxu1 %v1986_v51  ;;  %v2005_v63 = vsel %vm1813_vm4, %v1098_v41, 0 }
 0x280   : > { %v1649_v31 = vrot.slane %v1648_v45, 2 }
 0x281   : > { %v1565_v15 = vpop.xlane.xlu1 %1564  ;;  %v1496_v48 = vpop.xlane.xlu0 %1495 }
 0x282   : > { %v1650_v62 = vadd.f32 %v1649_v31, %v1648_v45  ;;  %3834 = vrcp.f32 %v1565_v15  ;;  %v1520_v38 = vsub.f32 %v4530_v34, %v1496_v48  ;;  %v1044_v48 = vadd.f32 %v4368_v5, %v4435_v53 }
 0x284   : > { %v4600_v57 = vpop.eup %3832  ;;  %v1651_v19 = vrot.slane %v1650_v62, 1  ;;  %v1547_v10 = vmul.f32 1.442695, %v1520_v38 }
 0x285   : > { %v1581_v39 = vsel %vm1156_vm3, %v4600_v57, 0.0 }
 0x286   : > { %v1652_v60 = vadd.f32 %v1651_v19, %v1650_v62  ;;  %3836 = vpow2.f32 %v1547_v10  ;;  %1582 = vadd.xlane.f32.xlu0 %v1581_v39  ;;  %v1099_v10 = vpack.c.bf16 %v1044_v48, %v1044_v48 }
 0x288   : > { %v3835_v35 = vpop.eup %3834  ;;  %v1768_v59 = vsel %vm1767_vm7, %v1652_v60, %v1645_v36  ;;  %v2024_v53 = vsel %vm1813_vm4, %v1099_v10, 0 }
 0x289   : > { %v1623_v34 = vmul.f32 %v3835_v35, %v4534_v22  ;;  %v1490_v9 = vpop.xlane.xlu1 %1489 }
 0x28a   : > { %v1518_v25 = vsub.f32 %v4539_v27, %v1490_v9 }
 0x28b   : > { %v1653_v8 = vsel %vm1156_vm3, %v1623_v34, 0.0  ;;  %v1796_v50 = vpack.c.bf16 %v1623_v34, %v1623_v34 }
 0x28c   : > { %v4610_v16 = vpop.eup %3836  ;;  %v1654_v37 = vrot.slane %v1653_v8, 4  ;;  %v1543_v33 = vmul.f32 1.442695, %v1518_v25 }
 0x28d   : > { %3686 = vmatmul.msk.bf16.vlgmr.msra.gmra.mxu2 %vm1156_vm3, %v1796_v50  ;;  %v1590_v51 = vsel %vm1156_vm3, %v4610_v16, 0.0 }
 0x28e   : > { %v1655_v52 = vadd.f32 %v1654_v37, %v1653_v8  ;;  %3838 = vpow2.f32 %v1543_v33  ;;  %2014 = vmatpush.bf16.msra.mxu2 %v2005_v63  ;;  %1591 = vadd.xlane.f32.xlu0 %v1590_v51  ;;  %v1049_v33 = vadd.f32 %v4368_v5, %v4446_v1 }
 0x290   : > { %v1656_v22 = vrot.slane %v1655_v52, 2  ;;  %v1101_v63 = vpack.c.bf16 %v1049_v33, %v1049_v33 }
 0x291   : > { %v1568_v27 = vpop.xlane.xlu2 %1567 }
 0x292   : > { %v1657_v45 = vadd.f32 %v1656_v22, %v1655_v52  ;;  %3840 = vrcp.f32 %v1568_v27 }
 0x294   : > { %v4616_v31 = vpop.eup %3838  ;;  %v1658_v15 = vrot.slane %v1657_v45, 1 }
 0x295   : > { %v1584_v61 = vsel %vm1156_vm3, %v4616_v31, 0.0 }
 0x296   : > { %v1659_v62 = vadd.f32 %v1658_v15, %v1657_v45  ;;  %1585 = vadd.xlane.f32.xlu1 %v1584_v61  ;;  %v2062_v45 = vsel %vm1813_vm4, %v1101_v63, 0 }
 0x298   : > { %v3841_v38 = vpop.eup %3840  ;;  %v4623_v19 = vsel %vm1769_vm8, %v1659_v62, %v1768_v59  ;;  %v1047_v59 = vadd.f32 %v4368_v5, %v4441_v58 }
 0x299   : > { %v1624_v26 = vmul.f32 %v3841_v38, %v4545_v44  ;;  %v1493_v39 = vpop.xlane.xlu2 %1492 }
 0x29a   : > { %v1519_v36 = vsub.f32 %v4550_v0, %v1493_v39  ;;  %v1100_v9 = vpack.c.bf16 %v1047_v59, %v1047_v59 }
 0x29b   : > { %v1797_v60 = vpack.c.bf16 %v1624_v26, %v1624_v26  ;;  %v1660_v39 = vsel %vm1156_vm3, %v1624_v26, 0.0 }
 0x29c   : > { %v1545_v35 = vmul.f32 1.442695, %v1519_v36  ;;  %v2043_v50 = vsel %vm1813_vm4, %v1100_v9, 0  ;;  %v1661_v59 = vrot.slane %v1660_v39, 4 }
 0x29d   : > { %3687 = vmatmul.msk.bf16.vlgmr.msrb.gmra.mxu3 %vm1156_vm3, %v1797_v60 }
 0x29e   : > { %3842 = vpow2.f32 %v1545_v35  ;;  %2033 = vmatpush.bf16.msrb.mxu3 %v2024_v53 }
 0x2a1   : > { %v1571_v41 = vpop.xlane.xlu1 %1570 }
 0x2a2   : > { %3844 = vrcp.f32 %v1571_v41 }
 0x2a4   : > { %v4629_v34 = vpop.eup %3842 }
 0x2a5   : > { %v1587_v44 = vsel %vm1156_vm3, %v4629_v34, 0.0 }
 0x2a6   : > { %1588 = vadd.xlane.f32.xlu2 %v1587_v44 }
 0x2a8   : > { %v3845_v0 = vpop.eup %3844 }
 0x2a9   : > { %v1625_v25 = vmul.f32 %v3845_v0, %v4555_v56 }
 0x2ab   : > { %v1798_v8 = vpack.c.bf16 %v1625_v25, %v1625_v25 }
 0x2ad   : > { %3688 = vmatmul.msk.bf16.vlgmr.msra.gmra.mxu0 %vm1156_vm3, %v1798_v8 }
 0x2ae   : > { %2052 = vmatpush.bf16.msra.mxu0 %v2043_v50 }
 0x2b1   : > { %v1574_v37 = vpop.xlane.xlu2 %1573 }
 0x2b2   : > { %3846 = vrcp.f32 %v1574_v37 }
 0x2b8   : > { %v3847_v58 = vpop.eup %3846 }
 0x2b9   : > { %v1626_v51 = vmul.f32 %v3847_v58, %v4561_v40  ;;  %v1499_v52 = vpop.xlane.xlu2 %1498  ;;  %v1052_v40 = vadd.f32 %v4368_v5, %v4457_v47 }
 0x2ba   : > { %v1521_v22 = vsub.f32 %v4566_v55, %v1499_v52  ;;  %v1054_v52 = vadd.f32 %v4368_v5, %v4470_v46 }
 0x2bb   : > { %v1799_v27 = vpack.c.bf16 %v1626_v51, %v1626_v51  ;;  %v1102_v10 = vpack.c.bf16 %v1052_v40, %v1052_v40  ;;  %v1674_v53 = vsel %vm1156_vm3, %v1626_v51, 0.0 }
 0x2bc   : > { %v1549_v56 = vmul.f32 1.442695, %v1521_v22  ;;  %v1675_v26 = vrot.slane %v1674_v53, 4 }
 0x2bd   : > { %3689 = vmatmul.msk.bf16.vlgmr.msrb.gmra.mxu1 %vm1156_vm3, %v1799_v27  ;;  %v2081_v9 = vsel %vm1813_vm4, %v1102_v10, 0 }
 0x2be   : > { %3848 = vpow2.f32 %v1549_v56  ;;  %2071 = vmatpush.bf16.msrb.mxu1 %v2062_v45  ;;  %v1676_v33 = vadd.f32 %v1675_v26, %v1674_v53 }
 0x2c0   : > { %v1677_v56 = vrot.slane %v1676_v33, 2 }
 0x2c1   : > { %v1508_v15 = vpop.xlane.xlu2 %1507  ;;  %v1577_v48 = vpop.xlane.xlu0 %1576 }
 0x2c2   : > { %v1524_v61 = vsub.f32 %v4516_v30, %v1508_v15  ;;  %3850 = vrcp.f32 %v1577_v48  ;;  %v1667_v30 = vsel %vm1156_vm3, %v1625_v25, 0.0  ;;  %v1662_v25 = vadd.f32 %v1661_v59, %v1660_v39 }
 0x2c3   : > { %v1668_v8 = vrot.slane %v1667_v30, 4 }
 0x2c4   : > { %v4645_v1 = vpop.eup %3848  ;;  %v1555_v62 = vmul.f32 1.442695, %v1524_v61  ;;  %v1663_v51 = vrot.slane %v1662_v25, 2  ;;  %v1103_v61 = vpack.c.bf16 %v1054_v52, %v1054_v52 }
 0x2c5   : > { %v1593_v55 = vsel %vm1156_vm3, %v4645_v1, 0.0  ;;  %v1669_v50 = vadd.f32 %v1668_v8, %v1667_v30 }
 0x2c6   : > { %3852 = vpow2.f32 %v1555_v62  ;;  %1594 = vadd.xlane.f32.xlu1 %v1593_v55  ;;  %v1664_v48 = vadd.f32 %v1663_v51, %v1662_v25 }
 0x2c7   : > { %v1670_v22 = vrot.slane %v1669_v50, 2 }
 0x2c8   : > { %v3851_v38 = vpop.eup %3850 }
 0x2c9   : > { %v1627_v36 = vmul.f32 %v3851_v38, %v4571_v2  ;;  %v1502_v60 = vpop.xlane.xlu0 %1501  ;;  %v1671_v62 = vadd.f32 %v1670_v22, %v1669_v50  ;;  %v1678_v38 = vadd.f32 %v1677_v56, %v1676_v33 }
 0x2ca   : > { %v1522_v35 = vsub.f32 %v4498_v42, %v1502_v60 }
 0x2cb   : > { %v1800_v41 = vpack.c.bf16 %v1627_v36, %v1627_v36  ;;  %v1681_v44 = vsel %vm1156_vm3, %v1627_v36, 0.0  ;;  %v1665_v36 = vrot.slane %v1664_v48, 1  ;;  %v1672_v53 = vrot.slane %v1671_v62, 1 }
 0x2cc   : > { %v4656_v47 = vpop.eup %3852  ;;  %v1551_v0 = vmul.f32 1.442695, %v1522_v35  ;;  %v1682_v42 = vrot.slane %v1681_v44, 4  ;;  %v2100_v35 = vsel %vm1813_vm4, %v1103_v61, 0 }
 0x2cd   : > { %3690 = vmatmul.msk.bf16.vlgmr.msrb.gmra.mxu2 %vm1156_vm3, %v1800_v41  ;;  %v1602_v2 = vsel %vm1156_vm3, %v4656_v47, 0.0  ;;  %v1679_v41 = vrot.slane %v1678_v38, 1 }
 0x2ce   : > { %3854 = vpow2.f32 %v1551_v0  ;;  %2090 = vmatpush.bf16.msrb.mxu2 %v2081_v9  ;;  %1603 = vadd.xlane.f32.xlu1 %v1602_v2  ;;  %v1683_v58 = vadd.f32 %v1682_v42, %v1681_v44  ;;  %v1666_v44 = vadd.f32 %v1665_v36, %v1664_v48 }
 0x2cf   : > { %v1680_v9 = vadd.f32 %v1679_v41, %v1678_v38 }
 0x2d0   : > { %v1684_v45 = vrot.slane %v1683_v58, 2  ;;  %v1772_v42 = vsel %vm1771_vm9, %v1666_v44, %v4623_v19 }
 0x2d1   : > { %v1580_v37 = vpop.xlane.xlu1 %1579 }
 0x2d2   : > { %3856 = vrcp.f32 %v1580_v37  ;;  %v1685_v39 = vadd.f32 %v1684_v45, %v1683_v58  ;;  %v1637_v58 = vld [vmem:[#allocation3] sm:$0xff] }
 0x2d4   : > { %v4663_v63 = vpop.eup %3854 }
 0x2d5   : > { %v1596_v27 = vsel %vm1156_vm3, %v4663_v63, 0.0 }
 0x2d6   : > { %1597 = vadd.xlane.f32.xlu2 %v1596_v27 }
 0x2d8   : > { %v3857_v15 = vpop.eup %3856 }
 0x2d9   : > { %v1628_v40 = vmul.f32 %v3857_v15, %v4580_v49  ;;  %v1505_v55 = vpop.xlane.xlu1 %1504  ;;  %v1686_v49 = vrot.slane %v1685_v39, 1 }
 0x2da   : > { %v1523_v10 = vsub.f32 %v4504_v54, %v1505_v55  ;;  %v1673_v54 = vadd.f32 %v1672_v53, %v1671_v62 }
 0x2db   : > { %v1688_v5 = vsel %vm1156_vm3, %v1628_v40, 0.0  ;;  %v1801_v46 = vpack.c.bf16 %v1628_v40, %v1628_v40  ;;  %v1687_v2 = vadd.f32 %v1686_v49, %v1685_v39 }
 0x2dc   : > { %v1689_v60 = vrot.slane %v1688_v5, 4  ;;  %v1553_v30 = vmul.f32 1.442695, %v1523_v10  ;;  %v1774_v50 = vsel %vm1773_vm10, %v1673_v54, %v1772_v42 }
 0x2dd   : > { %3691 = vmatmul.msk.bf16.vlgmr.msra.gmra.mxu3 %vm1156_vm3, %v1801_v46  ;;  %v1776_v33 = vsel %vm1775_vm11, %v1680_v9, %v1774_v50 }
 0x2de   : > { %v1690_v59 = vadd.f32 %v1689_v60, %v1688_v5  ;;  %3858 = vpow2.f32 %v1553_v30  ;;  %2109 = vmatpush.bf16.msra.mxu3 %v2100_v35  ;;  %v1778_v52 = vsel %vm1777_vm12, %v1687_v2, %v1776_v33 }
 0x2e0   : > { %v1691_v0 = vrot.slane %v1690_v59, 2 }
 0x2e2   : > { %v1692_v8 = vadd.f32 %v1691_v0, %v1690_v59 }
 0x2e4   : > { %v4674_v26 = vpop.eup %3858  ;;  %v1693_v25 = vrot.slane %v1692_v8, 1 }
 0x2e5   : > { %v1599_v37 = vsel %vm1156_vm3, %v4674_v26, 0.0 }
 0x2e6   : > { %v1694_v51 = vadd.f32 %v1693_v25, %v1692_v8  ;;  %1600 = vadd.xlane.f32.xlu0 %v1599_v37 }
 0x2e8   : > { %v1780_v22 = vsel %vm1779_vm13, %v1694_v51, %v1778_v52 }
 0x2e9   : > { %v1790_v27 = vadd.f32 %v1780_v22, %v1637_v58 }
 0x2ea   : > { %v4684_v56 = vpop.f32.mrf.mxu0 }
 0x2eb   : > { %1792 = vst.msk [vmem:[#allocation3] sm:$0xff] %vm1156_vm3, %v1790_v27 }
 0x2f2   : > { %v1828_v19 = vpop.f32.mrf.mxu0 }
 0x2f9   : > { %v1583_v45 = vpop.xlane.xlu0 %1582 }
 0x2fa   : > { %3860 = vrcp.f32 %v1583_v45  ;;  %v4687_v15 = vpop.f32.mrf.mxu1 }
 0x2fb   : > { %v2115_v48 = vpack.c.bf16 %v4687_v15, %v4684_v56 }
 0x300   : > { %v3861_v61 = vpop.eup %3860 }
 0x301   : > { %v1629_v62 = vmul.f32 %v3861_v61, %v4600_v57  ;;  %v1592_v40 = vpop.xlane.xlu0 %1591 }
 0x302   : > { %3862 = vrcp.f32 %v1592_v40  ;;  %v1847_v55 = vpop.f32.mrf.mxu1 }
 0x303   : > { %v1802_v38 = vpack.c.bf16 %v1629_v62, %v1629_v62  ;;  %v1695_v10 = vsel %vm1156_vm3, %v1629_v62, 0.0 }
 0x304   : > { %v1696_v36 = vrot.slane %v1695_v10, 4 }
 0x305   : > { %3692 = vmatmul.msk.bf16.vlgmr.msrb.gmra.mxu0 %vm1156_vm3, %v1802_v38 }
 0x306   : > { %v1697_v30 = vadd.f32 %v1696_v36, %v1695_v10 }
 0x308   : > { %v3863_v39 = vpop.eup %3862  ;;  %v1698_v41 = vrot.slane %v1697_v30, 2 }
 0x309   : > { %v1632_v5 = vmul.f32 %v3863_v39, %v4610_v16  ;;  %v1586_v46 = vpop.xlane.xlu1 %1585 }
 0x30a   : > { %3864 = vrcp.f32 %v1586_v46  ;;  %v1699_v16 = vadd.f32 %v1698_v41, %v1697_v30  ;;  %v2139_v41 = vld [vmem:[%s4140_s21] sm:$0xf] }
 0x30b   : > { %v1805_v60 = vpack.c.bf16 %v1632_v5, %v1632_v5  ;;  %v1716_v54 = vsel %vm1156_vm3, %v1632_v5, 0.0 }
 0x30c   : > { %v1700_v42 = vrot.slane %v1699_v16, 1  ;;  %v1717_v50 = vrot.slane %v1716_v54, 4 }
 0x30d   : > { %3695 = vmatmul.msk.bf16.vlgmr.msrb.gmra.mxu3 %vm1156_vm3, %v1805_v60 }
 0x30e   : > { %v1718_v58 = vadd.f32 %v1717_v50, %v1716_v54 }
 0x310   : > { %v3865_v35 = vpop.eup %3864  ;;  %v4696_v57 = vpop.f32.mrf.mxu2  ;;  %v1719_v45 = vrot.slane %v1718_v58, 2 }
 0x311   : > { %v1630_v53 = vmul.f32 %v3865_v35, %v4616_v31  ;;  %v1701_v31 = vadd.f32 %v1700_v42, %v1699_v16 }
 0x312   : > { %v1720_v38 = vadd.f32 %v1719_v45, %v1718_v58 }
 0x313   : > { %v1702_v59 = vsel %vm1156_vm3, %v1630_v53, 0.0  ;;  %v1803_v49 = vpack.c.bf16 %v1630_v53, %v1630_v53 }
 0x314   : > { %v1703_v44 = vrot.slane %v1702_v59, 4  ;;  %v1721_v36 = vrot.slane %v1720_v38, 1 }
 0x315   : > { %3693 = vmatmul.msk.bf16.vlgmr.msra.gmra.mxu1 %vm1156_vm3, %v1803_v49  ;;  %v2165_v49 = vsel %vm1813_vm4, %v2139_v41, 0 }
 0x316   : > { %v1704_v0 = vadd.f32 %v1703_v44, %v1702_v59  ;;  %v1722_v30 = vadd.f32 %v1721_v36, %v1720_v38  ;;  %2174 = vmatpush.bf16.msrb.mxu0 %v2165_v49 }
 0x318   : > { %v1705_v9 = vrot.slane %v1704_v0, 2  ;;  %v1866_v8 = vpop.f32.mrf.mxu2 }
 0x319   : > { %v1589_v2 = vpop.xlane.xlu2 %1588 }
 0x31a   : > { %v1706_v25 = vadd.f32 %v1705_v9, %v1704_v0  ;;  %3866 = vrcp.f32 %v1589_v2 }
 0x31c   : > { %v1707_v37 = vrot.slane %v1706_v25, 1 }
 0x31e   : > { %v1708_v33 = vadd.f32 %v1707_v37, %v1706_v25 }
 0x320   : > { %v3867_v51 = vpop.eup %3866  ;;  %v1781_v52 = vsel %vm1767_vm7, %v1708_v33, %v1701_v31  ;;  %v4703_v22 = vpop.f32.mrf.mxu3 }
 0x321   : > { %v1631_v27 = vmul.f32 %v3867_v51, %v4629_v34  ;;  %v2116_v19 = vpack.c.bf16 %v4703_v22, %v4696_v57  ;;  %v1638_v22 = vld [vmem:[#allocation3 + $0x8] sm:$0xff] }
 0x323   : > { %v1709_v61 = vsel %vm1156_vm3, %v1631_v27, 0.0  ;;  %v1804_v62 = vpack.c.bf16 %v1631_v27, %v1631_v27 }
 0x324   : > { %v1710_v40 = vrot.slane %v1709_v61, 4 }
 0x325   : > { %3694 = vmatmul.msk.bf16.vlgmr.msra.gmra.mxu2 %vm1156_vm3, %v1804_v62 }
 0x326   : > { %v1711_v55 = vadd.f32 %v1710_v40, %v1709_v61 }
 0x328   : > { %v1712_v10 = vrot.slane %v1711_v55, 2  ;;  %v1885_v39 = vpop.f32.mrf.mxu3 }
 0x32a   : > { %v1713_v5 = vadd.f32 %v1712_v10, %v1711_v55  ;;  %v4710_v46 = vpop.f32.mrf.mxu0 }
 0x32c   : > { %v1714_v34 = vrot.slane %v1713_v5, 1 }
 0x32e   : > { %v1715_v60 = vadd.f32 %v1714_v34, %v1713_v5 }
 0x330   : > { %v1782_v35 = vsel %vm1769_vm8, %v1715_v60, %v1781_v52 }
 0x331   : > { %v4714_v53 = vsel %vm1771_vm9, %v1722_v30, %v1782_v35 }
 0x332   : > { %v1904_v59 = vpop.f32.mrf.mxu0 }
 0x339   : > { %v1595_v44 = vpop.xlane.xlu1 %1594 }
 0x33a   : > { %3868 = vrcp.f32 %v1595_v44  ;;  %v4718_v16 = vpop.f32.mrf.mxu1 }
 0x340   : > { %v3869_v0 = vpop.eup %3868 }
 0x341   : > { %v1633_v54 = vmul.f32 %v3869_v0, %v4645_v1  ;;  %v1604_v9 = vpop.xlane.xlu1 %1603 }
 0x342   : > { %3870 = vrcp.f32 %v1604_v9  ;;  %v1923_v8 = vpop.f32.mrf.mxu1 }
 0x343   : > { %v1806_v2 = vpack.c.bf16 %v1633_v54, %v1633_v54  ;;  %v1723_v1 = vsel %vm1156_vm3, %v1633_v54, 0.0 }
 0x345   : > { %3696 = vmatmul.msk.bf16.vlgmr.msra.gmra.mxu0 %vm1156_vm3, %v1806_v2 }
 0x348   : > { %v3871_v42 = vpop.eup %3870 }
 0x349   : > { %v1636_v25 = vmul.f32 %v3871_v42, %v4656_v47  ;;  %v1598_v50 = vpop.xlane.xlu2 %1597  ;;  %v1724_v47 = vrot.slane %v1723_v1, 4 }
 0x34a   : > { %3872 = vrcp.f32 %v1598_v50 }
 0x34b   : > { %v1809_v37 = vpack.c.bf16 %v1636_v25, %v1636_v25  ;;  %v1744_v45 = vsel %vm1156_vm3, %v1636_v25, 0.0  ;;  %v1725_v40 = vadd.f32 %v1724_v47, %v1723_v1  ;;  %v2117_v1 = vpack.c.bf16 %v4718_v16, %v4710_v46 }
 0x34d   : > { %3699 = vmatmul.msk.bf16.vlgmr.msra.gmra.mxu3 %vm1156_vm3, %v1809_v37  ;;  %v1726_v38 = vrot.slane %v1725_v40, 2 }
 0x34f   : > { %v1727_v56 = vadd.f32 %v1726_v38, %v1725_v40 }
 0x350   : > { %v3873_v31 = vpop.eup %3872  ;;  %v1940_v33 = vpop.f32.mrf.mxu2 }
 0x351   : > { %v1634_v58 = vmul.f32 %v3873_v31, %v4663_v63  ;;  %v1745_v63 = vrot.slane %v1744_v45, 4  ;;  %v1728_v41 = vrot.slane %v1727_v56, 1 }
 0x353   : > { %v1807_v51 = vpack.c.bf16 %v1634_v58, %v1634_v58  ;;  %v1730_v52 = vsel %vm1156_vm3, %v1634_v58, 0.0  ;;  %v1746_v10 = vadd.f32 %v1745_v63, %v1744_v45  ;;  %v1729_v54 = vadd.f32 %v1728_v41, %v1727_v56  ;;  %v2124_v56 = vld [vmem:[#allocation2 + $0x8] sm:$0xff] }
 0x354   : > { %v1731_v27 = vrot.slane %v1730_v52, 4 }
 0x355   : > { %3697 = vmatmul.msk.bf16.vlgmr.msrb.gmra.mxu1 %vm1156_vm3, %v1807_v51  ;;  %3700 = vmatmul.msk.bf16.vlgmr.msrb.gmra.mxu0 %vm1156_vm3, %v2115_v48  ;;  %v1747_v15 = vrot.slane %v1746_v10, 2  ;;  %v1784_v25 = vsel %vm1773_vm10, %v1729_v54, %v4714_v53 }
 0x356   : > { %v1732_v55 = vadd.f32 %v1731_v27, %v1730_v52 }
 0x357   : > { %v1748_v49 = vadd.f32 %v1747_v15, %v1746_v10  ;;  %v2123_v10 = vld [vmem:[#allocation2] sm:$0xff] }
 0x358   : > { %v1942_v61 = vpop.f32.mrf.mxu2  ;;  %v1733_v39 = vrot.slane %v1732_v55, 2 }
 0x359   : > { %v1601_v62 = vpop.xlane.xlu0 %1600  ;;  %v1749_v8 = vrot.slane %v1748_v49, 1 }
 0x35a   : > { %3874 = vrcp.f32 %v1601_v62  ;;  %v1734_v48 = vadd.f32 %v1733_v39, %v1732_v55 }
 0x35b   : > { %v1750_v37 = vadd.f32 %v1749_v8, %v1748_v49  ;;  %v2126_v49 = vld [vmem:[#allocation2 + $0x18] sm:$0xff] }
 0x35c   : > { %v1735_v44 = vrot.slane %v1734_v48, 1 }
 0x35e   : > { %v1736_v2 = vadd.f32 %v1735_v44, %v1734_v48 }
 0x360   : > { %v3875_v5 = vpop.eup %3874  ;;  %v1959_v36 = vpop.f32.mrf.mxu3  ;;  %v1785_v57 = vsel %vm1775_vm11, %v1736_v2, %v1784_v25 }
 0x361   : > { %v1635_v34 = vmul.f32 %v3875_v5, %v4674_v26  ;;  %v2118_v52 = vpack.c.bf16 %v1959_v36, %v1940_v33 }
 0x363   : > { %v1737_v60 = vsel %vm1156_vm3, %v1635_v34, 0.0  ;;  %v1808_v30 = vpack.c.bf16 %v1635_v34, %v1635_v34 }
 0x364   : > { %v1738_v35 = vrot.slane %v1737_v60, 4 }
 0x365   : > { %3698 = vmatmul.msk.bf16.vlgmr.msrb.gmra.mxu2 %vm1156_vm3, %v1808_v30  ;;  %3701 = vmatmul.msk.bf16.gmra.mxu0 %vm1156_vm3, %v2116_v19  ;;  %v2125_v30 = vld [vmem:[#allocation2 + $0x10] sm:$0xff] }
 0x366   : > { %v1739_v59 = vadd.f32 %v1738_v35, %v1737_v60 }
 0x368   : > { %v1740_v0 = vrot.slane %v1739_v59, 2  ;;  %v1961_v26 = vpop.f32.mrf.mxu3 }
 0x36a   : > { %v1741_v9 = vadd.f32 %v1740_v0, %v1739_v59 }
 0x36c   : > { %v1742_v42 = vrot.slane %v1741_v9, 1 }
 0x36e   : > { %v1743_v50 = vadd.f32 %v1742_v42, %v1741_v9  ;;  %v2127_v9 = vld [vmem:[#allocation2 + $0x20] sm:$0xff]  ;;  %v2128_v42 = vld [vmem:[#allocation2 + $0x28] sm:$0xff] }
 0x370   : > { %v1786_v19 = vsel %vm1777_vm12, %v1743_v50, %v1785_v57 }
 0x371   : > { %v1787_v31 = vsel %vm1779_vm13, %v1750_v37, %v1786_v19  ;;  %v2129_v37 = vld [vmem:[#allocation2 + $0x30] sm:$0xff]  ;;  %v2130_v19 = vld [vmem:[#allocation2 + $0x38] sm:$0xff] }
 0x372   : > { %v1791_v58 = vadd.f32 %v1787_v31, %v1638_v22 }
 0x374   : > { %1793 = vst.msk [vmem:[#allocation3 + $0x8] sm:$0xff] %vm1156_vm3, %v1791_v58 }
 0x375   : > { %3702 = vmatmul.msk.bf16.gmra.mxu0 %vm1156_vm3, %v2117_v1  ;;  %v2131_v1 = vld [vmem:[#allocation2 + $0x40] sm:$0xff] }
 0x382   : > { %v1978_v51 = vpop.f32.mrf.mxu0 }
 0x385   : > { %3703 = vmatmul.msk.bf16.gmra.mxu0 %vm1156_vm3, %v2118_v52 }
 0x38a   : > { %v1980_v53 = vpop.f32.mrf.mxu0 }
 0x38b   : > { %v2132_v53 = vld [vmem:[#allocation2 + $0x48] sm:$0xff] }
 0x390   : > { %v2035_v47 = vpop.f32.mrf.mxu3 }
 0x392   : > { %v1997_v27 = vpop.f32.mrf.mxu1 }
 0x393   : > { %v2119_v45 = vpack.c.bf16 %v1997_v27, %v1978_v51 }
 0x395   : > { %3704 = vmatmul.msk.bf16.gmra.mxu0 %vm1156_vm3, %v2119_v45  ;;  %v2133_v45 = vld [vmem:[#allocation2 + $0x50] sm:$0xff] }
 0x398   : > { %v2037_v61 = vpop.f32.mrf.mxu3 }
 0x39a   : > { %v1999_v62 = vpop.f32.mrf.mxu1 }
 0x3a8   : > { %v2016_v40 = vpop.f32.mrf.mxu2 }
 0x3a9   : > { %v2120_v63 = vpack.c.bf16 %v2035_v47, %v2016_v40  ;;  %v2134_v40 = vld [vmem:[#allocation2 + $0x58] sm:$0xff] }
 0x3ab   : > { %3705 = vmatmul.msk.bf16.gmra.mxu0 %vm1156_vm3, %v2120_v63 }
 0x3b0   : > { %v2018_v46 = vpop.f32.mrf.mxu2 }
 0x3c2   : > { %v2054_v16 = vpop.f32.mrf.mxu0 }
 0x3ca   : > { %v2056_v55 = vpop.f32.mrf.mxu0 }
 0x3d0   : > { %v2111_v38 = vpop.f32.mrf.mxu3 }
 0x3d2   : > { %v2073_v33 = vpop.f32.mrf.mxu1  ;;  %v2176_v39 = vpop.f32.mrf.mxu0 }
 0x3d3   : > { %v2121_v5 = vpack.c.bf16 %v2073_v33, %v2054_v16  ;;  %v2216_v36 = vadd.f32 %v2176_v39, %v2123_v10  ;;  %v2135_v16 = vld [vmem:[#allocation2 + $0x60] sm:$0xff]  ;;  %v2136_v10 = vld [vmem:[#allocation2 + $0x68] sm:$0xff] }
 0x3d5   : > { %2232 = vst.msk [vmem:[#allocation2] sm:$0xff] %vm844_vm2, %v2216_v36  ;;  %3706 = vmatmul.msk.bf16.gmra.mxu0 %vm1156_vm3, %v2121_v5  ;;  %v2137_v5 = vld [vmem:[#allocation2 + $0x70] sm:$0xff] }
 0x3d8   : > { %v2113_v34 = vpop.f32.mrf.mxu3 }
 0x3da   : > { %v2075_v15 = vpop.f32.mrf.mxu1  ;;  %v2178_v48 = vpop.f32.mrf.mxu0 }
 0x3db   : > { %v2217_v60 = vadd.f32 %v2178_v48, %v2124_v56  ;;  %v2138_v56 = vld [vmem:[#allocation2 + $0x78] sm:$0xff] }
 0x3dd   : > { %2233 = vst.msk [vmem:[#allocation2 + $0x8] sm:$0xff] %vm844_vm2, %v2217_v60 }
 0x3e2   : > { %v2181_v35 = vpop.f32.mrf.mxu0 }
 0x3e3   : > { %v2218_v41 = vadd.f32 %v2181_v35, %v2125_v30 }
 0x3e5   : > { %2234 = vst.msk [vmem:[#allocation2 + $0x10] sm:$0xff] %vm844_vm2, %v2218_v41 }
 0x3e8   : > { %v2092_v59 = vpop.f32.mrf.mxu2 }
 0x3e9   : > { %v2122_v44 = vpack.c.bf16 %v2111_v38, %v2092_v59 }
 0x3ea   : > { %v2183_v0 = vpop.f32.mrf.mxu0 }
 0x3eb   : > { %v2219_v26 = vadd.f32 %v2183_v0, %v2126_v49  ;;  %3707 = vmatmul.msk.bf16.gmra.mxu0 %vm1156_vm3, %v2122_v44 }
 0x3ed   : > { %2235 = vst.msk [vmem:[#allocation2 + $0x18] sm:$0xff] %vm844_vm2, %v2219_v26 }
 0x3f0   : > { %v2094_v54 = vpop.f32.mrf.mxu2 }
 0x3f2   : > { %v2186_v8 = vpop.f32.mrf.mxu0 }
 0x3f3   : > { %v2220_v2 = vadd.f32 %v2186_v8, %v2127_v9 }
 0x3f5   : > { %2236 = vst.msk [vmem:[#allocation2 + $0x20] sm:$0xff] %vm844_vm2, %v2220_v2 }
 0x3fa   : > { %v2188_v25 = vpop.f32.mrf.mxu0 }
 0x3fb   : > { %v2221_v50 = vadd.f32 %v2188_v25, %v2128_v42 }
 0x3fd   : > { %2237 = vst.msk [vmem:[#allocation2 + $0x28] sm:$0xff] %vm844_vm2, %v2221_v50 }
 0x402   : > { %v2191_v57 = vpop.f32.mrf.mxu0 }
 0x403   : > { %v2222_v22 = vadd.f32 %v2191_v57, %v2129_v37 }
 0x405   : > { %2238 = vst.msk [vmem:[#allocation2 + $0x30] sm:$0xff] %vm844_vm2, %v2222_v22 }
 0x40a   : > { %v2193_v31 = vpop.f32.mrf.mxu0 }
 0x40b   : > { %v2223_v58 = vadd.f32 %v2193_v31, %v2130_v19 }
 0x40d   : > { %2239 = vst.msk [vmem:[#allocation2 + $0x38] sm:$0xff] %vm844_vm2, %v2223_v58 }
 0x412   : > { %v2196_v51 = vpop.f32.mrf.mxu0 }
 0x413   : > { %v2224_v52 = vadd.f32 %v2196_v51, %v2131_v1 }
 0x415   : > { %2240 = vst.msk [vmem:[#allocation2 + $0x40] sm:$0xff] %vm844_vm2, %v2224_v52 }
 0x41a   : > { %v2198_v47 = vpop.f32.mrf.mxu0 }
 0x41b   : > { %v2225_v27 = vadd.f32 %v2198_v47, %v2132_v53 }
 0x41d   : > { %2241 = vst.msk [vmem:[#allocation2 + $0x48] sm:$0xff] %vm844_vm2, %v2225_v27 }
 0x428   : > { %v2201_v61 = vpop.f32.mrf.mxu0 }
 0x429   : > { %v2226_v62 = vadd.f32 %v2201_v61, %v2133_v45 }
 0x42b   : > { %2242 = vst.msk [vmem:[#allocation2 + $0x50] sm:$0xff] %vm844_vm2, %v2226_v62 }
 0x430   : > { %v2203_v63 = vpop.f32.mrf.mxu0 }
 0x431   : > { %v2227_v46 = vadd.f32 %v2203_v63, %v2134_v40 }
 0x433   : > { %2243 = vst.msk [vmem:[#allocation2 + $0x58] sm:$0xff] %vm844_vm2, %v2227_v46 }
 0x452   : > { %v2206_v55 = vpop.f32.mrf.mxu0 }
 0x453   : > { %v2228_v38 = vadd.f32 %v2206_v55, %v2135_v16 }
 0x455   : > { %2244 = vst.msk [vmem:[#allocation2 + $0x60] sm:$0xff] %vm844_vm2, %v2228_v38 }
 0x45a   : > { %v2208_v33 = vpop.f32.mrf.mxu0 }
 0x45b   : > { %v2229_v39 = vadd.f32 %v2208_v33, %v2136_v10 }
 0x45d   : > { %2245 = vst.msk [vmem:[#allocation2 + $0x68] sm:$0xff] %vm844_vm2, %v2229_v39 }
 0x468   : > { %v2211_v36 = vpop.f32.mrf.mxu0 }
 0x469   : > { %v2230_v34 = vadd.f32 %v2211_v36, %v2137_v5 }
 0x46b   : > { %2246 = vst.msk [vmem:[#allocation2 + $0x70] sm:$0xff] %vm844_vm2, %v2230_v34 }
 0x46f   : > { %2251 = sbr.rel (%p3708_p6) target bundleno = 2164 (0x874), region = 100 }
 0x470   : > { %v2213_v15 = vpop.f32.mrf.mxu0 }
 0x471   : > { %v2231_v48 = vadd.f32 %v2213_v15, %v2138_v56 }
 0x473   : > { %2247 = vst.msk [vmem:[#allocation2 + $0x78] sm:$0xff] %vm844_vm2, %v2231_v48 }
 0x474   : > { %v2254_v60 = vld [vmem:[#allocation2 + $0x10] sm:$0xff]  ;;  %v4774_v30 = vld [vmem:[%s5682_s9] ss:$0 sm:$0xff]  ;;  %v2255_v41 = vld [vmem:[#allocation2 + $0x18] sm:$0xff] }
 0x475   : > { %v2252_v35 = vld [vmem:[#allocation2] sm:$0xff]  ;;  %v2253_v59 = vld [vmem:[#allocation2 + $0x8] sm:$0xff]  ;;  %v2274_v49 = vadd.f32 %v4774_v30, %v2254_v60  ;;  %v2275_v2 = vadd.f32 %v4774_v30, %v2255_v41  ;;  %v2262_v15 = vld [vmem:[#allocation2 + $0x50] sm:$0xff] }
 0x476   : > { %v2272_v44 = vadd.f32 %v4774_v30, %v2252_v35  ;;  %v2256_v0 = vld [vmem:[#allocation2 + $0x20] sm:$0xff]  ;;  %v2257_v26 = vld [vmem:[#allocation2 + $0x28] sm:$0xff]  ;;  %v2273_v42 = vadd.f32 %v4774_v30, %v2253_v59 }
 0x477   : > { %v2276_v54 = vadd.f32 %v4774_v30, %v2256_v0  ;;  %v2290_v9 = vadd.f32 %v2274_v49, %v4202_v13  ;;  %v2277_v50 = vadd.f32 %v4774_v30, %v2257_v26  ;;  %v2260_v48 = vld [vmem:[#allocation2 + $0x40] sm:$0xff] }
 0x478   : > { %v2288_v8 = vadd.f32 %v2272_v44, %v4175_v6  ;;  %v2291_v6 = vadd.f32 %v2275_v2, %v4207_v14  ;;  %v2289_v22 = vadd.f32 %v2273_v42, %v4180_v7  ;;  %v2282_v44 = vadd.f32 %v4774_v30, %v2262_v15 }
 0x479   : > { %v4784_v25 = vadd.f32 %v2276_v54, %v4164_v3  ;;  %v2310_v37 = vsel %vm844_vm2, %v2290_v9, 0.0  ;;  %v2293_v19 = vadd.f32 %v2277_v50, %v4169_v4  ;;  %v2258_v3 = vld [vmem:[#allocation2 + $0x30] sm:$0xff]  ;;  %v3983_v4 = vmov 32.0  }
 0x47a   : > { %v2304_v57 = vsel %vm844_vm2, %v2288_v8, 0.0  ;;  %2311 = vadd.xlane.f32.xlu1 %v2310_v37  ;;  %v2313_v31 = vsel %vm844_vm2, %v2291_v6, 0.0  ;;  %v2307_v58 = vsel %vm844_vm2, %v2289_v22, 0.0  ;;  %v2278_v51 = vadd.f32 %v4774_v30, %v2258_v3 }
 0x47b   : > { %2305 = vadd.xlane.f32.xlu0 %v2304_v57  ;;  %v2316_v13 = vsel %vm844_vm2, %v4784_v25, 0.0  ;;  %v2319_v1 = vsel %vm844_vm2, %v2293_v19, 0.0  ;;  %3883 = vrcp.f32 %v3983_v4  ;;  %v2280_v0 = vadd.f32 %v4774_v30, %v2260_v48  ;;  %v2261_v57 = vld [vmem:[#allocation2 + $0x48] sm:$0xff]  ;;  %v2264_v4 = vld [vmem:[#allocation2 + $0x60] sm:$0xff] }
 0x47c   : > { %2317 = vadd.xlane.f32.xlu2 %v2316_v13  ;;  %v4799_v52 = vadd.f32 %v2278_v51, %v4192_v11  ;;  %v2259_v11 = vld [vmem:[#allocation2 + $0x38] sm:$0xff]  ;;  %v4836_v42 = vadd.f32 %v2282_v44, %v4234_v20 }
 0x47d   : > { %v2279_v55 = vadd.f32 %v4774_v30, %v2259_v11  ;;  %v4839_v50 = vadd.f32 %v2280_v0, %v4220_v17  ;;  %v2281_v17 = vadd.f32 %v4774_v30, %v2261_v57 }
 0x47e   : > { %v2322_v7 = vsel %vm844_vm2, %v4799_v52, 0.0 }
 0x47f   : > { %v4813_v5 = vadd.f32 %v2279_v55, %v4197_v12 }
 0x481   : > { %v3884_v14 = vpop.eup %3883  ;;  %v2325_v41 = vsel %vm844_vm2, %v4813_v5, 0.0 }
 0x482   : > { %2314 = vadd.xlane.f32.xlu1 %v2313_v31  ;;  %v2353_v53 = vmul.f32 32.0, %v3884_v14  ;;  %vm2357_vm14 = vweird.f32 %v3884_v14 }
 0x483   : > { %2308 = vadd.xlane.f32.xlu0 %v2307_v58 }
 0x484   : > { %2320 = vadd.xlane.f32.xlu2 %v2319_v1  ;;  %v2354_v47 = vsub.f32 1.0, %v2353_v53 }
 0x486   : > { %v2355_v27 = vmul.f32 %v3884_v14, %v2354_v47 }
 0x488   : > { %v2356_v45 = vadd.f32 %v3884_v14, %v2355_v27  ;;  %v2284_v27 = vadd.f32 %v4774_v30, %v2264_v4 }
 0x48a   : > { %v4803_v61 = vsel %vm2357_vm14, %v3884_v14, %v2356_v45 }
 0x48c   : > { %2323 = vadd.xlane.f32.xlu2 %v2322_v7  ;;  %v4860_v7 = vadd.f32 %v2281_v17, %v4225_v18 }
 0x4ed   : > { %v2312_v62 = vpop.xlane.xlu1 %2311 }
 0x4ee   : > { %v2306_v40 = vpop.xlane.xlu0 %2305  ;;  %v2361_v56 = vmul.f32 %v4803_v61, %v2312_v62 }
 0x4ef   : > { %v2359_v63 = vmul.f32 %v4803_v61, %v2306_v40  ;;  %v2318_v46 = vpop.xlane.xlu2 %2317  ;;  %v2267_v40 = vld [vmem:[#allocation2 + $0x78] sm:$0xff] }
 0x4f0   : > { %v4830_v26 = vsub.f32 %v2290_v9, %v2361_v56  ;;  %v2263_v9 = vld [vmem:[#allocation2 + $0x58] sm:$0xff]  ;;  %v2363_v51 = vmul.f32 %v4803_v61, %v2318_v46  ;;  %v2287_v46 = vadd.f32 %v4774_v30, %v2267_v40 }
 0x4f1   : > { %v4806_v16 = vsub.f32 %v2288_v8, %v2359_v63  ;;  %v2283_v3 = vadd.f32 %v4774_v30, %v2263_v9  ;;  %v2265_v63 = vld [vmem:[#allocation2 + $0x68] sm:$0xff] }
 0x4f2   : > { %v2393_v37 = vmul.f32 %v4830_v26, %v4830_v26  ;;  %v4870_v45 = vsub.f32 %v4784_v25, %v2363_v51 }
 0x4f3   : > { %v2391_v38 = vmul.f32 %v4806_v16, %v4806_v16  ;;  %v4856_v1 = vadd.f32 %v2283_v3, %v4239_v21  ;;  %v2331_v21 = vsel %vm844_vm2, %v4860_v7, 0.0 }
 0x4f4   : > { %v2413_v20 = vsel %vm844_vm2, %v2393_v37, 0.0  ;;  %v2395_v62 = vmul.f32 %v4870_v45, %v4870_v45 }
 0x4f5   : > { %v2407_v10 = vsel %vm844_vm2, %v2391_v38, 0.0  ;;  %v2315_v33 = vpop.xlane.xlu1 %2314  ;;  %v2337_v47 = vsel %vm844_vm2, %v4856_v1, 0.0  ;;  %v2285_v38 = vadd.f32 %v4774_v30, %v2265_v63 }
 0x4f6   : > { %2408 = vadd.xlane.f32.xlu0 %v2407_v10  ;;  %v2309_v39 = vpop.xlane.xlu0 %2308  ;;  %v2362_v36 = vmul.f32 %v4803_v61, %v2315_v33  ;;  %v2419_v55 = vsel %vm844_vm2, %v2395_v62, 0.0  ;;  %v2266_v33 = vld [vmem:[#allocation2 + $0x70] sm:$0xff] }
 0x4f7   : > { %v2360_v34 = vmul.f32 %v4803_v61, %v2309_v39  ;;  %v2321_v59 = vpop.xlane.xlu2 %2320  ;;  %v4891_v10 = vadd.f32 %v2285_v38, %v4253_v24  ;;  %v3765_v24 = vld [vmem:[%s5683_s10 + $0x8] sm:$0xff] }
 0x4f8   : > { %v4818_v60 = vsub.f32 %v2291_v6, %v2362_v36  ;;  %v2364_v2 = vmul.f32 %v4803_v61, %v2321_v59  ;;  %v2334_v6 = vsel %vm844_vm2, %v4836_v42, 0.0  ;;  %2761 = vmatpush.bf16.msra.mxu0 %v3765_v24  ;;  %3776 = vmatpush.bf16.msra.mxu3 %v3765_v24 }
 0x4f9   : > { %v4820_v35 = vsub.f32 %v2289_v22, %v2360_v34  ;;  %v2328_v22 = vsel %vm844_vm2, %v4839_v50, 0.0  ;;  %v2343_v36 = vsel %vm844_vm2, %v4891_v10, 0.0  ;;  %v2286_v34 = vadd.f32 %v4774_v30, %v2266_v33  ;;  %v3764_v30 = vld [vmem:[%s5683_s10] sm:$0xff] }
 0x4fa   : > { %v2394_v12 = vmul.f32 %v4818_v60, %v4818_v60  ;;  %v4843_v13 = vsub.f32 %v2293_v19, %v2364_v2 }
 0x4fb   : > { %v2392_v49 = vmul.f32 %v4820_v35, %v4820_v35  ;;  %v4899_v56 = vadd.f32 %v2286_v34, %v4268_v28 }
 0x4fc   : > { %v2416_v54 = vsel %vm844_vm2, %v2394_v12, 0.0  ;;  %v2396_v19 = vmul.f32 %v4843_v13, %v4843_v13  ;;  %2762 = vmatpush.bf16.msra.mxu0 %v3764_v30  ;;  %3777 = vmatpush.bf16.msra.mxu3 %v3764_v30 }
 0x4fd   : > { %v2410_v8 = vsel %vm844_vm2, %v2392_v49, 0.0  ;;  %2417 = vadd.xlane.f32.xlu2 %v2416_v54 }
 0x4fe   : > { %2326 = vadd.xlane.f32.xlu0 %v2325_v41  ;;  %2411 = vadd.xlane.f32.xlu1 %v2410_v8  ;;  %v2422_v53 = vsel %vm844_vm2, %v2396_v19, 0.0 }
 0x4ff   : > { %v2324_v31 = vpop.xlane.xlu2 %2323 }
 0x500   : > { %v2365_v58 = vmul.f32 %v4803_v61, %v2324_v31 }
 0x502   : > { %v4863_v14 = vsub.f32 %v4799_v52, %v2365_v58  ;;  %v4877_v52 = vadd.f32 %v2284_v27, %v4248_v23  ;;  %v4888_v23 = vadd.f32 %v2287_v46, %v4273_v29  ;;  %v2346_v29 = vsel %vm844_vm2, %v4899_v56, 0.0 }
 0x504   : > { %v2397_v18 = vmul.f32 %v4863_v14, %v4863_v14  ;;  %v2340_v11 = vsel %vm844_vm2, %v4877_v52, 0.0  ;;  %v2349_v39 = vsel %vm844_vm2, %v4888_v23, 0.0 }
 0x505   : > { %2335 = vadd.xlane.f32.xlu2 %v2334_v6 }
 0x506   : > { %2329 = vadd.xlane.f32.xlu0 %v2328_v22  ;;  %2414 = vadd.xlane.f32.xlu1 %v2413_v20  ;;  %v2425_v25 = vsel %vm844_vm2, %v2397_v18, 0.0 }
 0x50d   : > { %2423 = vadd.xlane.f32.xlu2 %v2422_v53 }
 0x50e   : > { %2338 = vadd.xlane.f32.xlu0 %v2337_v47  ;;  %2332 = vadd.xlane.f32.xlu1 %v2331_v21 }
 0x515   : > { %2426 = vadd.xlane.f32.xlu2 %v2425_v25 }
 0x516   : > { %2341 = vadd.xlane.f32.xlu0 %v2340_v11  ;;  %2420 = vadd.xlane.f32.xlu1 %v2419_v55 }
 0x51d   : > { %2350 = vadd.xlane.f32.xlu2 %v2349_v39 }
 0x51e   : > { %2344 = vadd.xlane.f32.xlu1 %v2343_v36 }
 0x526   : > { %2347 = vadd.xlane.f32.xlu1 %v2346_v29 }
 0x569   : > { %v2409_v15 = vpop.xlane.xlu0 %2408 }
 0x56a   : > { %v2455_v48 = vmul.f32 %v2409_v15, %v4803_v61 }
 0x56c   : > { %v2471_v41 = vadd.f32 1e-05, %v2455_v48 }
 0x56e   : > { %3885 = vrsqrt.f32 %v2471_v41  ;;  %vm2493_vm0 = vweird.f32 %v2471_v41 }
 0x570   : > { %v2418_v28 = vpop.xlane.xlu2 %2417 }
 0x571   : > { %v2327_v59 = vpop.xlane.xlu0 %2326  ;;  %v2458_v12 = vmul.f32 %v2418_v28, %v4803_v61  ;;  %v2412_v49 = vpop.xlane.xlu1 %2411 }
 0x572   : > { %v2366_v44 = vmul.f32 %v4803_v61, %v2327_v59  ;;  %v2456_v0 = vmul.f32 %v2412_v49, %v4803_v61  ;;  %v4966_v49 = vld [vmem:[%s5687_s14] ss:$0 sm:$0xff] }
 0x573   : > { %v4913_v8 = vadd.f32 1e-05, %v2458_v12 }
 0x574   : > { %v3886_v54 = vpop.eup %3885  ;;  %v4916_v2 = vsub.f32 %v4813_v5, %v2366_v44  ;;  %v2472_v9 = vadd.f32 1e-05, %v2456_v0 }
 0x575   : > { %v2488_v37 = vmul.f32 %v3886_v54, %v2471_v41  ;;  %3887 = vrsqrt.f32 %v4913_v8  ;;  %vm2494_vm15 = vweird.f32 %v3886_v54  ;;  %vm2523_vm7 = vweird.f32 %v4913_v8 }
 0x576   : > { %v2398_v57 = vmul.f32 %v4916_v2, %v4916_v2  ;;  %3889 = vrsqrt.f32 %v2472_v9  ;;  %vm4944_vm1 = vmor %vm2493_vm0, %vm2494_vm15  ;;  %vm2503_vm5 = vweird.f32 %v2472_v9 }
 0x577   : > { %v2489_v6 = vmul.f32 %v3886_v54, %v2488_v37 }
 0x578   : > { %v2428_v22 = vsel %vm844_vm2, %v2398_v57, 0.0  ;;  %v2336_v20 = vpop.xlane.xlu2 %2335 }
 0x579   : > { %v2490_v3 = vmul.f32 0.5, %v2489_v6  ;;  %2429 = vadd.xlane.f32.xlu0 %v2428_v22  ;;  %v2330_v31 = vpop.xlane.xlu0 %2329  ;;  %v2369_v17 = vmul.f32 %v4803_v61, %v2336_v20  ;;  %v2415_v58 = vpop.xlane.xlu1 %2414 }
 0x57a   : > { %v2367_v5 = vmul.f32 %v4803_v61, %v2330_v31  ;;  %v2457_v51 = vmul.f32 %v2415_v58, %v4803_v61  ;;  %v4983_v31 = vld [vmem:[%s5688_s15] ss:$0 sm:$0xff] }
 0x57b   : > { %v2491_v19 = vsub.f32 1.5, %v2490_v3  ;;  %v4925_v4 = vpop.eup %3887  ;;  %v4928_v53 = vsub.f32 %v4836_v42, %v2369_v17 }
 0x57c   : > { %v4931_v47 = vsub.f32 %v4839_v50, %v2367_v5  ;;  %v3890_v27 = vpop.eup %3889  ;;  %v2518_v21 = vmul.f32 %v4925_v4, %v4913_v8  ;;  %v4935_v18 = vadd.f32 1e-05, %v2457_v51  ;;  %vm2524_vm8 = vweird.f32 %v4925_v4 }
 0x57d   : > { %v2492_v62 = vmul.f32 %v3886_v54, %v2491_v19  ;;  %v2498_v40 = vmul.f32 %v3890_v27, %v2472_v9  ;;  %v2401_v63 = vmul.f32 %v4928_v53, %v4928_v53  ;;  %vm2504_vm4 = vweird.f32 %v3890_v27  ;;  %vm5003_vm11 = vmor %vm2523_vm7, %vm2524_vm8 }
 0x57e   : > { %v2399_v25 = vmul.f32 %v4931_v47, %v4931_v47  ;;  %3891 = vrsqrt.f32 %v4935_v18  ;;  %v2519_v55 = vmul.f32 %v4925_v4, %v2518_v21  ;;  %vm2505_vm6 = vmor %vm2503_vm5, %vm2504_vm4  ;;  %vm2513_vm10 = vweird.f32 %v4935_v18 }
 0x57f   : > { %v2499_v42 = vmul.f32 %v3890_v27, %v2498_v40  ;;  %v2437_v50 = vsel %vm844_vm2, %v2401_v63, 0.0  ;;  %v2496_v24 = vsel %vm4944_vm1, %v3886_v54, %v2492_v62 }
 0x580   : > { %v2431_v11 = vsel %vm844_vm2, %v2399_v25, 0.0  ;;  %2438 = vadd.xlane.f32.xlu2 %v2437_v50  ;;  %v2424_v38 = vpop.xlane.xlu2 %2423  ;;  %v2647_v12 = vmul.f32 %v2496_v24, %v4806_v16  ;;  %v2520_v44 = vmul.f32 0.5, %v2519_v55 }
 0x581   : > { %2432 = vadd.xlane.f32.xlu0 %v2431_v11  ;;  %v2339_v33 = vpop.xlane.xlu0 %2338  ;;  %v2500_v39 = vmul.f32 0.5, %v2499_v42  ;;  %v2460_v36 = vmul.f32 %v2424_v38, %v4803_v61  ;;  %v2333_v34 = vpop.xlane.xlu1 %2332 }
 0x582   : > { %v2370_v29 = vmul.f32 %v4803_v61, %v2339_v33  ;;  %v2368_v15 = vmul.f32 %v4803_v61, %v2333_v34  ;;  %v2667_v20 = vmul.f32 %v4966_v49, %v2647_v12  ;;  %v2521_v17 = vsub.f32 1.5, %v2520_v44 }
 0x583   : > { %v2501_v48 = vsub.f32 1.5, %v2500_v39  ;;  %v4954_v41 = vadd.f32 1e-05, %v2460_v36 }
 0x584   : > { %v4957_v30 = vsub.f32 %v4856_v1, %v2370_v29  ;;  %v3892_v28 = vpop.eup %3891  ;;  %v4960_v59 = vsub.f32 %v4860_v7, %v2368_v15  ;;  %v4997_v63 = vadd.f32 %v4983_v31, %v2667_v20  ;;  %v2522_v25 = vmul.f32 %v4925_v4, %v2521_v17 }
 0x585   : > { %v2502_v0 = vmul.f32 %v3890_v27, %v2501_v48  ;;  %v2508_v54 = vmul.f32 %v3892_v28, %v4935_v18  ;;  %3893 = vrsqrt.f32 %v4954_v41  ;;  %vm2514_vm9 = vweird.f32 %v3892_v28 }
 0x586   : > { %v2400_v1 = vmul.f32 %v4960_v59, %v4960_v59  ;;  %v2402_v7 = vmul.f32 %v4957_v30, %v4957_v30  ;;  %vm2515_vm12 = vmor %vm2513_vm10, %vm2514_vm9  ;;  %v2526_v34 = vsel %vm5003_vm11, %v4925_v4, %v2522_v25  ;;  %vm2543_vm13 = vweird.f32 %v4954_v41 }
 0x587   : > { %v2509_v37 = vmul.f32 %v3892_v28, %v2508_v54  ;;  %v2506_v16 = vsel %vm2505_vm6, %v3890_v27, %v2502_v0  ;;  %v2650_v12 = vmul.f32 %v2526_v34, %v4818_v60 }
 0x588   : > { %v4974_v9 = vpop.xlane.xlu2 %2426  ;;  %v2434_v57 = vsel %vm844_vm2, %v2400_v1, 0.0  ;;  %v2440_v6 = vsel %vm844_vm2, %v2402_v7, 0.0  ;;  %v2648_v3 = vmul.f32 %v2506_v16, %v4820_v35 }
 0x589   : > { %v2342_v22 = vpop.xlane.xlu0 %2341  ;;  %v2510_v58 = vmul.f32 0.5, %v2509_v37  ;;  %2435 = vadd.xlane.f32.xlu1 %v2434_v57  ;;  %v2421_v5 = vpop.xlane.xlu1 %2420  ;;  %2441 = vadd.xlane.f32.xlu0 %v2440_v6 }
 0x58a   : > { %v2371_v19 = vmul.f32 %v4803_v61, %v2342_v22  ;;  %v2459_v35 = vmul.f32 %v2421_v5, %v4803_v61  ;;  %v2668_v51 = vmul.f32 %v4966_v49, %v2648_v3 }
 0x58b   : > { %v4990_v27 = vpop.eup %3893  ;;  %v2511_v21 = vsub.f32 1.5, %v2510_v58 }
 0x58c   : > { %v4993_v62 = vsub.f32 %v4877_v52, %v2371_v19  ;;  %v2475_v40 = vadd.f32 1e-05, %v2459_v35  ;;  %v5000_v8 = vadd.f32 %v4983_v31, %v2668_v51  ;;  %v2538_v52 = vmul.f32 %v4990_v27, %v4954_v41 }
 0x58d   : > { %v2512_v50 = vmul.f32 %v3892_v28, %v2511_v21  ;;  %vm2544_vm14 = vweird.f32 %v4990_v27 }
 0x58e   : > { %v2403_v18 = vmul.f32 %v4993_v62, %v4993_v62  ;;  %3895 = vrsqrt.f32 %v2475_v40  ;;  %v2703_v11 = vpack.c.bf16 %v5000_v8, %v4997_v63  ;;  %v2539_v33 = vmul.f32 %v4990_v27, %v2538_v52  ;;  %vm2545_vm1 = vmor %vm2543_vm13, %vm2544_vm14 }
 0x58f   : > { %v2516_v55 = vsel %vm2515_vm12, %v3892_v28, %v2512_v50  ;;  %vm2533_vm15 = vweird.f32 %v2475_v40 }
 0x590   : > { %v2443_v46 = vsel %vm844_vm2, %v2403_v18, 0.0  ;;  %3717 = vmatmul.msk.bf16.vlgmr.msra.gmra.mxu0 %vm844_vm2, %v2703_v11  ;;  %v2351_v38 = vpop.xlane.xlu2 %2350  ;;  %v2649_v24 = vmul.f32 %v2516_v55, %v4830_v26  ;;  %v2540_v44 = vmul.f32 0.5, %v2539_v33 }
 0x591   : > { %v2374_v39 = vmul.f32 %v4803_v61, %v2351_v38  ;;  %v2345_v36 = vpop.xlane.xlu1 %2344  ;;  %2444 = vadd.xlane.f32.xlu1 %v2443_v46  ;;  %v3769_v38 = vld [vmem:[%s5685_s12 + $0x18] sm:$0xff] }
 0x592   : > { %v2372_v29 = vmul.f32 %v4803_v61, %v2345_v36  ;;  %v2669_v1 = vmul.f32 %v4966_v49, %v2649_v24  ;;  %v2541_v37 = vsub.f32 1.5, %v2540_v44  ;;  %2893 = vmatpush.bf16.msra.mxu1 %v3769_v38  ;;  %3778 = vmatpush.bf16.msra.mxu2 %v3769_v38 }
 0x593   : > { %v5023_v15 = vsub.f32 %v4888_v23, %v2374_v39 }
 0x594   : > { %v3896_v48 = vpop.eup %3895  ;;  %v5026_v28 = vsub.f32 %v4891_v10, %v2372_v29  ;;  %v2670_v10 = vmul.f32 %v4966_v49, %v2650_v12  ;;  %v5041_v6 = vadd.f32 %v4983_v31, %v2669_v1  ;;  %v2542_v17 = vmul.f32 %v4990_v27, %v2541_v37  ;;  %v3767_v12 = vld [vmem:[%s5685_s12 + $0x8] sm:$0xff] }
 0x595   : > { %v2528_v0 = vmul.f32 %v3896_v48, %v2475_v40  ;;  %v2406_v54 = vmul.f32 %v5023_v15, %v5023_v15  ;;  %vm2534_vm0 = vweird.f32 %v3896_v48 }
 0x596   : > { %v2404_v4 = vmul.f32 %v5026_v28, %v5026_v28  ;;  %v5047_v20 = vadd.f32 %v4983_v31, %v2670_v10  ;;  %vm2535_vm4 = vmor %vm2533_vm15, %vm2534_vm0  ;;  %v2546_v35 = vsel %vm2545_vm1, %v4990_v27, %v2542_v17 }
 0x597   : > { %v2529_v26 = vmul.f32 %v3896_v48, %v2528_v0  ;;  %v2452_v23 = vsel %vm844_vm2, %v2406_v54, 0.0  ;;  %v2652_v21 = vmul.f32 %v2546_v35, %v4843_v13 }
 0x598   : > { %v2446_v7 = vsel %vm844_vm2, %v2404_v4, 0.0  ;;  %v2704_v58 = vpack.c.bf16 %v5047_v20, %v5041_v6 }
 0x599   : > { %v2530_v16 = vmul.f32 0.5, %v2529_v26  ;;  %2447 = vadd.xlane.f32.xlu2 %v2446_v7  ;;  %v2348_v60 = vpop.xlane.xlu1 %2347  ;;  %2453 = vadd.xlane.f32.xlu1 %v2452_v23  ;;  %v2672_v25 = vmul.f32 %v4966_v49, %v2652_v21  ;;  %v3766_v23 = vld [vmem:[%s5685_s12] sm:$0xff] }
 0x59a   : > { %v2373_v57 = vmul.f32 %v4803_v61, %v2348_v60 }
 0x59b   : > { %v2531_v22 = vsub.f32 1.5, %v2530_v16  ;;  %v5065_v50 = vadd.f32 %v4983_v31, %v2672_v25 }
 0x59c   : > { %v5044_v3 = vsub.f32 %v4899_v56, %v2373_v57 }
 0x59d   : > { %v2532_v41 = vmul.f32 %v3896_v48, %v2531_v22 }
 0x59e   : > { %v2405_v5 = vmul.f32 %v5044_v3, %v5044_v3 }
 0x59f   : > { %v2536_v19 = vsel %vm2535_vm4, %v3896_v48, %v2532_v41 }
 0x5a0   : > { %3718 = vmatmul.msk.bf16.gmra.mxu0 %vm844_vm2, %v2704_v58  ;;  %v2449_v56 = vsel %vm844_vm2, %v2405_v5, 0.0  ;;  %v2651_v51 = vmul.f32 %v2536_v19, %v4870_v45  ;;  %v2461_v45 = vmul.f32 %v4974_v9, %v4803_v61  ;;  %v3768_v9 = vld [vmem:[%s5685_s12 + $0x10] sm:$0xff] }
 0x5a1   : > { %2450 = vadd.xlane.f32.xlu0 %v2449_v56  ;;  %2894 = vmatpush.bf16.msra.mxu1 %v3768_v9 }
 0x5a2   : > { %v2671_v40 = vmul.f32 %v4966_v49, %v2651_v51  ;;  %v2477_v27 = vadd.f32 1e-05, %v2461_v45  ;;  %3779 = vmatpush.bf16.msra.mxu2 %v3768_v9 }
 0x5a4   : > { %v5062_v42 = vadd.f32 %v4983_v31, %v2671_v40  ;;  %3897 = vrsqrt.f32 %v2477_v27  ;;  %vm2553_vm5 = vweird.f32 %v2477_v27 }
 0x5a5   : > { %2895 = vmatpush.bf16.msra.mxu1 %v3767_v12 }
 0x5a6   : > { %v2705_v52 = vpack.c.bf16 %v5065_v50, %v5062_v42  ;;  %3780 = vmatpush.bf16.msra.mxu2 %v3767_v12 }
 0x5a9   : > { %2896 = vmatpush.bf16.msra.mxu1 %v3766_v23 }
 0x5aa   : > { %v3898_v13 = vpop.eup %3897  ;;  %3781 = vmatpush.bf16.msra.mxu2 %v3766_v23 }
 0x5ab   : > { %v2548_v18 = vmul.f32 %v3898_v13, %v2477_v27  ;;  %vm2554_vm6 = vweird.f32 %v3898_v13 }
 0x5ac   : > { %vm5086_vm7 = vmor %vm2553_vm5, %vm2554_vm6 }
 0x5ad   : > { %v2549_v11 = vmul.f32 %v3898_v13, %v2548_v18 }
 0x5af   : > { %v2550_v39 = vmul.f32 0.5, %v2549_v11 }
 0x5b0   : > { %3719 = vmatmul.msk.bf16.gmra.mxu0 %vm844_vm2, %v2705_v52 }
 0x5b1   : > { %v2551_v36 = vsub.f32 1.5, %v2550_v39 }
 0x5b3   : > { %v2552_v4 = vmul.f32 %v3898_v13, %v2551_v36 }
 0x5b5   : > { %v2556_v37 = vsel %vm5086_vm7, %v3898_v13, %v2552_v4 }
 0x5b6   : > { %v2653_v58 = vmul.f32 %v2556_v37, %v4863_v14 }
 0x5b8   : > { %v2673_v45 = vmul.f32 %v4966_v49, %v2653_v58 }
 0x5ec   : > { %v2430_v46 = vpop.xlane.xlu0 %2429 }
 0x5ed   : > { %v2462_v55 = vmul.f32 %v2430_v46, %v4803_v61 }
 0x5ef   : > { %v2478_v33 = vadd.f32 1e-05, %v2462_v55 }
 0x5f1   : > { %3899 = vrsqrt.f32 %v2478_v33  ;;  %vm2563_vm9 = vweird.f32 %v2478_v33 }
 0x5f3   : > { %v2439_v34 = vpop.xlane.xlu2 %2438 }
 0x5f4   : > { %v2433_v29 = vpop.xlane.xlu0 %2432  ;;  %v2465_v24 = vmul.f32 %v2439_v34, %v4803_v61 }
 0x5f5   : > { %v2463_v48 = vmul.f32 %v2433_v29, %v4803_v61 }
 0x5f6   : > { %v2481_v0 = vadd.f32 1e-05, %v2465_v24 }
 0x5f7   : > { %v3900_v44 = vpop.eup %3899  ;;  %v5084_v54 = vadd.f32 1e-05, %v2463_v48 }
 0x5f8   : > { %v2558_v1 = vmul.f32 %v3900_v44, %v2478_v33  ;;  %3901 = vrsqrt.f32 %v2481_v0  ;;  %vm2564_vm8 = vweird.f32 %v3900_v44  ;;  %v5113_v33 = vadd.f32 %v4983_v31, %v2673_v45 }
 0x5f9   : > { %3903 = vrsqrt.f32 %v5084_v54  ;;  %vm2565_vm10 = vmor %vm2563_vm9, %vm2564_vm8  ;;  %vm2593_vm11 = vweird.f32 %v2481_v0  ;;  %vm2573_vm13 = vweird.f32 %v5084_v54 }
 0x5fa   : > { %v2559_v7 = vmul.f32 %v3900_v44, %v2558_v1 }
 0x5fc   : > { %v2560_v10 = vmul.f32 0.5, %v2559_v7  ;;  %v2436_v16 = vpop.xlane.xlu1 %2435  ;;  %v2442_v60 = vpop.xlane.xlu0 %2441 }
 0x5fd   : > { %v2464_v22 = vmul.f32 %v2436_v16, %v4803_v61  ;;  %v2466_v17 = vmul.f32 %v2442_v60, %v4803_v61 }
 0x5fe   : > { %v2561_v57 = vsub.f32 1.5, %v2560_v10  ;;  %v5098_v41 = vpop.eup %3901 }
 0x5ff   : > { %v5101_v5 = vpop.eup %3903  ;;  %v2588_v56 = vmul.f32 %v5098_v41, %v2481_v0  ;;  %v2480_v35 = vadd.f32 1e-05, %v2464_v22  ;;  %v2482_v21 = vadd.f32 1e-05, %v2466_v17  ;;  %vm2594_vm12 = vweird.f32 %v5098_v41 }
 0x600   : > { %v2562_v19 = vmul.f32 %v3900_v44, %v2561_v57  ;;  %v2568_v51 = vmul.f32 %v5101_v5, %v5084_v54  ;;  %vm2574_vm14 = vweird.f32 %v5101_v5  ;;  %vm5129_vm15 = vmor %vm2593_vm11, %vm2594_vm12  ;;  %vm2864_vm11 = vcmask 523264  }
 0x601   : > { %v2589_v40 = vmul.f32 %v5098_v41, %v2588_v56  ;;  %3905 = vrsqrt.f32 %v2480_v35  ;;  %vm5133_vm0 = vmor %vm2573_vm13, %vm2574_vm14  ;;  %vm2603_vm4 = vweird.f32 %v2482_v21  ;;  %vm2583_vm6 = vweird.f32 %v2480_v35 }
 0x602   : > { %v2566_v25 = vsel %vm2565_vm10, %v3900_v44, %v2562_v19  ;;  %v2569_v52 = vmul.f32 %v5101_v5, %v2568_v51  ;;  %3907 = vrsqrt.f32 %v2482_v21 }
 0x603   : > { %v2654_v14 = vmul.f32 %v2566_v25, %v4916_v2  ;;  %v2590_v27 = vmul.f32 0.5, %v2589_v40  ;;  %v5156_v40 = vld [vmem:[%s5684_s11] ss:$0 sm:$0xff] }
 0x604   : > { %v2570_v13 = vmul.f32 0.5, %v2569_v52  ;;  %v2445_v18 = vpop.xlane.xlu1 %2444 }
 0x605   : > { %v2674_v11 = vmul.f32 %v4966_v49, %v2654_v14  ;;  %v2467_v46 = vmul.f32 %v2445_v18, %v4803_v61  ;;  %v2591_v55 = vsub.f32 1.5, %v2590_v27 }
 0x606   : > { %v2571_v38 = vsub.f32 1.5, %v2570_v13 }
 0x607   : > { %v5116_v39 = vadd.f32 %v4983_v31, %v2674_v11  ;;  %v3906_v9 = vpop.eup %3905  ;;  %v5118_v2 = vadd.f32 1e-05, %v2467_v46  ;;  %v2592_v12 = vmul.f32 %v5098_v41, %v2591_v55 }
 0x608   : > { %v3908_v36 = vpop.eup %3907  ;;  %v2578_v34 = vmul.f32 %v3906_v9, %v2480_v35  ;;  %v2572_v24 = vmul.f32 %v5101_v5, %v2571_v38  ;;  %vm2584_vm1 = vweird.f32 %v3906_v9 }
 0x609   : > { %v2706_v29 = vpack.c.bf16 %v5116_v39, %v5113_v33  ;;  %v2598_v48 = vmul.f32 %v3908_v36, %v2482_v21  ;;  %3909 = vrsqrt.f32 %v5118_v2  ;;  %v2596_v22 = vsel %vm5129_vm15, %v5098_v41, %v2592_v12  ;;  %vm2585_vm7 = vmor %vm2583_vm6, %vm2584_vm1 }
 0x60a   : > { %v2579_v44 = vmul.f32 %v3906_v9, %v2578_v34  ;;  %v2576_v60 = vsel %vm5133_vm0, %v5101_v5, %v2572_v24  ;;  %vm2604_vm5 = vweird.f32 %v3908_v36  ;;  %v2657_v52 = vmul.f32 %v2596_v22, %v4928_v53 }
 0x60b   : > { %3720 = vmatmul.msk.bf16.gmra.mxu0 %vm844_vm2, %v2706_v29  ;;  %v2599_v54 = vmul.f32 %v3908_v36, %v2598_v48  ;;  %v2655_v41 = vmul.f32 %v2576_v60, %v4931_v47  ;;  %vm2605_vm8 = vmor %vm2603_vm4, %vm2604_vm5  ;;  %vm2613_vm9 = vweird.f32 %v5118_v2 }
 0x60c   : > { %v2580_v1 = vmul.f32 0.5, %v2579_v44  ;;  %v2448_v26 = vpop.xlane.xlu2 %2447  ;;  %v2454_v23 = vpop.xlane.xlu1 %2453  ;;  %v2677_v38 = vmul.f32 %v4966_v49, %v2657_v52 }
 0x60d   : > { %v2600_v7 = vmul.f32 0.5, %v2599_v54  ;;  %v2468_v10 = vmul.f32 %v2448_v26, %v4803_v61  ;;  %v2470_v37 = vmul.f32 %v2454_v23, %v4803_v61  ;;  %v2764_v16 = vpop.f32.mrf.mxu0  ;;  %v2675_v11 = vmul.f32 %v4966_v49, %v2655_v41 }
 0x60e   : > { %v2581_v57 = vsub.f32 1.5, %v2580_v1  ;;  %v2765_v18 = vadd.f32 %v5156_v40, %v2764_v16 }
 0x60f   : > { %v5145_v17 = vpop.eup %3909  ;;  %v2601_v58 = vsub.f32 1.5, %v2600_v7  ;;  %v5147_v19 = vadd.f32 1e-05, %v2468_v10  ;;  %v5149_v56 = vadd.f32 1e-05, %v2470_v37  ;;  %v5182_v0 = vadd.f32 %v4983_v31, %v2675_v11 }
 0x610   : > { %v2582_v51 = vmul.f32 %v3906_v9, %v2581_v57  ;;  %v2608_v5 = vmul.f32 %v5145_v17, %v5118_v2  ;;  %vm2614_vm10 = vweird.f32 %v5145_v17  ;;  %v2804_v12 = vmax.f32 %v2765_v18, 0.0 }
 0x611   : > { %v2602_v25 = vmul.f32 %v3908_v36, %v2601_v58  ;;  %3911 = vrsqrt.f32 %v5147_v19  ;;  %v5186_v2 = vadd.f32 %v4983_v31, %v2677_v38  ;;  %vm5188_vm12 = vmor %vm2613_vm9, %vm2614_vm10  ;;  %vm2623_vm13 = vweird.f32 %v5147_v19 }
 0x612   : > { %v2609_v35 = vmul.f32 %v5145_v17, %v2608_v5  ;;  %3913 = vrsqrt.f32 %v5149_v56  ;;  %v2586_v14 = vsel %vm2585_vm7, %v3906_v9, %v2582_v51  ;;  %vm2643_vm4 = vweird.f32 %v5149_v56 }
 0x613   : > { %v2656_v45 = vmul.f32 %v2586_v14, %v4960_v59  ;;  %v2606_v27 = vsel %vm2605_vm8, %v3908_v36, %v2602_v25 }
 0x614   : > { %v2610_v13 = vmul.f32 0.5, %v2609_v35  ;;  %v2451_v47 = vpop.xlane.xlu0 %2450  ;;  %v2658_v46 = vmul.f32 %v2606_v27, %v4957_v30 }
 0x615   : > { %v2469_v53 = vmul.f32 %v2451_v47, %v4803_v61  ;;  %v2766_v21 = vpop.f32.mrf.mxu0  ;;  %v2676_v55 = vmul.f32 %v4966_v49, %v2656_v45 }
 0x616   : > { %v2611_v34 = vsub.f32 1.5, %v2610_v13  ;;  %v2767_v9 = vadd.f32 %v5156_v40, %v2766_v21  ;;  %v2678_v59 = vmul.f32 %v4966_v49, %v2658_v46 }
 0x617   : > { %v3912_v36 = vpop.eup %3911  ;;  %v2485_v29 = vadd.f32 1e-05, %v2469_v53  ;;  %v5176_v30 = vadd.f32 %v4983_v31, %v2676_v55 }
 0x618   : > { %v5178_v24 = vpop.eup %3913  ;;  %v2618_v48 = vmul.f32 %v3912_v36, %v5147_v19  ;;  %v2805_v44 = vmax.f32 %v2767_v9, 0.0  ;;  %v2612_v54 = vmul.f32 %v5145_v17, %v2611_v34  ;;  %v5195_v7 = vadd.f32 %v4983_v31, %v2678_v59 }
 0x619   : > { %3915 = vrsqrt.f32 %v2485_v29  ;;  %v2707_v23 = vpack.c.bf16 %v5176_v30, %v5182_v0  ;;  %v2638_v10 = vmul.f32 %v5178_v24, %v5149_v56  ;;  %vm2624_vm14 = vweird.f32 %v3912_v36 }
 0x61a   : > { %v2619_v1 = vmul.f32 %v3912_v36, %v2618_v48  ;;  %v2820_v26 = vpack.c.bf16 %v2805_v44, %v2804_v12  ;;  %v2708_v16 = vpack.c.bf16 %v5195_v7, %v5186_v2  ;;  %v2616_v57 = vsel %vm5188_vm12, %v5145_v17, %v2612_v54  ;;  %vm2625_vm15 = vmor %vm2623_vm13, %vm2624_vm14 }
 0x61b   : > { %3721 = vmatmul.msk.bf16.gmra.mxu0 %vm844_vm2, %v2707_v23  ;;  %v2639_v51 = vmul.f32 %v5178_v24, %v2638_v10  ;;  %v2659_v25 = vmul.f32 %v2616_v57, %v4993_v62  ;;  %vm2633_vm0 = vweird.f32 %v2485_v29  ;;  %vm2644_vm5 = vweird.f32 %v5178_v24 }
 0x61c   : > { %v2620_v37 = vmul.f32 0.5, %v2619_v1  ;;  %3741 = vmatmul.msk.bf16.vlgmr.msra.gmra.mxu1 %vm2864_vm11, %v2820_v26  ;;  %3722 = vmatmul.msk.bf16.vlgmr.msra.gmra.mxu3 %vm844_vm2, %v2708_v16  ;;  %vm2645_vm7 = vmor %vm2643_vm4, %vm2644_vm5 }
 0x61d   : > { %v2769_v60 = vpop.f32.mrf.mxu0  ;;  %v2640_v14 = vmul.f32 0.5, %v2639_v51  ;;  %v2679_v19 = vmul.f32 %v4966_v49, %v2659_v25 }
 0x61e   : > { %v2621_v22 = vsub.f32 1.5, %v2620_v37  ;;  %v2770_v27 = vadd.f32 %v5156_v40, %v2769_v60 }
 0x61f   : > { %v3916_v58 = vpop.eup %3915  ;;  %v2641_v46 = vsub.f32 1.5, %v2640_v14 }
 0x620   : > { %v2622_v5 = vmul.f32 %v3912_v36, %v2621_v22  ;;  %v2628_v41 = vmul.f32 %v3916_v58, %v2485_v29  ;;  %vm2634_vm1 = vweird.f32 %v3916_v58  ;;  %v2806_v53 = vmax.f32 %v2770_v27, 0.0 }
 0x621   : > { %vm2635_vm6 = vmor %vm2633_vm0, %vm2634_vm1  ;;  %v2642_v9 = vmul.f32 %v5178_v24, %v2641_v46 }
 0x622   : > { %v2629_v52 = vmul.f32 %v3916_v58, %v2628_v41  ;;  %v2626_v35 = vsel %vm2625_vm15, %v3912_v36, %v2622_v5 }
 0x623   : > { %v2660_v45 = vmul.f32 %v2626_v35, %v5026_v28  ;;  %v5219_v28 = vadd.f32 %v4983_v31, %v2679_v19  ;;  %v2646_v29 = vsel %vm2645_vm7, %v5178_v24, %v2642_v9 }
 0x624   : > { %v2630_v17 = vmul.f32 0.5, %v2629_v52  ;;  %v2662_v48 = vmul.f32 %v2646_v29, %v5023_v15 }
 0x625   : > { %v2771_v13 = vpop.f32.mrf.mxu0  ;;  %v2680_v18 = vmul.f32 %v4966_v49, %v2660_v45 }
 0x626   : > { %v2631_v47 = vsub.f32 1.5, %v2630_v17  ;;  %v2772_v11 = vadd.f32 %v5156_v40, %v2771_v13  ;;  %v2682_v1 = vmul.f32 %v4966_v49, %v2662_v48 }
 0x627   : > { %v5216_v62 = vadd.f32 %v4983_v31, %v2680_v18 }
 0x628   : > { %v2807_v21 = vmax.f32 %v2772_v11, 0.0  ;;  %v2632_v55 = vmul.f32 %v3916_v58, %v2631_v47  ;;  %v5239_v24 = vadd.f32 %v4983_v31, %v2682_v1 }
 0x629   : > { %v2709_v34 = vpack.c.bf16 %v5216_v62, %v5219_v28 }
 0x62a   : > { %v2821_v38 = vpack.c.bf16 %v2807_v21, %v2806_v53  ;;  %v2636_v36 = vsel %vm2635_vm6, %v3916_v58, %v2632_v55 }
 0x62b   : > { %v2661_v56 = vmul.f32 %v2636_v36, %v5044_v3 }
 0x62c   : > { %3742 = vmatmul.msk.bf16.gmra.mxu1 %vm2864_vm11, %v2821_v38  ;;  %3723 = vmatmul.msk.bf16.gmra.mxu3 %vm844_vm2, %v2709_v34 }
 0x62d   : > { %v2774_v59 = vpop.f32.mrf.mxu0  ;;  %v2681_v44 = vmul.f32 %v4966_v49, %v2661_v56 }
 0x62e   : > { %v2775_v12 = vadd.f32 %v5156_v40, %v2774_v59 }
 0x62f   : > { %v5236_v10 = vadd.f32 %v4983_v31, %v2681_v44  ;;  %v5251_v31 = vld [vmem:[%s5728_s2] ss:$0 sm:$0xff] }
 0x630   : > { %v2808_v26 = vmax.f32 %v2775_v12, 0.0 }
 0x631   : > { %v2710_v15 = vpack.c.bf16 %v5239_v24, %v5236_v10 }
 0x635   : > { %v2776_v54 = vpop.f32.mrf.mxu0 }
 0x636   : > { %v2777_v4 = vadd.f32 %v5156_v40, %v2776_v54 }
 0x638   : > { %v2809_v23 = vmax.f32 %v2777_v4, 0.0 }
 0x63a   : > { %v2822_v37 = vpack.c.bf16 %v2809_v23, %v2808_v26 }
 0x63c   : > { %3743 = vmatmul.msk.bf16.gmra.mxu1 %vm2864_vm11, %v2822_v37  ;;  %3724 = vmatmul.msk.bf16.gmra.mxu3 %vm844_vm2, %v2710_v15 }
 0x688   : > { %v2779_v3 = vpop.f32.mrf.mxu0 }
 0x689   : > { %v2780_v16 = vadd.f32 %v5156_v40, %v2779_v3 }
 0x68b   : > { %v2810_v57 = vmax.f32 %v2780_v16, 0.0 }
 0x690   : > { %v2781_v49 = vpop.f32.mrf.mxu0 }
 0x691   : > { %v2782_v60 = vadd.f32 %v5156_v40, %v2781_v49 }
 0x693   : > { %v2811_v22 = vmax.f32 %v2782_v60, 0.0 }
 0x695   : > { %v2823_v58 = vpack.c.bf16 %v2811_v22, %v2810_v57 }
 0x697   : > { %3744 = vmatmul.msk.bf16.gmra.mxu1 %vm2864_vm11, %v2823_v58 }
 0x698   : > { %v2784_v51 = vpop.f32.mrf.mxu0 }
 0x699   : > { %v2898_v5 = vpop.f32.mrf.mxu1  ;;  %v2785_v35 = vadd.f32 %v5156_v40, %v2784_v51 }
 0x69a   : > { %v2899_v41 = vadd.f32 %v5251_v31, %v2898_v5 }
 0x69b   : > { %v2812_v13 = vmax.f32 %v2785_v35, 0.0 }
 0x69c   : > { %v5255_v25 = vadd.f32 %v2899_v41, %v4997_v63 }
 0x69e   : > { %v2954_v52 = vsel %vm844_vm2, %v5255_v25, 0.0 }
 0x69f   : > { %2955 = vadd.xlane.f32.xlu2 %v2954_v52  ;;  %v2789_v14 = vpop.f32.mrf.mxu3 }
 0x6a0   : > { %v2786_v45 = vpop.f32.mrf.mxu0  ;;  %v2790_v34 = vadd.f32 %v5156_v40, %v2789_v14 }
 0x6a1   : > { %v2787_v17 = vadd.f32 %v5156_v40, %v2786_v45  ;;  %v2900_v27 = vpop.f32.mrf.mxu1 }
 0x6a2   : > { %v2901_v19 = vadd.f32 %v5251_v31, %v2900_v27  ;;  %v2814_v56 = vmax.f32 %v2790_v34, 0.0 }
 0x6a3   : > { %v2813_v18 = vmax.f32 %v2787_v17, 0.0 }
 0x6a4   : > { %v5263_v47 = vadd.f32 %v2901_v19, %v5000_v8 }
 0x6a5   : > { %v2824_v63 = vpack.c.bf16 %v2813_v18, %v2812_v13 }
 0x6a6   : > { %v2957_v11 = vsel %vm844_vm2, %v5263_v47, 0.0 }
 0x6a7   : > { %2958 = vadd.xlane.f32.xlu0 %v2957_v11  ;;  %3745 = vmatmul.msk.bf16.vlgmr.msra.gmra.mxu2 %vm2864_vm11, %v2824_v63  ;;  %v2791_v46 = vpop.f32.mrf.mxu3 }
 0x6a8   : > { %v2792_v38 = vadd.f32 %v5156_v40, %v2791_v46 }
 0x6a9   : > { %v2903_v53 = vpop.f32.mrf.mxu1 }
 0x6aa   : > { %v2904_v21 = vadd.f32 %v5251_v31, %v2903_v53  ;;  %v2815_v59 = vmax.f32 %v2792_v38, 0.0 }
 0x6ac   : > { %v5270_v55 = vadd.f32 %v2904_v21, %v5041_v6  ;;  %v2825_v12 = vpack.c.bf16 %v2815_v59, %v2814_v56 }
 0x6ae   : > { %v2960_v8 = vsel %vm844_vm2, %v5270_v55, 0.0 }
 0x6af   : > { %2961 = vadd.xlane.f32.xlu1 %v2960_v8  ;;  %v2794_v9 = vpop.f32.mrf.mxu3 }
 0x6b0   : > { %v2795_v23 = vadd.f32 %v5156_v40, %v2794_v9 }
 0x6b1   : > { %v2905_v36 = vpop.f32.mrf.mxu1 }
 0x6b2   : > { %v2906_v29 = vadd.f32 %v5251_v31, %v2905_v36  ;;  %v2816_v49 = vmax.f32 %v2795_v23, 0.0 }
 0x6b4   : > { %v5278_v48 = vadd.f32 %v2906_v29, %v5047_v20 }
 0x6b6   : > { %v2963_v6 = vsel %vm844_vm2, %v5278_v48, 0.0 }
 0x6b7   : > { %2964 = vadd.xlane.f32.xlu2 %v2963_v6  ;;  %3746 = vmatmul.msk.bf16.gmra.mxu2 %vm2864_vm11, %v2825_v12  ;;  %v2796_v44 = vpop.f32.mrf.mxu3  ;;  %v3362_v6 = vld [vmem:[#allocation3] sm:$0xff] }
 0x6b8   : > { %v2797_v26 = vadd.f32 %v5156_v40, %v2796_v44 }
 0x6b9   : > { %v2908_v54 = vpop.f32.mrf.mxu1 }
 0x6ba   : > { %v2909_v4 = vadd.f32 %v5251_v31, %v2908_v54  ;;  %v2817_v15 = vmax.f32 %v2797_v26, 0.0  ;;  %v3364_v54 = vmul.f32 0.25, %v3362_v6 }
 0x6bc   : > { %v5285_v1 = vadd.f32 %v2909_v4, %v5062_v42  ;;  %v2826_v57 = vpack.c.bf16 %v2817_v15, %v2816_v49  ;;  %v3366_v4 = vmul.f32 -1e+10, %v4401_v32  ;;  %v3367_v49 = vmul.f32 -1e+10, %v4482_v43 }
 0x6be   : > { %v2966_v20 = vsel %vm844_vm2, %v5285_v1, 0.0 }
 0x6bf   : > { %2967 = vadd.xlane.f32.xlu0 %v2966_v20  ;;  %v2799_v37 = vpop.f32.mrf.mxu3  ;;  %v5350_v20 = vadd.f32 %v3366_v4, %v3364_v54 }
 0x6c0   : > { %v2800_v51 = vadd.f32 %v5156_v40, %v2799_v37  ;;  %v3363_v37 = vld [vmem:[#allocation3 + $0x8] sm:$0xff] }
 0x6c1   : > { %v2910_v3 = vpop.f32.mrf.mxu1  ;;  %v3365_v32 = vmul.f32 0.25, %v3363_v37 }
 0x6c2   : > { %v2911_v16 = vadd.f32 %v5251_v31, %v2910_v3  ;;  %v2818_v41 = vmax.f32 %v2800_v51, 0.0 }
 0x6c4   : > { %v5293_v60 = vadd.f32 %v2911_v16, %v5065_v50 }
 0x6c6   : > { %v2969_v42 = vsel %vm844_vm2, %v5293_v60, 0.0 }
 0x6c7   : > { %2970 = vadd.xlane.f32.xlu1 %v2969_v42  ;;  %3747 = vmatmul.msk.bf16.gmra.mxu2 %vm2864_vm11, %v2826_v57  ;;  %v2801_v22 = vpop.f32.mrf.mxu3 }
 0x6c8   : > { %v2802_v58 = vadd.f32 %v5156_v40, %v2801_v22 }
 0x6ca   : > { %v2819_v5 = vmax.f32 %v2802_v58, 0.0 }
 0x6cc   : > { %v2827_v52 = vpack.c.bf16 %v2819_v5, %v2818_v41  ;;  %v5365_v5 = vadd.f32 %v3367_v49, %v3365_v32 }
 0x6d7   : > { %3748 = vmatmul.msk.bf16.gmra.mxu2 %vm2864_vm11, %v2827_v52 }
 0x712   : > { %v2956_v42 = vpop.xlane.xlu2 %2955 }
 0x714   : > { %v2913_v35 = vpop.f32.mrf.mxu1 }
 0x715   : > { %v2914_v50 = vadd.f32 %v5251_v31, %v2913_v35 }
 0x717   : > { %v5303_v14 = vadd.f32 %v2914_v50, %v5113_v33 }
 0x719   : > { %v2972_v45 = vsel %vm844_vm2, %v5303_v14, 0.0 }
 0x71a   : > { %2973 = vadd.xlane.f32.xlu2 %v2972_v45  ;;  %v3373_v45 = vsel %vm1156_vm3, %v5365_v5, -inf }
 0x71c   : > { %v2915_v17 = vpop.f32.mrf.mxu1 }
 0x71d   : > { %v2916_v27 = vadd.f32 %v5251_v31, %v2915_v17 }
 0x71f   : > { %v5309_v40 = vadd.f32 %v2916_v27, %v5116_v39 }
 0x721   : > { %v2975_v19 = vsel %vm844_vm2, %v5309_v40, 0.0 }
 0x722   : > { %2976 = vadd.xlane.f32.xlu0 %v2975_v19  ;;  %v2962_v58 = vpop.xlane.xlu1 %2961 }
 0x723   : > { %v3004_v52 = vmul.f32 %v2962_v58, %v4803_v61 }
 0x725   : > { %v5382_v27 = vsub.f32 %v5270_v55, %v3004_v52 }
 0x72a   : > { %v2918_v13 = vpop.f32.mrf.mxu2  ;;  %v2965_v19 = vpop.xlane.xlu2 %2964 }
 0x72b   : > { %v2919_v18 = vadd.f32 %v5251_v31, %v2918_v13 }
 0x72d   : > { %v5315_v33 = vadd.f32 %v2919_v18, %v5182_v0 }
 0x72f   : > { %v2978_v63 = vsel %vm844_vm2, %v5315_v33, 0.0 }
 0x730   : > { %2979 = vadd.xlane.f32.xlu1 %v2978_v63  ;;  %v3005_v63 = vmul.f32 %v2965_v19, %v4803_v61 }
 0x732   : > { %v2920_v11 = vpop.f32.mrf.mxu2 }
 0x733   : > { %v2921_v46 = vadd.f32 %v5251_v31, %v2920_v11  ;;  %v3036_v11 = vmul.f32 %v5382_v27, %v5382_v27 }
 0x735   : > { %v5321_v39 = vadd.f32 %v2921_v46, %v5176_v30  ;;  %v5399_v46 = vsub.f32 %v5278_v48, %v3005_v63 }
 0x737   : > { %v2981_v53 = vsel %vm844_vm2, %v5321_v39, 0.0 }
 0x738   : > { %2982 = vadd.xlane.f32.xlu2 %v2981_v53 }
 0x73a   : > { %v2923_v21 = vpop.f32.mrf.mxu2  ;;  %v2971_v18 = vpop.xlane.xlu1 %2970 }
 0x73b   : > { %v2924_v38 = vadd.f32 %v5251_v31, %v2923_v21 }
 0x73d   : > { %v5327_v0 = vadd.f32 %v2924_v38, %v5186_v2  ;;  %v3056_v38 = vsel %vm844_vm2, %v3036_v11, 0.0 }
 0x73f   : > { %v2984_v8 = vsel %vm844_vm2, %v5327_v0, 0.0 }
 0x740   : > { %2985 = vadd.xlane.f32.xlu0 %v2984_v8 }
 0x742   : > { %v2925_v34 = vpop.f32.mrf.mxu2 }
 0x743   : > { %v2926_v9 = vadd.f32 %v5251_v31, %v2925_v34  ;;  %v3037_v34 = vmul.f32 %v5399_v46, %v5399_v46 }
 0x745   : > { %v5333_v30 = vadd.f32 %v2926_v9, %v5195_v7  ;;  %v3059_v48 = vsel %vm844_vm2, %v3037_v34, 0.0 }
 0x747   : > { %v2987_v59 = vsel %vm844_vm2, %v5333_v30, 0.0 }
 0x748   : > { %2988 = vadd.xlane.f32.xlu1 %v2987_v59 }
 0x74a   : > { %v2928_v36 = vpop.f32.mrf.mxu2 }
 0x74b   : > { %v2929_v29 = vadd.f32 %v5251_v31, %v2928_v36 }
 0x74d   : > { %v5339_v2 = vadd.f32 %v2929_v29, %v5219_v28  ;;  %v2959_v28 = vpop.xlane.xlu0 %2958 }
 0x74e   : > { %v3003_v3 = vmul.f32 %v2959_v28, %v4803_v61 }
 0x74f   : > { %v2990_v56 = vsel %vm844_vm2, %v5339_v2, 0.0 }
 0x750   : > { %2991 = vadd.xlane.f32.xlu2 %v2990_v56  ;;  %v5363_v22 = vsub.f32 %v5263_v47, %v3003_v3 }
 0x752   : > { %v2930_v12 = vpop.f32.mrf.mxu2  ;;  %v3035_v50 = vmul.f32 %v5363_v22, %v5363_v22 }
 0x753   : > { %v2931_v44 = vadd.f32 %v5251_v31, %v2930_v12 }
 0x755   : > { %v5345_v7 = vadd.f32 %v2931_v44, %v5216_v62  ;;  %v3370_v62 = vsel %vm1156_vm3, %v5350_v20, -inf  ;;  %v2968_v51 = vpop.xlane.xlu0 %2967 }
 0x756   : > { %v3006_v35 = vmul.f32 %v2968_v51, %v4803_v61 }
 0x757   : > { %v2993_v26 = vsel %vm844_vm2, %v5345_v7, 0.0 }
 0x758   : > { %2994 = vadd.xlane.f32.xlu0 %v2993_v26  ;;  %v5387_v13 = vsub.f32 %v5285_v1, %v3006_v35 }
 0x75a   : > { %v2933_v23 = vpop.f32.mrf.mxu2  ;;  %v3038_v1 = vmul.f32 %v5387_v13, %v5387_v13 }
 0x75b   : > { %v2934_v15 = vadd.f32 %v5251_v31, %v2933_v23 }
 0x75c   : > { %v3062_v8 = vsel %vm844_vm2, %v3038_v1, 0.0 }
 0x75d   : > { %v5357_v16 = vadd.f32 %v2934_v15, %v5236_v10  ;;  %v3002_v10 = vmul.f32 %v2956_v42, %v4803_v61 }
 0x75f   : > { %v2996_v57 = vsel %vm844_vm2, %v5357_v16, 0.0  ;;  %v5379_v17 = vsub.f32 %v5255_v25, %v3002_v10  ;;  %v3007_v25 = vmul.f32 %v2971_v18, %v4803_v61 }
 0x760   : > { %3371 = vmax.xlane.f32.xlu0 %v3370_v62  ;;  %2997 = vadd.xlane.f32.xlu1 %v2996_v57 }
 0x761   : > { %v3034_v55 = vmul.f32 %v5379_v17, %v5379_v17  ;;  %v5402_v53 = vsub.f32 %v5293_v60, %v3007_v25 }
 0x762   : > { %v2935_v41 = vpop.f32.mrf.mxu2 }
 0x763   : > { %v2936_v43 = vadd.f32 %v5251_v31, %v2935_v41  ;;  %v3050_v21 = vsel %vm844_vm2, %v3034_v55, 0.0  ;;  %v3039_v9 = vmul.f32 %v5402_v53, %v5402_v53 }
 0x765   : > { %v5374_v47 = vadd.f32 %v2936_v43, %v5239_v24  ;;  %v3053_v24 = vsel %vm844_vm2, %v3035_v50, 0.0  ;;  %v3065_v60 = vsel %vm844_vm2, %v3039_v9, 0.0 }
 0x767   : > { %v2999_v31 = vsel %vm844_vm2, %v5374_v47, 0.0 }
 0x768   : > { %3000 = vadd.xlane.f32.xlu2 %v2999_v31  ;;  %3374 = vmax.xlane.f32.xlu1 %v3373_v45 }
 0x769   : > { %3054 = vadd.xlane.f32.xlu0 %v3053_v24 }
 0x770   : > { %3051 = vadd.xlane.f32.xlu2 %v3050_v21  ;;  %3057 = vadd.xlane.f32.xlu1 %v3056_v38 }
 0x771   : > { %3063 = vadd.xlane.f32.xlu0 %v3062_v8 }
 0x778   : > { %3060 = vadd.xlane.f32.xlu2 %v3059_v48  ;;  %3066 = vadd.xlane.f32.xlu1 %v3065_v60 }
 0x78d   : > { %v2974_v59 = vpop.xlane.xlu2 %2973 }
 0x78e   : > { %v3008_v36 = vmul.f32 %v2974_v59, %v4803_v61 }
 0x790   : > { %v5415_v29 = vsub.f32 %v5303_v14, %v3008_v36 }
 0x792   : > { %v3040_v56 = vmul.f32 %v5415_v29, %v5415_v29 }
 0x794   : > { %v3068_v12 = vsel %vm844_vm2, %v3040_v56, 0.0 }
 0x795   : > { %3069 = vadd.xlane.f32.xlu2 %v3068_v12  ;;  %v2977_v6 = vpop.xlane.xlu0 %2976 }
 0x796   : > { %v3009_v44 = vmul.f32 %v2977_v6, %v4803_v61 }
 0x798   : > { %v5422_v54 = vsub.f32 %v5309_v40, %v3009_v44 }
 0x79a   : > { %v3041_v4 = vmul.f32 %v5422_v54, %v5422_v54 }
 0x79c   : > { %v3071_v26 = vsel %vm844_vm2, %v3041_v4, 0.0 }
 0x79d   : > { %3072 = vadd.xlane.f32.xlu0 %v3071_v26 }
 0x7a3   : > { %v2980_v14 = vpop.xlane.xlu1 %2979 }
 0x7a4   : > { %v3010_v28 = vmul.f32 %v2980_v14, %v4803_v61 }
 0x7a6   : > { %v5429_v23 = vsub.f32 %v5315_v33, %v3010_v28 }
 0x7a8   : > { %v3042_v37 = vmul.f32 %v5429_v23, %v5429_v23 }
 0x7aa   : > { %v3074_v15 = vsel %vm844_vm2, %v3042_v37, 0.0 }
 0x7ab   : > { %v2983_v3 = vpop.xlane.xlu2 %2982  ;;  %3075 = vadd.xlane.f32.xlu1 %v3074_v15 }
 0x7ac   : > { %v3011_v40 = vmul.f32 %v2983_v3, %v4803_v61 }
 0x7ae   : > { %v5436_v62 = vsub.f32 %v5321_v39, %v3011_v40 }
 0x7b0   : > { %v3043_v32 = vmul.f32 %v5436_v62, %v5436_v62 }
 0x7b2   : > { %v3077_v49 = vsel %vm844_vm2, %v3043_v32, 0.0 }
 0x7b3   : > { %3078 = vadd.xlane.f32.xlu2 %v3077_v49  ;;  %v2986_v33 = vpop.xlane.xlu0 %2985 }
 0x7b4   : > { %v3012_v57 = vmul.f32 %v2986_v33, %v4803_v61 }
 0x7b6   : > { %v5443_v42 = vsub.f32 %v5327_v0, %v3012_v57 }
 0x7b8   : > { %v3044_v58 = vmul.f32 %v5443_v42, %v5443_v42 }
 0x7ba   : > { %v3080_v51 = vsel %vm844_vm2, %v3044_v58, 0.0 }
 0x7bb   : > { %v2989_v41 = vpop.xlane.xlu1 %2988  ;;  %3081 = vadd.xlane.f32.xlu0 %v3080_v51 }
 0x7bc   : > { %v3013_v39 = vmul.f32 %v2989_v41, %v4803_v61 }
 0x7be   : > { %v5450_v10 = vsub.f32 %v5333_v30, %v3013_v39 }
 0x7c0   : > { %v3045_v52 = vmul.f32 %v5450_v10, %v5450_v10 }
 0x7c2   : > { %v3083_v43 = vsel %vm844_vm2, %v3045_v52, 0.0 }
 0x7c3   : > { %v2992_v35 = vpop.xlane.xlu2 %2991  ;;  %3084 = vadd.xlane.f32.xlu1 %v3083_v43 }
 0x7c4   : > { %v3014_v0 = vmul.f32 %v2992_v35, %v4803_v61 }
 0x7c6   : > { %v5457_v50 = vsub.f32 %v5339_v2, %v3014_v0 }
 0x7c8   : > { %v3046_v45 = vmul.f32 %v5457_v50, %v5457_v50 }
 0x7ca   : > { %v3086_v31 = vsel %vm844_vm2, %v3046_v45, 0.0 }
 0x7cb   : > { %3087 = vadd.xlane.f32.xlu2 %v3086_v31  ;;  %v2995_v30 = vpop.xlane.xlu0 %2994 }
 0x7cc   : > { %v3015_v19 = vmul.f32 %v2995_v30, %v4803_v61 }
 0x7ce   : > { %v5464_v18 = vsub.f32 %v5345_v7, %v3015_v19 }
 0x7d0   : > { %v3047_v24 = vmul.f32 %v5464_v18, %v5464_v18 }
 0x7d2   : > { %v3089_v63 = vsel %vm844_vm2, %v3047_v24, 0.0 }
 0x7d3   : > { %v2998_v25 = vpop.xlane.xlu1 %2997  ;;  %3090 = vadd.xlane.f32.xlu0 %v3089_v63  ;;  %v3372_v2 = vpop.xlane.xlu0 %3371 }
 0x7d4   : > { %v3016_v55 = vmul.f32 %v2998_v25, %v4803_v61  ;;  %v3376_v11 = vsub.f32 %v5350_v20, %v3372_v2  ;;  %v5510_v25 = vld [vmem:[%s5729_s13] ss:$0 sm:$0xff]  ;;  %s5734_s13 = sld [smem:[#allocation15_spill]] }
 0x7d6   : > { %v5472_v1 = vsub.f32 %v5357_v16, %v3016_v55  ;;  %v3378_v21 = vmul.f32 1.442695, %v3376_v11 }
 0x7d8   : > { %3917 = vpow2.f32 %v3378_v21  ;;  %v3048_v7 = vmul.f32 %v5472_v1, %v5472_v1 }
 0x7da   : > { %v3092_v38 = vsel %vm844_vm2, %v3048_v7, 0.0  ;;  %v5517_v7 = vld [vmem:[%s5730_s27] ss:$0 sm:$0xff] }
 0x7db   : > { %v3001_v8 = vpop.xlane.xlu2 %3000  ;;  %3093 = vadd.xlane.f32.xlu1 %v3092_v38  ;;  %v3375_v34 = vpop.xlane.xlu1 %3374 }
 0x7dc   : > { %v3017_v9 = vmul.f32 %v3001_v8, %v4803_v61  ;;  %v3377_v48 = vsub.f32 %v5365_v5, %v3375_v34  ;;  %v3055_v60 = vpop.xlane.xlu0 %3054 }
 0x7dd   : > { %v3099_v20 = vmul.f32 %v3055_v60, %v4803_v61 }
 0x7de   : > { %v5480_v59 = vpop.eup %3917  ;;  %v5483_v16 = vsub.f32 %v5374_v47, %v3017_v9  ;;  %v3380_v36 = vmul.f32 1.442695, %v3377_v48 }
 0x7df   : > { %v3115_v56 = vadd.f32 1e-05, %v3099_v20  ;;  %v3382_v12 = vsel %vm1156_vm3, %v5480_v59, 0.0 }
 0x7e0   : > { %3919 = vpow2.f32 %v3380_v36  ;;  %3383 = vadd.xlane.f32.xlu0 %v3382_v12  ;;  %v3049_v6 = vmul.f32 %v5483_v16, %v5483_v16 }
 0x7e1   : > { %3921 = vrsqrt.f32 %v3115_v56  ;;  %vm3146_vm9 = vweird.f32 %v3115_v56 }
 0x7e2   : > { %v3095_v5 = vsel %vm844_vm2, %v3049_v6, 0.0 }
 0x7e3   : > { %3096 = vadd.xlane.f32.xlu2 %v3095_v5  ;;  %v3052_v44 = vpop.xlane.xlu2 %3051  ;;  %v3058_v4 = vpop.xlane.xlu1 %3057 }
 0x7e4   : > { %v3098_v26 = vmul.f32 %v3052_v44, %v4803_v61  ;;  %v3100_v47 = vmul.f32 %v3058_v4, %v4803_v61  ;;  %v3064_v14 = vpop.xlane.xlu0 %3063 }
 0x7e5   : > { %v3102_v28 = vmul.f32 %v3064_v14, %v4803_v61 }
 0x7e6   : > { %v5493_v37 = vpop.eup %3919  ;;  %v3114_v15 = vadd.f32 1e-05, %v3098_v26  ;;  %v3116_v3 = vadd.f32 1e-05, %v3100_v47 }
 0x7e7   : > { %v3922_v40 = vpop.eup %3921  ;;  %v5495_v32 = vadd.f32 1e-05, %v3102_v28  ;;  %v3385_v49 = vsel %vm1156_vm3, %v5493_v37, 0.0 }
 0x7e8   : > { %v3141_v33 = vmul.f32 %v3922_v40, %v3115_v56  ;;  %3923 = vrsqrt.f32 %v3114_v15  ;;  %3386 = vadd.xlane.f32.xlu1 %v3385_v49  ;;  %vm3147_vm8 = vweird.f32 %v3922_v40  ;;  %vm3136_vm12 = vweird.f32 %v3114_v15 }
 0x7e9   : > { %3925 = vrsqrt.f32 %v3116_v3  ;;  %vm3148_vm10 = vmor %vm3146_vm9, %vm3147_vm8  ;;  %vm3156_vm0 = vweird.f32 %v3116_v3  ;;  %vm3176_vm1 = vweird.f32 %v5495_v32 }
 0x7ea   : > { %v3142_v57 = vmul.f32 %v3922_v40, %v3141_v33  ;;  %3927 = vrsqrt.f32 %v5495_v32 }
 0x7eb   : > { %v3061_v58 = vpop.xlane.xlu2 %3060  ;;  %v3067_v51 = vpop.xlane.xlu1 %3066 }
 0x7ec   : > { %v3143_v41 = vmul.f32 0.5, %v3142_v57  ;;  %v3101_v39 = vmul.f32 %v3061_v58, %v4803_v61  ;;  %v3103_v52 = vmul.f32 %v3067_v51, %v4803_v61 }
 0x7ee   : > { %v3924_v43 = vpop.eup %3923  ;;  %v3144_v35 = vsub.f32 1.5, %v3143_v41  ;;  %v5502_v0 = vadd.f32 1e-05, %v3101_v39  ;;  %v5504_v45 = vadd.f32 1e-05, %v3103_v52 }
 0x7ef   : > { %v3926_v31 = vpop.eup %3925  ;;  %v3131_v30 = vmul.f32 %v3924_v43, %v3114_v15  ;;  %vm3137_vm11 = vweird.f32 %v3924_v43 }
 0x7f0   : > { %v3928_v19 = vpop.eup %3927  ;;  %v3145_v24 = vmul.f32 %v3922_v40, %v3144_v35  ;;  %v3151_v63 = vmul.f32 %v3926_v31, %v3116_v3  ;;  %3929 = vrsqrt.f32 %v5502_v0  ;;  %vm3157_vm13 = vweird.f32 %v3926_v31  ;;  %vm3138_vm15 = vmor %vm3136_vm12, %vm3137_vm11 }
 0x7f1   : > { %v3132_v2 = vmul.f32 %v3924_v43, %v3131_v30  ;;  %v3171_v55 = vmul.f32 %v3928_v19, %v5495_v32  ;;  %3931 = vrsqrt.f32 %v5504_v45  ;;  %vm3177_vm14 = vweird.f32 %v3928_v19  ;;  %vm3158_vm4 = vmor %vm3156_vm0, %vm3157_vm13 }
 0x7f2   : > { %v3149_v11 = vsel %vm3148_vm10, %v3922_v40, %v3145_v24  ;;  %v3152_v21 = vmul.f32 %v3926_v31, %v3151_v63  ;;  %vm3178_vm5 = vmor %vm3176_vm1, %vm3177_vm14  ;;  %vm3166_vm7 = vweird.f32 %v5502_v0  ;;  %vm3186_vm10 = vweird.f32 %v5504_v45 }
 0x7f3   : > { %v3291_v38 = vmul.f32 %v3149_v11, %v5363_v22  ;;  %v3133_v8 = vmul.f32 0.5, %v3132_v2  ;;  %v3172_v34 = vmul.f32 %v3928_v19, %v3171_v55 }
 0x7f4   : > { %v3153_v9 = vmul.f32 0.5, %v3152_v21 }
 0x7f5   : > { %v3311_v48 = vmul.f32 %v5510_v25, %v3291_v38  ;;  %v3134_v60 = vsub.f32 1.5, %v3133_v8  ;;  %v3173_v20 = vmul.f32 0.5, %v3172_v34 }
 0x7f6   : > { %v3930_v36 = vpop.eup %3929  ;;  %v3154_v56 = vsub.f32 1.5, %v3153_v9 }
 0x7f7   : > { %v3331_v12 = vadd.f32 %v5517_v7, %v3311_v48  ;;  %v3135_v6 = vmul.f32 %v3924_v43, %v3134_v60  ;;  %v3174_v5 = vsub.f32 1.5, %v3173_v20  ;;  %v3161_v44 = vmul.f32 %v3930_v36, %v5502_v0  ;;  %v3932_v22 = vpop.eup %3931 }
 0x7f8   : > { %v3155_v4 = vmul.f32 %v3926_v31, %v3154_v56  ;;  %v3181_v28 = vmul.f32 %v3932_v22, %v5504_v45  ;;  %vm3167_vm6 = vweird.f32 %v3930_v36  ;;  %vm3187_vm8 = vweird.f32 %v3932_v22 }
 0x7f9   : > { %3347 = vst.msk [vmem:[%s5731_s25 + $0x8] sm:$0xff] %vm844_vm2, %v3331_v12  ;;  %v3139_v26 = vsel %vm3138_vm15, %v3924_v43, %v3135_v6  ;;  %v3175_v47 = vmul.f32 %v3928_v19, %v3174_v5  ;;  %v3162_v14 = vmul.f32 %v3930_v36, %v3161_v44  ;;  %vm3168_vm9 = vmor %vm3166_vm7, %vm3167_vm6 }
 0x7fa   : > { %v3290_v15 = vmul.f32 %v3139_v26, %v5379_v17  ;;  %v3159_v40 = vsel %vm3158_vm4, %v3926_v31, %v3155_v4  ;;  %v3182_v33 = vmul.f32 %v3932_v22, %v3181_v28  ;;  %vm3188_vm11 = vmor %vm3186_vm10, %vm3187_vm8 }
 0x7fb   : > { %v3292_v3 = vmul.f32 %v3159_v40, %v5382_v27  ;;  %v3179_v49 = vsel %vm3178_vm5, %v3928_v19, %v3175_v47  ;;  %v3163_v32 = vmul.f32 0.5, %v3162_v14 }
 0x7fc   : > { %v3310_v57 = vmul.f32 %v5510_v25, %v3290_v15  ;;  %v3294_v58 = vmul.f32 %v3179_v49, %v5387_v13  ;;  %v3183_v39 = vmul.f32 0.5, %v3182_v33 }
 0x7fd   : > { %v3312_v51 = vmul.f32 %v5510_v25, %v3292_v3  ;;  %v3164_v41 = vsub.f32 1.5, %v3163_v32 }
 0x7fe   : > { %v3330_v52 = vadd.f32 %v5517_v7, %v3310_v57  ;;  %v3314_v17 = vmul.f32 %v5510_v25, %v3294_v58  ;;  %v3184_v35 = vsub.f32 1.5, %v3183_v39 }
 0x7ff   : > { %v3332_v27 = vadd.f32 %v5517_v7, %v3312_v51  ;;  %v3165_v43 = vmul.f32 %v3930_v36, %v3164_v41 }
 0x800   : > { %3346 = vst.msk [vmem:[%s5731_s25] sm:$0xff] %vm844_vm2, %v3330_v52  ;;  %v3334_v13 = vadd.f32 %v5517_v7, %v3314_v17  ;;  %v3185_v0 = vmul.f32 %v3932_v22, %v3184_v35 }
 0x801   : > { %3348 = vst.msk [vmem:[%s5731_s25 + $0x10] sm:$0xff] %vm844_vm2, %v3332_v27  ;;  %v3169_v31 = vsel %vm3168_vm9, %v3930_v36, %v3165_v43 }
 0x802   : > { %3350 = vst.msk [vmem:[%s5731_s25 + $0x20] sm:$0xff] %vm844_vm2, %v3334_v13  ;;  %v3293_v30 = vmul.f32 %v3169_v31, %v5399_v46  ;;  %v3189_v19 = vsel %vm3188_vm11, %v3932_v22, %v3185_v0 }
 0x803   : > { %v3295_v63 = vmul.f32 %v3189_v19, %v5402_v53 }
 0x804   : > { %v3313_v24 = vmul.f32 %v5510_v25, %v3293_v30 }
 0x805   : > { %v3315_v55 = vmul.f32 %v5510_v25, %v3295_v63 }
 0x806   : > { %v3333_v2 = vadd.f32 %v5517_v7, %v3313_v24 }
 0x807   : > { %v3335_v46 = vadd.f32 %v5517_v7, %v3315_v55 }
 0x808   : > { %v3070_v11 = vpop.xlane.xlu2 %3069  ;;  %3349 = vst.msk [vmem:[%s5731_s25 + $0x18] sm:$0xff] %vm844_vm2, %v3333_v2 }
 0x809   : > { %v3104_v45 = vmul.f32 %v3070_v11, %v4803_v61  ;;  %3351 = vst.msk [vmem:[%s5731_s25 + $0x28] sm:$0xff] %vm844_vm2, %v3335_v46 }
 0x80b   : > { %v3120_v21 = vadd.f32 1e-05, %v3104_v45 }
 0x80d   : > { %3933 = vrsqrt.f32 %v3120_v21  ;;  %vm3196_vm13 = vweird.f32 %v3120_v21 }
 0x810   : > { %v3073_v53 = vpop.xlane.xlu0 %3072 }
 0x811   : > { %v3105_v38 = vmul.f32 %v3073_v53, %v4803_v61 }
 0x813   : > { %v3934_v8 = vpop.eup %3933  ;;  %v3121_v34 = vadd.f32 1e-05, %v3105_v38 }
 0x814   : > { %v3191_v9 = vmul.f32 %v3934_v8, %v3120_v21  ;;  %vm3197_vm12 = vweird.f32 %v3934_v8 }
 0x815   : > { %3935 = vrsqrt.f32 %v3121_v34  ;;  %vm3198_vm14 = vmor %vm3196_vm13, %vm3197_vm12  ;;  %vm3206_vm0 = vweird.f32 %v3121_v34 }
 0x816   : > { %v3192_v48 = vmul.f32 %v3934_v8, %v3191_v9 }
 0x818   : > { %v3193_v60 = vmul.f32 0.5, %v3192_v48 }
 0x81a   : > { %v3194_v20 = vsub.f32 1.5, %v3193_v60 }
 0x81b   : > { %v3936_v36 = vpop.eup %3935 }
 0x81c   : > { %v3195_v56 = vmul.f32 %v3934_v8, %v3194_v20  ;;  %v3201_v12 = vmul.f32 %v3936_v36, %v3121_v34  ;;  %vm3207_vm15 = vweird.f32 %v3936_v36 }
 0x81d   : > { %vm3208_vm1 = vmor %vm3206_vm0, %vm3207_vm15 }
 0x81e   : > { %v3199_v6 = vsel %vm3198_vm14, %v3934_v8, %v3195_v56  ;;  %v3202_v5 = vmul.f32 %v3936_v36, %v3201_v12  ;;  %v3076_v4 = vpop.xlane.xlu1 %3075 }
 0x81f   : > { %v3296_v44 = vmul.f32 %v3199_v6, %v5415_v29  ;;  %v3106_v47 = vmul.f32 %v3076_v4, %v4803_v61 }
 0x820   : > { %v3203_v22 = vmul.f32 0.5, %v3202_v5 }
 0x821   : > { %v3316_v26 = vmul.f32 %v5510_v25, %v3296_v44  ;;  %v3122_v15 = vadd.f32 1e-05, %v3106_v47 }
 0x822   : > { %v3204_v14 = vsub.f32 1.5, %v3203_v22 }
 0x823   : > { %v3336_v28 = vadd.f32 %v5517_v7, %v3316_v26  ;;  %3937 = vrsqrt.f32 %v3122_v15  ;;  %vm3216_vm5 = vweird.f32 %v3122_v15 }
 0x824   : > { %v3205_v40 = vmul.f32 %v3936_v36, %v3204_v14 }
 0x825   : > { %3352 = vst.msk [vmem:[%s5731_s25 + $0x30] sm:$0xff] %vm844_vm2, %v3336_v28 }
 0x826   : > { %v3209_v29 = vsel %vm3208_vm1, %v3936_v36, %v3205_v40  ;;  %v3079_v49 = vpop.xlane.xlu2 %3078 }
 0x827   : > { %v3297_v3 = vmul.f32 %v3209_v29, %v5422_v54  ;;  %v3107_v33 = vmul.f32 %v3079_v49, %v4803_v61 }
 0x829   : > { %v3317_v32 = vmul.f32 %v5510_v25, %v3297_v3  ;;  %v3938_v57 = vpop.eup %3937  ;;  %v3123_v51 = vadd.f32 1e-05, %v3107_v33 }
 0x82a   : > { %v3211_v41 = vmul.f32 %v3938_v57, %v3122_v15  ;;  %vm3217_vm4 = vweird.f32 %v3938_v57 }
 0x82b   : > { %v3337_v58 = vadd.f32 %v5517_v7, %v3317_v32  ;;  %3939 = vrsqrt.f32 %v3123_v51  ;;  %vm3218_vm6 = vmor %vm3216_vm5, %vm3217_vm4  ;;  %vm3226_vm8 = vweird.f32 %v3123_v51 }
 0x82c   : > { %v3212_v39 = vmul.f32 %v3938_v57, %v3211_v41 }
 0x82d   : > { %3353 = vst.msk [vmem:[%s5731_s25 + $0x38] sm:$0xff] %vm844_vm2, %v3337_v58 }
 0x82e   : > { %v3213_v52 = vmul.f32 0.5, %v3212_v39  ;;  %v3082_v17 = vpop.xlane.xlu0 %3081 }
 0x82f   : > { %v3108_v54 = vmul.f32 %v3082_v17, %v4803_v61 }
 0x830   : > { %v3214_v27 = vsub.f32 1.5, %v3213_v52 }
 0x831   : > { %v3940_v43 = vpop.eup %3939  ;;  %v3124_v35 = vadd.f32 1e-05, %v3108_v54 }
 0x832   : > { %v3215_v13 = vmul.f32 %v3938_v57, %v3214_v27  ;;  %v3221_v31 = vmul.f32 %v3940_v43, %v3123_v51  ;;  %vm3227_vm7 = vweird.f32 %v3940_v43 }
 0x833   : > { %3941 = vrsqrt.f32 %v3124_v35  ;;  %vm3228_vm9 = vmor %vm3226_vm8, %vm3227_vm7  ;;  %vm3236_vm11 = vweird.f32 %v3124_v35 }
 0x834   : > { %v3219_v0 = vsel %vm3218_vm6, %v3938_v57, %v3215_v13  ;;  %v3222_v30 = vmul.f32 %v3940_v43, %v3221_v31 }
 0x835   : > { %v3298_v19 = vmul.f32 %v3219_v0, %v5429_v23 }
 0x836   : > { %v3223_v24 = vmul.f32 0.5, %v3222_v30  ;;  %v3085_v63 = vpop.xlane.xlu1 %3084 }
 0x837   : > { %v3318_v2 = vmul.f32 %v5510_v25, %v3298_v19  ;;  %v3109_v55 = vmul.f32 %v3085_v63, %v4803_v61 }
 0x838   : > { %v3224_v11 = vsub.f32 1.5, %v3223_v24 }
 0x839   : > { %v3942_v45 = vpop.eup %3941  ;;  %v3338_v46 = vadd.f32 %v5517_v7, %v3318_v2  ;;  %v3125_v21 = vadd.f32 1e-05, %v3109_v55 }
 0x83a   : > { %v3225_v53 = vmul.f32 %v3940_v43, %v3224_v11  ;;  %v3231_v38 = vmul.f32 %v3942_v45, %v3124_v35  ;;  %vm3237_vm10 = vweird.f32 %v3942_v45 }
 0x83b   : > { %3354 = vst.msk [vmem:[%s5731_s25 + $0x40] sm:$0xff] %vm844_vm2, %v3338_v46  ;;  %3943 = vrsqrt.f32 %v3125_v21  ;;  %vm3238_vm12 = vmor %vm3236_vm11, %vm3237_vm10  ;;  %vm3246_vm14 = vweird.f32 %v3125_v21 }
 0x83c   : > { %v3229_v23 = vsel %vm3228_vm9, %v3940_v43, %v3225_v53  ;;  %v3232_v8 = vmul.f32 %v3942_v45, %v3231_v38 }
 0x83d   : > { %v3299_v34 = vmul.f32 %v3229_v23, %v5436_v62 }
 0x83e   : > { %v3233_v9 = vmul.f32 0.5, %v3232_v8  ;;  %v3088_v48 = vpop.xlane.xlu2 %3087 }
 0x83f   : > { %v3319_v60 = vmul.f32 %v5510_v25, %v3299_v34  ;;  %v3110_v20 = vmul.f32 %v3088_v48, %v4803_v61 }
 0x840   : > { %v3234_v36 = vsub.f32 1.5, %v3233_v9 }
 0x841   : > { %v3944_v56 = vpop.eup %3943  ;;  %v3339_v12 = vadd.f32 %v5517_v7, %v3319_v60  ;;  %v3126_v6 = vadd.f32 1e-05, %v3110_v20 }
 0x842   : > { %v3235_v5 = vmul.f32 %v3942_v45, %v3234_v36  ;;  %v3241_v44 = vmul.f32 %v3944_v56, %v3125_v21  ;;  %vm3247_vm13 = vweird.f32 %v3944_v56 }
 0x843   : > { %3355 = vst.msk [vmem:[%s5731_s25 + $0x48] sm:$0xff] %vm844_vm2, %v3339_v12  ;;  %3945 = vrsqrt.f32 %v3126_v6  ;;  %vm3248_vm15 = vmor %vm3246_vm14, %vm3247_vm13  ;;  %vm3256_vm1 = vweird.f32 %v3126_v6 }
 0x844   : > { %v3239_v62 = vsel %vm3238_vm12, %v3942_v45, %v3235_v5  ;;  %v3242_v22 = vmul.f32 %v3944_v56, %v3241_v44 }
 0x845   : > { %v3300_v4 = vmul.f32 %v3239_v62, %v5443_v42 }
 0x846   : > { %v3243_v26 = vmul.f32 0.5, %v3242_v22  ;;  %v3091_v47 = vpop.xlane.xlu0 %3090 }
 0x847   : > { %v3320_v14 = vmul.f32 %v5510_v25, %v3300_v4  ;;  %v3111_v28 = vmul.f32 %v3091_v47, %v4803_v61 }
 0x848   : > { %v3244_v15 = vsub.f32 1.5, %v3243_v26 }
 0x849   : > { %v3946_v40 = vpop.eup %3945  ;;  %v3340_v29 = vadd.f32 %v5517_v7, %v3320_v14  ;;  %v3127_v3 = vadd.f32 1e-05, %v3111_v28 }
 0x84a   : > { %v3245_v49 = vmul.f32 %v3944_v56, %v3244_v15  ;;  %v3251_v32 = vmul.f32 %v3946_v40, %v3126_v6  ;;  %vm3257_vm0 = vweird.f32 %v3946_v40 }
 0x84b   : > { %3356 = vst.msk [vmem:[%s5731_s25 + $0x50] sm:$0xff] %vm844_vm2, %v3340_v29  ;;  %3947 = vrsqrt.f32 %v3127_v3  ;;  %vm3258_vm4 = vmor %vm3256_vm1, %vm3257_vm0  ;;  %vm3266_vm6 = vweird.f32 %v3127_v3 }
 0x84c   : > { %v3249_v42 = vsel %vm3248_vm15, %v3944_v56, %v3245_v49  ;;  %v3252_v33 = vmul.f32 %v3946_v40, %v3251_v32 }
 0x84d   : > { %v3301_v57 = vmul.f32 %v3249_v42, %v5450_v10 }
 0x84e   : > { %v3253_v58 = vmul.f32 0.5, %v3252_v33  ;;  %v3094_v51 = vpop.xlane.xlu1 %3093 }
 0x84f   : > { %v3321_v41 = vmul.f32 %v5510_v25, %v3301_v57  ;;  %v3112_v39 = vmul.f32 %v3094_v51, %v4803_v61 }
 0x850   : > { %v3254_v52 = vsub.f32 1.5, %v3253_v58 }
 0x851   : > { %v3948_v17 = vpop.eup %3947  ;;  %v3341_v54 = vadd.f32 %v5517_v7, %v3321_v41  ;;  %v3128_v27 = vadd.f32 1e-05, %v3112_v39 }
 0x852   : > { %v3255_v43 = vmul.f32 %v3946_v40, %v3254_v52  ;;  %v3261_v35 = vmul.f32 %v3948_v17, %v3127_v3  ;;  %vm3267_vm5 = vweird.f32 %v3948_v17 }
 0x853   : > { %3357 = vst.msk [vmem:[%s5731_s25 + $0x58] sm:$0xff] %vm844_vm2, %v3341_v54  ;;  %3949 = vrsqrt.f32 %v3128_v27  ;;  %v3384_v10 = vpop.xlane.xlu0 %3383  ;;  %vm3268_vm7 = vmor %vm3266_vm6, %vm3267_vm5  ;;  %vm3276_vm13 = vweird.f32 %v3128_v27 }
 0x854   : > { %v3259_v13 = vsel %vm3258_vm4, %v3946_v40, %v3255_v43  ;;  %v3262_v31 = vmul.f32 %v3948_v17, %v3261_v35  ;;  %3951 = vrcp.f32 %v3384_v10  ;;  %vm3393_vm8 = vweird.f32 %v3384_v10 }
 0x855   : > { %v3302_v0 = vmul.f32 %v3259_v13, %v5457_v50  ;;  %v3399_v8 = vand.u32 2147483648, %v3384_v10  ;;  %v3397_v48 = vand.u32 2147483647, %v3384_v10 }
 0x856   : > { %v3263_v30 = vmul.f32 0.5, %v3262_v31  ;;  %v3097_v19 = vpop.xlane.xlu2 %3096 }
 0x857   : > { %v3322_v24 = vmul.f32 %v5510_v25, %v3302_v0  ;;  %v3113_v63 = vmul.f32 %v3097_v19, %v4803_v61  ;;  %v3400_v6 = vor.u32 1.1754944e-38, %v3399_v8  ;;  %vm3398_vm12 = vcmp.eq.f32.partialorder %v3397_v48, 8.507059e+37 }
 0x858   : > { %v3264_v2 = vsub.f32 1.5, %v3263_v30 }
 0x859   : > { %v3950_v55 = vpop.eup %3949  ;;  %v3342_v11 = vadd.f32 %v5517_v7, %v3322_v24  ;;  %v3129_v45 = vadd.f32 1e-05, %v3113_v63 }
 0x85a   : > { %v3952_v46 = vpop.eup %3951  ;;  %v3265_v21 = vmul.f32 %v3948_v17, %v3264_v2  ;;  %v3271_v53 = vmul.f32 %v3950_v55, %v3128_v27  ;;  %vm3277_vm10 = vweird.f32 %v3950_v55 }
 0x85b   : > { %3358 = vst.msk [vmem:[%s5731_s25 + $0x60] sm:$0xff] %vm844_vm2, %v3342_v11  ;;  %v3389_v50 = vmul.f32 %v3952_v46, %v3384_v10  ;;  %3953 = vrsqrt.f32 %v3129_v45  ;;  %v3387_v61 = vpop.xlane.xlu1 %3386  ;;  %vm3394_vm9 = vweird.f32 %v3952_v46  ;;  %vm3278_vm14 = vmor %vm3276_vm13, %vm3277_vm10  ;;  %vm3286_vm4 = vweird.f32 %v3129_v45 }
 0x85c   : > { %v3269_v38 = vsel %vm3268_vm7, %v3948_v17, %v3265_v21  ;;  %v3272_v23 = vmul.f32 %v3950_v55, %v3271_v53  ;;  %3955 = vrcp.f32 %v3387_v61  ;;  %vm5629_vm11 = vmor %vm3393_vm8, %vm3394_vm9  ;;  %v3414_v32 = vand.u32 2147483648, %v3387_v61 }
 0x85d   : > { %v3303_v34 = vmul.f32 %v3269_v38, %v5464_v18  ;;  %v3390_v9 = vsub.f32 1.0, %v3389_v50  ;;  %v3412_v57 = vand.u32 2147483647, %v3387_v61  ;;  %vm3408_vm1 = vweird.f32 %v3387_v61 }
 0x85e   : > { %v3273_v60 = vmul.f32 0.5, %v3272_v23  ;;  %v3415_v41 = vor.u32 1.1754944e-38, %v3414_v32 }
 0x85f   : > { %v3323_v20 = vmul.f32 %v5510_v25, %v3303_v34  ;;  %v3391_v36 = vmul.f32 %v3952_v46, %v3390_v9  ;;  %vm3413_vm7 = vcmp.eq.f32.partialorder %v3412_v57, 8.507059e+37 }
 0x860   : > { %v3274_v56 = vsub.f32 1.5, %v3273_v60 }
 0x861   : > { %v3954_v5 = vpop.eup %3953  ;;  %v3343_v44 = vadd.f32 %v5517_v7, %v3323_v20  ;;  %v3392_v62 = vadd.f32 %v3952_v46, %v3391_v36 }
 0x862   : > { %v3956_v18 = vpop.eup %3955  ;;  %v3275_v22 = vmul.f32 %v3950_v55, %v3274_v56  ;;  %v3281_v4 = vmul.f32 %v3954_v5, %v3129_v45  ;;  %vm3287_vm0 = vweird.f32 %v3954_v5 }
 0x863   : > { %3359 = vst.msk [vmem:[%s5731_s25 + $0x68] sm:$0xff] %vm844_vm2, %v3343_v44  ;;  %v3396_v26 = vsel %vm5629_vm11, %v3952_v46, %v3392_v62  ;;  %v3404_v47 = vmul.f32 %v3956_v18, %v3387_v61  ;;  %vm3409_vm15 = vweird.f32 %v3956_v18  ;;  %vm3288_vm6 = vmor %vm3286_vm4, %vm3287_vm0 }
 0x864   : > { %v3279_v14 = vsel %vm3278_vm14, %v3950_v55, %v3275_v22  ;;  %v3401_v28 = vsel %vm3398_vm12, %v3400_v6, %v3396_v26  ;;  %v3282_v15 = vmul.f32 %v3954_v5, %v3281_v4  ;;  %vm3410_vm5 = vmor %vm3408_vm1, %vm3409_vm15 }
 0x865   : > { %v3304_v40 = vmul.f32 %v3279_v14, %v5472_v1  ;;  %v3402_v29 = vmul.f32 %v5480_v59, %v3401_v28  ;;  %v3405_v3 = vsub.f32 1.0, %v3404_v47 }
 0x866   : > { %v3283_v49 = vmul.f32 0.5, %v3282_v15 }
 0x867   : > { %v3324_v42 = vmul.f32 %v5510_v25, %v3304_v40  ;;  %3418 = vst.msk [vmem:[%s5734_s13] sm:$0xff] %vm1156_vm3, %v3402_v29  ;;  %v3406_v33 = vmul.f32 %v3956_v18, %v3405_v3 }
 0x868   : > { %v3284_v58 = vsub.f32 1.5, %v3283_v49 }
 0x869   : > { %v3344_v51 = vadd.f32 %v5517_v7, %v3324_v42  ;;  %v3407_v1 = vadd.f32 %v3956_v18, %v3406_v33 }
 0x86a   : > { %v3285_v59 = vmul.f32 %v3954_v5, %v3284_v58 }
 0x86b   : > { %3360 = vst.msk [vmem:[%s5731_s25 + $0x70] sm:$0xff] %vm844_vm2, %v3344_v51  ;;  %v3411_v39 = vsel %vm3410_vm5, %v3956_v18, %v3407_v1 }
 0x86c   : > { %v3289_v52 = vsel %vm3288_vm6, %v3954_v5, %v3285_v59  ;;  %v3416_v17 = vsel %vm3413_vm7, %v3415_v41, %v3411_v39 }
 0x86d   : > { %v3305_v54 = vmul.f32 %v3289_v52, %v5483_v16  ;;  %v3417_v27 = vmul.f32 %v5493_v37, %v3416_v17 }
 0x86f   : > { %v3325_v43 = vmul.f32 %v5510_v25, %v3305_v54  ;;  %3419 = vst.msk [vmem:[%s5734_s13 + $0x8] sm:$0xff] %vm1156_vm3, %v3417_v27 }
 0x871   : > { %v3345_v35 = vadd.f32 %v5517_v7, %v3325_v43 }
 0x873   : > { %3361 = vst.msk [vmem:[%s5731_s25 + $0x78] sm:$0xff] %vm844_vm2, %v3345_v35 }
 0x874 PF: > { %s5735_s24 = sld [smem:[#allocation5_spill]] }
 0x875   : > { %s5736_s0 = sld [smem:[#allocation4_spill]] }
 0x876   : > { %s5737_s30 = sld [smem:[#allocation6_spill]] }
 0x87a   : > { %s30_s20 = sadd.s32 1, %s5735_s24  }
 0x87b   : > { %p27_p7 = scmp.ge.s32.totalorder %s30_s20, 6  }
 0x87d   :  { %29 = sbr.rel (!%p27_p7) target bundleno = 10 (0xa), region = 166 }

</bundles_post_ra>
